<compile_context>
chip_gen: v7x
topology: tpu7x:2x2x1
jax: 0.10.0
libtpu: 0.0.40
codegen_flags: <defaults>
</compile_context>

<pallas_src>
import jax
import jax.numpy as jnp
from jax import lax
from jax.experimental import pallas as pl
from jax.experimental.pallas import tpu as pltpu

# ---- small synthetic config -------------------------------------------------
B = 2          # batch
L = 8          # sequence length == TTT mini_batch_size (single mini-batch)
H = 32         # hidden_size
NH = 4         # num_attention_heads
HD = H // NH   # head_dim
I = 64         # intermediate_size
HP = 128       # lane-padded hidden size   (H  zero-padded to 128 lanes)
IP = 128       # lane-padded intermediate  (I  zero-padded to 128 lanes)
TTT_BASE_LR = 1.0
LN_EPS = 1e-5      # nn.LayerNorm default (norm1 / norm2)
POST_EPS = 1e-6    # TTT post_norm eps
TTT_EPS = 1e-6     # TTT inner layer-norm eps

BB = B             # batch elements per grid step (keep GRID=1 at these sizes)
assert B % BB == 0
BL = BB * L        # token rows per grid step
GRID = B // BB
NHBL = NH * BL     # sublane-stacked per-head score rows

HIGH = lax.Precision.HIGHEST   # true-f32 MXU passes for stats/grad/score dots

# rows of the packed small-vector parameter slab (12, HP)
(V_LN1_W, V_LN1_B, V_LRB, V_B1, V_TTT_W, V_TTT_B,
 V_POST_W, V_POST_B, V_LN2_W, V_LN2_B, V_MLP_B2, V_MLP_B1) = range(12)
N_VEC = 12

# row offsets inside the packed constant slab (C_ROWS, HP) -- all 8-aligned
C_AVG = 0                 # (HP, HP)   per-head averaging matrix (block diag 1/HD)
C_GMASK = C_AVG + HP      # (NHBL, HP) head block mask for stacked score matmuls
C_COS = C_GMASK + NHBL    # (BL, HP)   RoPE cos (tiled over heads & batch block)
C_SIN = C_COS + BL        # (BL, HP)   RoPE sin
C_ROWS = C_SIN + BL


def _ln_lane_padded(x, w, b, eps, n):
    """LayerNorm over the first `n` (real) lanes of a zero-padded 128-lane row.

    Padded lanes of x must be exactly 0 and w/b are zero-padded, so the padded
    output lanes stay 0.  Uses var = E[x^2] - mu^2 and rsqrt (no divides).
    """
    mu = jnp.sum(x, axis=-1, keepdims=True) * (1.0 / n)
    ms = jnp.sum(x * x, axis=-1, keepdims=True) * (1.0 / n)
    var = ms - mu * mu
    return (x - mu) * lax.rsqrt(var + eps) * w + b


# ---- the kernel --------------------------------------------------------------
def ttt_vit_block_kernel(x_ref, wbig_ref, w1_ref, wo_ref, mw1_ref, mw2_ref,
                         vec_ref, const_ref, tril_ref, out_ref):
    f32 = jnp.float32
    bf16 = jnp.bfloat16

    x = x_ref[...]                                      # (BL, HP) f32, lanes>=H are 0
    vec = vec_ref[...]                                  # (12, HP) f32
    cp = const_ref[...]                                 # (C_ROWS, HP) f32
    tp = tril_ref[...]                                  # (NHBL + BL, BL) f32

    # hoisted constants (built in the wrapper, zero kernel prologue work)
    avg_blk = cp[C_AVG:C_AVG + HP]                      # (HP, HP)
    gmask = cp[C_GMASK:C_GMASK + NHBL]                  # (NHBL, HP)
    cos_t = cp[C_COS:C_COS + BL]                        # (BL, HP)
    sin_t = cp[C_SIN:C_SIN + BL]                        # (BL, HP)
    tril_tiled = tp[:NHBL]                              # (NHBL, BL) lr-scaled causal, NH-tiled
    tril_coef = tp[NHBL:]                               # (BL, BL)

    # packed small vectors (each row already zero-padded to HP lanes)
    ln1_w = vec[V_LN1_W:V_LN1_W + 1]
    ln1_b = vec[V_LN1_B:V_LN1_B + 1]
    lr_b = vec[V_LRB:V_LRB + 1]
    b1 = vec[V_B1:V_B1 + 1]
    ttt_w = vec[V_TTT_W:V_TTT_W + 1]
    ttt_b = vec[V_TTT_B:V_TTT_B + 1]
    post_w = vec[V_POST_W:V_POST_W + 1]
    post_b = vec[V_POST_B:V_POST_B + 1]
    ln2_w = vec[V_LN2_W:V_LN2_W + 1]
    ln2_b = vec[V_LN2_B:V_LN2_B + 1]
    mlp_b2 = vec[V_MLP_B2:V_MLP_B2 + 1]
    mlp_b1 = vec[V_MLP_B1:V_MLP_B1 + 1]

    # ---------------- norm1 ----------------
    x_ln = _ln_lane_padded(x, ln1_w, ln1_b, LN_EPS, H)              # (BL, HP)

    # ------- fused QKV + RoPE + per-token lr projection (one GEMM) -----------
    # RoPE's rotate_half and the per-head lr broadcast are folded into w_big.
    proj = jnp.dot(x_ln.astype(bf16), wbig_ref[...],
                   preferred_element_type=f32)                      # (BL, 6*HP)
    q = proj[:, 0 * HP:1 * HP] * cos_t + proj[:, 1 * HP:2 * HP] * sin_t
    k = proj[:, 2 * HP:3 * HP] * cos_t + proj[:, 3 * HP:4 * HP] * sin_t
    v = proj[:, 4 * HP:5 * HP]
    lr = jax.nn.sigmoid(proj[:, 5 * HP:6 * HP] + lr_b)              # (BL, HP)

    # ---------------- TTT inner step (dual form, heads fused) ----------------
    # z1 (from k) and z1_bar's base (from q) share one block-diag W1 GEMM.
    kq = jnp.concatenate([k, q], axis=0).astype(bf16)               # (2*BL, HP)
    z1q = jnp.dot(kq, w1_ref[...], preferred_element_type=f32)
    z1 = z1q[:BL] + b1
    z1_bar_base = z1q[BL:] + b1
    target = v - k

    # fused per-head LayerNorm stats: one stacked matmul gives mu and E[z1^2]
    st = jnp.dot(jnp.concatenate([z1, z1 * z1], axis=0), avg_blk,
                 precision=HIGH, preferred_element_type=f32)        # (2*BL, HP)
    mu = st[:BL]
    inv_std = lax.rsqrt(st[BL:] - mu * mu + TTT_EPS)
    xhat = (z1 - mu) * inv_std

    # L2 + LayerNorm backward; both per-head means in one stacked matmul
    grad_out = ttt_w * xhat + ttt_b - target
    grad_xhat = ttt_w * grad_out
    gs = jnp.dot(jnp.concatenate([grad_xhat, grad_xhat * xhat], axis=0), avg_blk,
                 precision=HIGH, preferred_element_type=f32)        # (2*BL, HP)
    grad_z1 = (grad_xhat - gs[:BL] - xhat * gs[BL:]) * inv_std
    g = lr * grad_z1                                                # (BL, HP)

    # per-head causal scores, all heads stacked along sublanes:
    #   q_big[h*BL+i, :] = q[i, :] masked to head h  ->  S[h*BL+i, j] = q_h[i].k_h[j]
    q_big = jnp.concatenate([q] * NH, axis=0) * gmask               # (NHBL, HP)
    s_stack = lax.dot_general(q_big, k, (((1,), (1,)), ((), ())),
                              precision=HIGH,
                              preferred_element_type=f32)           # (NHBL, BL)
    p_stack = jnp.dot(s_stack * tril_tiled, g,
                      precision=HIGH, preferred_element_type=f32)   # (NHBL, HP)
    tril_g = jnp.dot(tril_coef, g,
                     precision=HIGH, preferred_element_type=f32)    # (BL, HP)

    # fold the head-stacked rows back to (BL, HP); pure elementwise
    attn_g = p_stack[0:BL] * gmask[0:1]
    for h in range(1, NH):
        attn_g = attn_g + p_stack[h * BL:(h + 1) * BL] * gmask[h * BL:h * BL + 1]

    z1_bar = z1_bar_base - attn_g - tril_g                          # (BL, HP)

    # per-head post layer-norm (stats in one stacked matmul) + residual with XQ
    st2 = jnp.dot(jnp.concatenate([z1_bar, z1_bar * z1_bar], axis=0), avg_blk,
                  precision=HIGH, preferred_element_type=f32)
    mu2 = st2[:BL]
    z1_ln = ttt_w * ((z1_bar - mu2) * lax.rsqrt(st2[BL:] - mu2 * mu2 + TTT_EPS)) + ttt_b
    ttt_out = q + z1_ln                                             # (BL, HP)

    # outer post-norm + output projection
    ttt_out = _ln_lane_padded(ttt_out, post_w, post_b, POST_EPS, H)
    ttt_out = jnp.dot(ttt_out.astype(bf16), wo_ref[...],
                      preferred_element_type=f32)

    # residual 1
    x = x + ttt_out

    # ---------------- norm2 + MLP ----------------
    h2 = _ln_lane_padded(x, ln2_w, ln2_b, LN_EPS, H)
    h2 = jnp.dot(h2.astype(bf16), mw1_ref[...],
                 preferred_element_type=f32) + mlp_b1
    h2 = jax.nn.gelu(h2, approximate=True)        # tanh GELU -> EUP slot
    h2 = jnp.dot(h2.astype(bf16), mw2_ref[...],
                 preferred_element_type=f32) + mlp_b2

    out_ref[...] = (x + h2).astype(out_ref.dtype)   # full-lane (BL, 128) store


# ---- wrapper -----------------------------------------------------------------
def ttt_vit_block(x, params):
    w_big, w1_blk, wo_k, mw1_k, mw2_k, vecpack, constpack, trilpack = params
    x_flat = x.reshape(B * L, H)
    x_pad = jnp.pad(x_flat, ((0, 0), (0, HP - H)))    # lane-dense activation path

    def _full(p):
        return pl.BlockSpec(p.shape, lambda i: (0, 0))

    out = pl.pallas_call(
        ttt_vit_block_kernel,
        out_shape=jax.ShapeDtypeStruct((B * L, HP), jnp.float32),
        grid=(GRID,),
        in_specs=[
            pl.BlockSpec((BL, HP), lambda i: (i, 0)),
            _full(w_big), _full(w1_blk), _full(wo_k),
            _full(mw1_k), _full(mw2_k), _full(vecpack), _full(constpack),
            _full(trilpack),
        ],
        out_specs=pl.BlockSpec((BL, HP), lambda i: (i, 0)),
        compiler_params=pltpu.CompilerParams(dimension_semantics=("parallel",)),
    )(x_pad, w_big, w1_blk, wo_k, mw1_k, mw2_k, vecpack, constpack, trilpack)
    return out[:, :H].reshape(B, L, H)


# ---- deterministic parameter construction -------------------------------------
def init_params(key):
    ks = jax.random.split(key, 10)

    def nrm(k, shape):
        return (0.02 * jax.random.normal(k, shape)).astype(jnp.float32)

    # PyTorch-layout parameters
    wq = nrm(ks[0], (H, H)); wk = nrm(ks[1], (H, H))
    wv = nrm(ks[2], (H, H)); wo = nrm(ks[3], (H, H))
    lr_w = nrm(ks[4], (NH, H)); lr_b = jnp.zeros((NH,), jnp.float32)
    W1 = nrm(ks[5], (NH, HD, HD)); b1 = jnp.zeros((NH, 1, HD), jnp.float32)
    ttt_ln_w = jnp.ones((NH, HD), jnp.float32)
    ttt_ln_b = jnp.zeros((NH, HD), jnp.float32)
    ln1_w = jnp.ones((H,), jnp.float32); ln1_b = jnp.zeros((H,), jnp.float32)
    ln2_w = jnp.ones((H,), jnp.float32); ln2_b = jnp.zeros((H,), jnp.float32)
    post_w = jnp.ones((H,), jnp.float32); post_b = jnp.zeros((H,), jnp.float32)
    mw1 = nrm(ks[6], (I, H)); mb1 = nrm(ks[7], (I,))
    mw2 = nrm(ks[8], (H, I)); mb2 = nrm(ks[9], (H,))

    def pad2(m, r, c):
        return jnp.pad(m.astype(jnp.float32),
                       ((0, r - m.shape[0]), (0, c - m.shape[1])))

    # signed permutation implementing rotate_half per head (x @ R == rotate_half(x))
    half = HD // 2
    R = jnp.zeros((HD, HD), jnp.float32)
    R = R.at[half:, :half].set(-jnp.eye(half, dtype=jnp.float32))
    R = R.at[:half, half:].set(jnp.eye(half, dtype=jnp.float32))
    R_blk = jnp.kron(jnp.eye(NH, dtype=jnp.float32), R)            # (H, H)

    # head-broadcast matrix for the lr logits: E[h, c] = 1 if c // HD == h
    E = (jnp.arange(H)[None, :] // HD == jnp.arange(NH)[:, None]).astype(jnp.float32)

    wqT, wkT, wvT = wq.T, wk.T, wv.T
    blocks = [wqT, wqT @ R_blk, wkT, wkT @ R_blk, wvT, lr_w.T @ E]
    w_big = jnp.concatenate([pad2(m, HP, HP) for m in blocks],
                            axis=1).astype(jnp.bfloat16)            # (HP, 6*HP)

    # block-diagonal inner-model weight, zero-padded to (HP, HP)
    w1_full = jnp.zeros((H, H), jnp.float32)
    for h in range(NH):
        w1_full = w1_full.at[h * HD:(h + 1) * HD, h * HD:(h + 1) * HD].set(W1[h])
    w1_blk = pad2(w1_full, HP, HP).astype(jnp.bfloat16)

    wo_k = pad2(wo.T, HP, HP).astype(jnp.bfloat16)
    mw1_k = pad2(mw1.T, HP, IP).astype(jnp.bfloat16)                # (HP, IP)
    mw2_k = pad2(mw2.T, IP, HP).astype(jnp.bfloat16)                # (IP, HP)

    # packed small-vector slab (12, HP), lane-padded with zeros
    def pad_row(v):
        v = v.astype(jnp.float32).reshape(-1)
        return jnp.zeros((HP,), jnp.float32).at[:v.shape[0]].set(v)

    vecpack = jnp.stack([
        pad_row(ln1_w), pad_row(ln1_b),
        pad_row(jnp.repeat(lr_b, HD)),          # per-head lr bias, head-broadcast
        pad_row(b1.reshape(H)),
        pad_row(ttt_ln_w.reshape(H)), pad_row(ttt_ln_b.reshape(H)),
        pad_row(post_w), pad_row(post_b),
        pad_row(ln2_w), pad_row(ln2_b),
        pad_row(mb2),
        pad_row(mb1),
    ])                                                              # (12, HP)

    # ---- hoisted kernel constants --------------------------------------------
    # per-head averaging matrix (block-diagonal 1/HD on the real H lanes)
    r = jnp.arange(HP)
    head_of = jnp.where(r < H, r // HD, -1)
    avg_blk = ((head_of[:, None] == head_of[None, :]) &
               (head_of[:, None] >= 0)).astype(jnp.float32) * (1.0 / HD)   # (HP, HP)

    # head block mask for the sublane-stacked per-head score matmuls
    rg = jnp.arange(NHBL)[:, None] // BL
    gmask = (rg == head_of[None, :]).astype(jnp.float32)            # (NHBL, HP)

    # batch-block-diagonal causal mask pre-scaled by the TTT lr coefficient
    # coef[i] = base_lr/head_dim * 1/(token_pos+1); pre-tiled over heads too.
    ri = jnp.arange(BL)[:, None]; ci = jnp.arange(BL)[None, :]
    same_batch = (ri // L) == (ci // L)
    causal = (ci % L) <= (ri % L)
    coef_row = (TTT_BASE_LR / HD) / ((ri % L).astype(jnp.float32) + 1.0)
    tril_coef = jnp.where(same_batch & causal, coef_row, 0.0)       # (BL, BL)
    trilpack = jnp.concatenate([jnp.tile(tril_coef, (NH, 1)), tril_coef],
                               axis=0)                              # (NHBL+BL, BL)

    # RoPE tables (position_ids = arange(L), prefill), tiled over heads & batch
    pos = jnp.arange(L, dtype=jnp.float32)
    inv_freq = 1.0 / (10000.0 ** (jnp.arange(0, HD, 2, dtype=jnp.float32) / HD))
    freqs = jnp.outer(pos, inv_freq)
    emb = jnp.concatenate([freqs, freqs], axis=-1)                  # (L, HD)
    cos_t = jnp.pad(jnp.tile(jnp.cos(emb), (BB, NH)), ((0, 0), (0, HP - H)))
    sin_t = jnp.pad(jnp.tile(jnp.sin(emb), (BB, NH)), ((0, 0), (0, HP - H)))

    constpack = jnp.concatenate([avg_blk, gmask, cos_t, sin_t],
                                axis=0).astype(jnp.float32)         # (C_ROWS, HP)
    assert constpack.shape == (C_ROWS, HP)

    return (w_big, w1_blk, wo_k, mw1_k, mw2_k, vecpack, constpack, trilpack)


if __name__ == "__main__":
    key = jax.random.PRNGKey(0)
    kx, kp = jax.random.split(key)
    x = jax.random.normal(kx, (B, L, H), jnp.float32)
    params = init_params(kp)

    out = ttt_vit_block(x, params)
    out = jax.block_until_ready(out)
    assert out.shape == (B, L, H) and out.dtype == jnp.float32
    assert bool(jnp.all(jnp.isfinite(out)))
    print("KERNEL_OK")
</pallas_src>

<mosaic_0001>
module attributes {stable_mosaic.version = 11 : i64} {
  func.func @ttt_vit_block_kernel(%arg0: i32, %arg1: memref<16x128xf32, #tpu.memory_space<vmem>>, %arg2: memref<128x768xbf16, #tpu.memory_space<vmem>>, %arg3: memref<128x128xbf16, #tpu.memory_space<vmem>>, %arg4: memref<128x128xbf16, #tpu.memory_space<vmem>>, %arg5: memref<128x128xbf16, #tpu.memory_space<vmem>>, %arg6: memref<128x128xbf16, #tpu.memory_space<vmem>>, %arg7: memref<12x128xf32, #tpu.memory_space<vmem>>, %arg8: memref<224x128xf32, #tpu.memory_space<vmem>>, %arg9: memref<80x16xf32, #tpu.memory_space<vmem>>, %arg10: memref<16x128xf32, #tpu.memory_space<vmem>>) attributes {dimension_semantics = [#tpu.dimension_semantics<parallel>], iteration_bounds = array<i64: 1>, scalar_prefetch = 0 : i64, scratch_operands = 0 : i64, tpu.core_type = #tpu.core_type<tc>, window_params = [{transform_indices = @transform_0, window_bounds = array<i64: 16, 128>}, {pipeline_mode = #tpu.pipeline_mode<synchronous>, transform_indices = @transform_1, window_bounds = array<i64: 128, 768>}, {pipeline_mode = #tpu.pipeline_mode<synchronous>, transform_indices = @transform_2, window_bounds = array<i64: 128, 128>}, {pipeline_mode = #tpu.pipeline_mode<synchronous>, transform_indices = @transform_3, window_bounds = array<i64: 128, 128>}, {pipeline_mode = #tpu.pipeline_mode<synchronous>, transform_indices = @transform_4, window_bounds = array<i64: 128, 128>}, {pipeline_mode = #tpu.pipeline_mode<synchronous>, transform_indices = @transform_5, window_bounds = array<i64: 128, 128>}, {pipeline_mode = #tpu.pipeline_mode<synchronous>, transform_indices = @transform_6, window_bounds = array<i64: 12, 128>}, {pipeline_mode = #tpu.pipeline_mode<synchronous>, transform_indices = @transform_7, window_bounds = array<i64: 224, 128>}, {pipeline_mode = #tpu.pipeline_mode<synchronous>, transform_indices = @transform_8, window_bounds = array<i64: 80, 16>}, {transform_indices = @transform_9, window_bounds = array<i64: 16, 128>}]} {
    %c0 = arith.constant 0 : index
    %c0_0 = arith.constant 0 : index
    %0 = vector.load %arg1[%c0, %c0_0] : memref<16x128xf32, #tpu.memory_space<vmem>>, vector<16x128xf32>
    %c0_1 = arith.constant 0 : index
    %c0_2 = arith.constant 0 : index
    %1 = vector.load %arg7[%c0_1, %c0_2] : memref<12x128xf32, #tpu.memory_space<vmem>>, vector<12x128xf32>
    %c0_3 = arith.constant 0 : index
    %c0_4 = arith.constant 0 : index
    %2 = vector.load %arg8[%c0_3, %c0_4] : memref<224x128xf32, #tpu.memory_space<vmem>>, vector<224x128xf32>
    %c0_5 = arith.constant 0 : index
    %c0_6 = arith.constant 0 : index
    %3 = vector.load %arg9[%c0_5, %c0_6] : memref<80x16xf32, #tpu.memory_space<vmem>>, vector<80x16xf32>
    %4 = vector.extract_strided_slice %2 {offsets = [0, 0], sizes = [128, 128], strides = [1, 1]} : vector<224x128xf32> to vector<128x128xf32>
    %5 = vector.extract_strided_slice %2 {offsets = [128, 0], sizes = [64, 128], strides = [1, 1]} : vector<224x128xf32> to vector<64x128xf32>
    %6 = vector.extract_strided_slice %2 {offsets = [192, 0], sizes = [16, 128], strides = [1, 1]} : vector<224x128xf32> to vector<16x128xf32>
    %7 = vector.extract_strided_slice %2 {offsets = [208, 0], sizes = [16, 128], strides = [1, 1]} : vector<224x128xf32> to vector<16x128xf32>
    %8 = vector.extract_strided_slice %3 {offsets = [0, 0], sizes = [64, 16], strides = [1, 1]} : vector<80x16xf32> to vector<64x16xf32>
    %9 = vector.extract_strided_slice %3 {offsets = [64, 0], sizes = [16, 16], strides = [1, 1]} : vector<80x16xf32> to vector<16x16xf32>
    %10 = vector.extract_strided_slice %1 {offsets = [0, 0], sizes = [1, 128], strides = [1, 1]} : vector<12x128xf32> to vector<1x128xf32>
    %11 = vector.extract_strided_slice %1 {offsets = [1, 0], sizes = [1, 128], strides = [1, 1]} : vector<12x128xf32> to vector<1x128xf32>
    %12 = vector.extract_strided_slice %1 {offsets = [2, 0], sizes = [1, 128], strides = [1, 1]} : vector<12x128xf32> to vector<1x128xf32>
    %13 = vector.extract_strided_slice %1 {offsets = [3, 0], sizes = [1, 128], strides = [1, 1]} : vector<12x128xf32> to vector<1x128xf32>
    %14 = vector.extract_strided_slice %1 {offsets = [4, 0], sizes = [1, 128], strides = [1, 1]} : vector<12x128xf32> to vector<1x128xf32>
    %15 = vector.extract_strided_slice %1 {offsets = [5, 0], sizes = [1, 128], strides = [1, 1]} : vector<12x128xf32> to vector<1x128xf32>
    %16 = vector.extract_strided_slice %1 {offsets = [6, 0], sizes = [1, 128], strides = [1, 1]} : vector<12x128xf32> to vector<1x128xf32>
    %17 = vector.extract_strided_slice %1 {offsets = [7, 0], sizes = [1, 128], strides = [1, 1]} : vector<12x128xf32> to vector<1x128xf32>
    %18 = vector.extract_strided_slice %1 {offsets = [8, 0], sizes = [1, 128], strides = [1, 1]} : vector<12x128xf32> to vector<1x128xf32>
    %19 = vector.extract_strided_slice %1 {offsets = [9, 0], sizes = [1, 128], strides = [1, 1]} : vector<12x128xf32> to vector<1x128xf32>
    %20 = vector.extract_strided_slice %1 {offsets = [10, 0], sizes = [1, 128], strides = [1, 1]} : vector<12x128xf32> to vector<1x128xf32>
    %21 = vector.extract_strided_slice %1 {offsets = [11, 0], sizes = [1, 128], strides = [1, 1]} : vector<12x128xf32> to vector<1x128xf32>
    %cst = arith.constant dense<0.000000e+00> : vector<16xf32>
    %22 = vector.multi_reduction <add>, %0, %cst [1] : vector<16x128xf32> to vector<16xf32>
    %23 = vector.shape_cast %22 : vector<16xf32> to vector<16x1xf32>
    %cst_7 = arith.constant 3.125000e-02 : f32
    %24 = vector.broadcast %cst_7 : f32 to vector<16x1xf32>
    %25 = arith.mulf %23, %24 : vector<16x1xf32>
    %26 = arith.mulf %0, %0 : vector<16x128xf32>
    %cst_8 = arith.constant dense<0.000000e+00> : vector<16xf32>
    %27 = vector.multi_reduction <add>, %26, %cst_8 [1] : vector<16x128xf32> to vector<16xf32>
    %28 = vector.shape_cast %27 : vector<16xf32> to vector<16x1xf32>
    %cst_9 = arith.constant 3.125000e-02 : f32
    %29 = vector.broadcast %cst_9 : f32 to vector<16x1xf32>
    %30 = arith.mulf %28, %29 : vector<16x1xf32>
    %31 = arith.mulf %25, %25 : vector<16x1xf32>
    %32 = arith.subf %30, %31 : vector<16x1xf32>
    %33 = vector.broadcast %25 : vector<16x1xf32> to vector<16x128xf32>
    %34 = arith.subf %0, %33 : vector<16x128xf32>
    %cst_10 = arith.constant 9.99999974E-6 : f32
    %35 = vector.broadcast %cst_10 : f32 to vector<16x1xf32>
    %36 = arith.addf %32, %35 : vector<16x1xf32>
    %37 = math.rsqrt %36 : vector<16x1xf32>
    %38 = vector.broadcast %37 : vector<16x1xf32> to vector<16x128xf32>
    %39 = arith.mulf %34, %38 : vector<16x128xf32>
    %40 = vector.broadcast %10 : vector<1x128xf32> to vector<16x128xf32>
    %41 = arith.mulf %39, %40 : vector<16x128xf32>
    %42 = vector.broadcast %11 : vector<1x128xf32> to vector<16x128xf32>
    %43 = arith.addf %41, %42 : vector<16x128xf32>
    %44 = arith.truncf %43 : vector<16x128xf32> to vector<16x128xbf16>
    %c0_11 = arith.constant 0 : index
    %c0_12 = arith.constant 0 : index
    %45 = vector.load %arg2[%c0_11, %c0_12] : memref<128x768xbf16, #tpu.memory_space<vmem>>, vector<128x768xbf16>
    %cst_13 = arith.constant dense<0.000000e+00> : vector<16x768xf32>
    %46 = tpu.matmul %44, %45, %cst_13 {dimension_numbers = #tpu.dot_dimension_numbers<[1], [0], [0], [1], [0, 0, 1, 1], [], []>} : vector<16x128xbf16>, vector<128x768xbf16>, vector<16x768xf32> -> vector<16x768xf32>
    %47 = vector.extract_strided_slice %46 {offsets = [0, 0], sizes = [16, 128], strides = [1, 1]} : vector<16x768xf32> to vector<16x128xf32>
    %48 = arith.mulf %47, %6 : vector<16x128xf32>
    %49 = vector.extract_strided_slice %46 {offsets = [0, 128], sizes = [16, 128], strides = [1, 1]} : vector<16x768xf32> to vector<16x128xf32>
    %50 = arith.mulf %49, %7 : vector<16x128xf32>
    %51 = arith.addf %48, %50 : vector<16x128xf32>
    %52 = vector.extract_strided_slice %46 {offsets = [0, 256], sizes = [16, 128], strides = [1, 1]} : vector<16x768xf32> to vector<16x128xf32>
    %53 = arith.mulf %52, %6 : vector<16x128xf32>
    %54 = vector.extract_strided_slice %46 {offsets = [0, 384], sizes = [16, 128], strides = [1, 1]} : vector<16x768xf32> to vector<16x128xf32>
    %55 = arith.mulf %54, %7 : vector<16x128xf32>
    %56 = arith.addf %53, %55 : vector<16x128xf32>
    %57 = vector.extract_strided_slice %46 {offsets = [0, 512], sizes = [16, 128], strides = [1, 1]} : vector<16x768xf32> to vector<16x128xf32>
    %58 = vector.extract_strided_slice %46 {offsets = [0, 640], sizes = [16, 128], strides = [1, 1]} : vector<16x768xf32> to vector<16x128xf32>
    %59 = vector.broadcast %12 : vector<1x128xf32> to vector<16x128xf32>
    %60 = arith.addf %58, %59 : vector<16x128xf32>
    %61 = arith.negf %60 : vector<16x128xf32>
    %62 = math.exp %61 : vector<16x128xf32>
    %cst_14 = arith.constant 1.000000e+00 : f32
    %63 = vector.broadcast %cst_14 : f32 to vector<16x128xf32>
    %64 = arith.addf %63, %62 : vector<16x128xf32>
    %65 = arith.divf %63, %64 : vector<16x128xf32>
    %66 = tpu.concatenate %56, %51 in 0 : vector<16x128xf32>, vector<16x128xf32> -> vector<32x128xf32>
    %67 = arith.truncf %66 : vector<32x128xf32> to vector<32x128xbf16>
    %c0_15 = arith.constant 0 : index
    %c0_16 = arith.constant 0 : index
    %68 = vector.load %arg3[%c0_15, %c0_16] : memref<128x128xbf16, #tpu.memory_space<vmem>>, vector<128x128xbf16>
    %cst_17 = arith.constant dense<0.000000e+00> : vector<32x128xf32>
    %69 = tpu.matmul %67, %68, %cst_17 {dimension_numbers = #tpu.dot_dimension_numbers<[1], [0], [0], [1], [0, 0, 1, 1], [], []>} : vector<32x128xbf16>, vector<128x128xbf16>, vector<32x128xf32> -> vector<32x128xf32>
    %70 = vector.extract_strided_slice %69 {offsets = [0, 0], sizes = [16, 128], strides = [1, 1]} : vector<32x128xf32> to vector<16x128xf32>
    %71 = vector.broadcast %13 : vector<1x128xf32> to vector<16x128xf32>
    %72 = arith.addf %70, %71 : vector<16x128xf32>
    %73 = vector.extract_strided_slice %69 {offsets = [16, 0], sizes = [16, 128], strides = [1, 1]} : vector<32x128xf32> to vector<16x128xf32>
    %74 = vector.broadcast %13 : vector<1x128xf32> to vector<16x128xf32>
    %75 = arith.addf %73, %74 : vector<16x128xf32>
    %76 = arith.subf %57, %56 : vector<16x128xf32>
    %77 = arith.mulf %72, %72 : vector<16x128xf32>
    %78 = tpu.concatenate %72, %77 in 0 : vector<16x128xf32>, vector<16x128xf32> -> vector<32x128xf32>
    %cst_18 = arith.constant dense<0.000000e+00> : vector<32x128xf32>
    %79 = tpu.matmul %78, %4, %cst_18 {dimension_numbers = #tpu.dot_dimension_numbers<[1], [0], [0], [1], [0, 0, 1, 1], [], []>, precision = #tpu.contract_precision<fp32>} : vector<32x128xf32>, vector<128x128xf32>, vector<32x128xf32> -> vector<32x128xf32>
    %80 = vector.extract_strided_slice %79 {offsets = [0, 0], sizes = [16, 128], strides = [1, 1]} : vector<32x128xf32> to vector<16x128xf32>
    %81 = vector.extract_strided_slice %79 {offsets = [16, 0], sizes = [16, 128], strides = [1, 1]} : vector<32x128xf32> to vector<16x128xf32>
    %82 = arith.mulf %80, %80 : vector<16x128xf32>
    %83 = arith.subf %81, %82 : vector<16x128xf32>
    %cst_19 = arith.constant 9.99999997E-7 : f32
    %84 = vector.broadcast %cst_19 : f32 to vector<16x128xf32>
    %85 = arith.addf %83, %84 : vector<16x128xf32>
    %86 = math.rsqrt %85 : vector<16x128xf32>
    %87 = arith.subf %72, %80 : vector<16x128xf32>
    %88 = arith.mulf %87, %86 : vector<16x128xf32>
    %89 = vector.broadcast %14 : vector<1x128xf32> to vector<16x128xf32>
    %90 = arith.mulf %89, %88 : vector<16x128xf32>
    %91 = vector.broadcast %15 : vector<1x128xf32> to vector<16x128xf32>
    %92 = arith.addf %90, %91 : vector<16x128xf32>
    %93 = arith.subf %92, %76 : vector<16x128xf32>
    %94 = vector.broadcast %14 : vector<1x128xf32> to vector<16x128xf32>
    %95 = arith.mulf %94, %93 : vector<16x128xf32>
    %96 = arith.mulf %95, %88 : vector<16x128xf32>
    %97 = tpu.concatenate %95, %96 in 0 : vector<16x128xf32>, vector<16x128xf32> -> vector<32x128xf32>
    %cst_20 = arith.constant dense<0.000000e+00> : vector<32x128xf32>
    %98 = tpu.matmul %97, %4, %cst_20 {dimension_numbers = #tpu.dot_dimension_numbers<[1], [0], [0], [1], [0, 0, 1, 1], [], []>, precision = #tpu.contract_precision<fp32>} : vector<32x128xf32>, vector<128x128xf32>, vector<32x128xf32> -> vector<32x128xf32>
    %99 = vector.extract_strided_slice %98 {offsets = [0, 0], sizes = [16, 128], strides = [1, 1]} : vector<32x128xf32> to vector<16x128xf32>
    %100 = arith.subf %95, %99 : vector<16x128xf32>
    %101 = vector.extract_strided_slice %98 {offsets = [16, 0], sizes = [16, 128], strides = [1, 1]} : vector<32x128xf32> to vector<16x128xf32>
    %102 = arith.mulf %88, %101 : vector<16x128xf32>
    %103 = arith.subf %100, %102 : vector<16x128xf32>
    %104 = arith.mulf %103, %86 : vector<16x128xf32>
    %105 = arith.mulf %65, %104 : vector<16x128xf32>
    %106 = tpu.concatenate %51, %51, %51, %51 in 0 : vector<16x128xf32>, vector<16x128xf32>, vector<16x128xf32>, vector<16x128xf32> -> vector<64x128xf32>
    %107 = arith.mulf %106, %5 : vector<64x128xf32>
    %cst_21 = arith.constant dense<0.000000e+00> : vector<64x16xf32>
    %108 = tpu.matmul %107, %56, %cst_21 {dimension_numbers = #tpu.dot_dimension_numbers<[1], [1], [0], [0], [0, 0, 1, 0], [], []>, precision = #tpu.contract_precision<fp32>} : vector<64x128xf32>, vector<16x128xf32>, vector<64x16xf32> -> vector<64x16xf32>
    %109 = arith.mulf %108, %8 : vector<64x16xf32>
    %cst_22 = arith.constant dense<0.000000e+00> : vector<64x128xf32>
    %110 = tpu.matmul %109, %105, %cst_22 {dimension_numbers = #tpu.dot_dimension_numbers<[1], [0], [0], [1], [0, 0, 1, 1], [], []>, precision = #tpu.contract_precision<fp32>} : vector<64x16xf32>, vector<16x128xf32>, vector<64x128xf32> -> vector<64x128xf32>
    %cst_23 = arith.constant dense<0.000000e+00> : vector<16x128xf32>
    %111 = tpu.matmul %9, %105, %cst_23 {dimension_numbers = #tpu.dot_dimension_numbers<[1], [0], [0], [1], [0, 0, 1, 1], [], []>, precision = #tpu.contract_precision<fp32>} : vector<16x16xf32>, vector<16x128xf32>, vector<16x128xf32> -> vector<16x128xf32>
    %112 = vector.extract_strided_slice %110 {offsets = [0, 0], sizes = [16, 128], strides = [1, 1]} : vector<64x128xf32> to vector<16x128xf32>
    %113 = vector.extract_strided_slice %5 {offsets = [0, 0], sizes = [1, 128], strides = [1, 1]} : vector<64x128xf32> to vector<1x128xf32>
    %114 = vector.broadcast %113 : vector<1x128xf32> to vector<16x128xf32>
    %115 = arith.mulf %112, %114 : vector<16x128xf32>
    %116 = vector.extract_strided_slice %110 {offsets = [16, 0], sizes = [16, 128], strides = [1, 1]} : vector<64x128xf32> to vector<16x128xf32>
    %117 = vector.extract_strided_slice %5 {offsets = [16, 0], sizes = [1, 128], strides = [1, 1]} : vector<64x128xf32> to vector<1x128xf32>
    %118 = vector.broadcast %117 : vector<1x128xf32> to vector<16x128xf32>
    %119 = arith.mulf %116, %118 : vector<16x128xf32>
    %120 = arith.addf %115, %119 : vector<16x128xf32>
    %121 = vector.extract_strided_slice %110 {offsets = [32, 0], sizes = [16, 128], strides = [1, 1]} : vector<64x128xf32> to vector<16x128xf32>
    %122 = vector.extract_strided_slice %5 {offsets = [32, 0], sizes = [1, 128], strides = [1, 1]} : vector<64x128xf32> to vector<1x128xf32>
    %123 = vector.broadcast %122 : vector<1x128xf32> to vector<16x128xf32>
    %124 = arith.mulf %121, %123 : vector<16x128xf32>
    %125 = arith.addf %120, %124 : vector<16x128xf32>
    %126 = vector.extract_strided_slice %110 {offsets = [48, 0], sizes = [16, 128], strides = [1, 1]} : vector<64x128xf32> to vector<16x128xf32>
    %127 = vector.extract_strided_slice %5 {offsets = [48, 0], sizes = [1, 128], strides = [1, 1]} : vector<64x128xf32> to vector<1x128xf32>
    %128 = vector.broadcast %127 : vector<1x128xf32> to vector<16x128xf32>
    %129 = arith.mulf %126, %128 : vector<16x128xf32>
    %130 = arith.addf %125, %129 : vector<16x128xf32>
    %131 = arith.subf %75, %130 : vector<16x128xf32>
    %132 = arith.subf %131, %111 : vector<16x128xf32>
    %133 = arith.mulf %132, %132 : vector<16x128xf32>
    %134 = tpu.concatenate %132, %133 in 0 : vector<16x128xf32>, vector<16x128xf32> -> vector<32x128xf32>
    %cst_24 = arith.constant dense<0.000000e+00> : vector<32x128xf32>
    %135 = tpu.matmul %134, %4, %cst_24 {dimension_numbers = #tpu.dot_dimension_numbers<[1], [0], [0], [1], [0, 0, 1, 1], [], []>, precision = #tpu.contract_precision<fp32>} : vector<32x128xf32>, vector<128x128xf32>, vector<32x128xf32> -> vector<32x128xf32>
    %136 = vector.extract_strided_slice %135 {offsets = [0, 0], sizes = [16, 128], strides = [1, 1]} : vector<32x128xf32> to vector<16x128xf32>
    %137 = arith.subf %132, %136 : vector<16x128xf32>
    %138 = vector.extract_strided_slice %135 {offsets = [16, 0], sizes = [16, 128], strides = [1, 1]} : vector<32x128xf32> to vector<16x128xf32>
    %139 = arith.mulf %136, %136 : vector<16x128xf32>
    %140 = arith.subf %138, %139 : vector<16x128xf32>
    %cst_25 = arith.constant 9.99999997E-7 : f32
    %141 = vector.broadcast %cst_25 : f32 to vector<16x128xf32>
    %142 = arith.addf %140, %141 : vector<16x128xf32>
    %143 = math.rsqrt %142 : vector<16x128xf32>
    %144 = arith.mulf %137, %143 : vector<16x128xf32>
    %145 = vector.broadcast %14 : vector<1x128xf32> to vector<16x128xf32>
    %146 = arith.mulf %145, %144 : vector<16x128xf32>
    %147 = vector.broadcast %15 : vector<1x128xf32> to vector<16x128xf32>
    %148 = arith.addf %146, %147 : vector<16x128xf32>
    %149 = arith.addf %51, %148 : vector<16x128xf32>
    %cst_26 = arith.constant dense<0.000000e+00> : vector<16xf32>
    %150 = vector.multi_reduction <add>, %149, %cst_26 [1] : vector<16x128xf32> to vector<16xf32>
    %151 = vector.shape_cast %150 : vector<16xf32> to vector<16x1xf32>
    %cst_27 = arith.constant 3.125000e-02 : f32
    %152 = vector.broadcast %cst_27 : f32 to vector<16x1xf32>
    %153 = arith.mulf %151, %152 : vector<16x1xf32>
    %154 = arith.mulf %149, %149 : vector<16x128xf32>
    %cst_28 = arith.constant dense<0.000000e+00> : vector<16xf32>
    %155 = vector.multi_reduction <add>, %154, %cst_28 [1] : vector<16x128xf32> to vector<16xf32>
    %156 = vector.shape_cast %155 : vector<16xf32> to vector<16x1xf32>
    %cst_29 = arith.constant 3.125000e-02 : f32
    %157 = vector.broadcast %cst_29 : f32 to vector<16x1xf32>
    %158 = arith.mulf %156, %157 : vector<16x1xf32>
    %159 = arith.mulf %153, %153 : vector<16x1xf32>
    %160 = arith.subf %158, %159 : vector<16x1xf32>
    %161 = vector.broadcast %153 : vector<16x1xf32> to vector<16x128xf32>
    %162 = arith.subf %149, %161 : vector<16x128xf32>
    %cst_30 = arith.constant 9.99999997E-7 : f32
    %163 = vector.broadcast %cst_30 : f32 to vector<16x1xf32>
    %164 = arith.addf %160, %163 : vector<16x1xf32>
    %165 = math.rsqrt %164 : vector<16x1xf32>
    %166 = vector.broadcast %165 : vector<16x1xf32> to vector<16x128xf32>
    %167 = arith.mulf %162, %166 : vector<16x128xf32>
    %168 = vector.broadcast %16 : vector<1x128xf32> to vector<16x128xf32>
    %169 = arith.mulf %167, %168 : vector<16x128xf32>
    %170 = vector.broadcast %17 : vector<1x128xf32> to vector<16x128xf32>
    %171 = arith.addf %169, %170 : vector<16x128xf32>
    %172 = arith.truncf %171 : vector<16x128xf32> to vector<16x128xbf16>
    %c0_31 = arith.constant 0 : index
    %c0_32 = arith.constant 0 : index
    %173 = vector.load %arg4[%c0_31, %c0_32] : memref<128x128xbf16, #tpu.memory_space<vmem>>, vector<128x128xbf16>
    %cst_33 = arith.constant dense<0.000000e+00> : vector<16x128xf32>
    %174 = tpu.matmul %172, %173, %cst_33 {dimension_numbers = #tpu.dot_dimension_numbers<[1], [0], [0], [1], [0, 0, 1, 1], [], []>} : vector<16x128xbf16>, vector<128x128xbf16>, vector<16x128xf32> -> vector<16x128xf32>
    %175 = arith.addf %0, %174 : vector<16x128xf32>
    %cst_34 = arith.constant dense<0.000000e+00> : vector<16xf32>
    %176 = vector.multi_reduction <add>, %175, %cst_34 [1] : vector<16x128xf32> to vector<16xf32>
    %177 = vector.shape_cast %176 : vector<16xf32> to vector<16x1xf32>
    %cst_35 = arith.constant 3.125000e-02 : f32
    %178 = vector.broadcast %cst_35 : f32 to vector<16x1xf32>
    %179 = arith.mulf %177, %178 : vector<16x1xf32>
    %180 = arith.mulf %175, %175 : vector<16x128xf32>
    %cst_36 = arith.constant dense<0.000000e+00> : vector<16xf32>
    %181 = vector.multi_reduction <add>, %180, %cst_36 [1] : vector<16x128xf32> to vector<16xf32>
    %182 = vector.shape_cast %181 : vector<16xf32> to vector<16x1xf32>
    %cst_37 = arith.constant 3.125000e-02 : f32
    %183 = vector.broadcast %cst_37 : f32 to vector<16x1xf32>
    %184 = arith.mulf %182, %183 : vector<16x1xf32>
    %185 = arith.mulf %179, %179 : vector<16x1xf32>
    %186 = arith.subf %184, %185 : vector<16x1xf32>
    %187 = vector.broadcast %179 : vector<16x1xf32> to vector<16x128xf32>
    %188 = arith.subf %175, %187 : vector<16x128xf32>
    %cst_38 = arith.constant 9.99999974E-6 : f32
    %189 = vector.broadcast %cst_38 : f32 to vector<16x1xf32>
    %190 = arith.addf %186, %189 : vector<16x1xf32>
    %191 = math.rsqrt %190 : vector<16x1xf32>
    %192 = vector.broadcast %191 : vector<16x1xf32> to vector<16x128xf32>
    %193 = arith.mulf %188, %192 : vector<16x128xf32>
    %194 = vector.broadcast %18 : vector<1x128xf32> to vector<16x128xf32>
    %195 = arith.mulf %193, %194 : vector<16x128xf32>
    %196 = vector.broadcast %19 : vector<1x128xf32> to vector<16x128xf32>
    %197 = arith.addf %195, %196 : vector<16x128xf32>
    %198 = arith.truncf %197 : vector<16x128xf32> to vector<16x128xbf16>
    %c0_39 = arith.constant 0 : index
    %c0_40 = arith.constant 0 : index
    %199 = vector.load %arg5[%c0_39, %c0_40] : memref<128x128xbf16, #tpu.memory_space<vmem>>, vector<128x128xbf16>
    %cst_41 = arith.constant dense<0.000000e+00> : vector<16x128xf32>
    %200 = tpu.matmul %198, %199, %cst_41 {dimension_numbers = #tpu.dot_dimension_numbers<[1], [0], [0], [1], [0, 0, 1, 1], [], []>} : vector<16x128xbf16>, vector<128x128xbf16>, vector<16x128xf32> -> vector<16x128xf32>
    %201 = vector.broadcast %21 : vector<1x128xf32> to vector<16x128xf32>
    %202 = arith.addf %200, %201 : vector<16x128xf32>
    %203 = arith.mulf %202, %202 : vector<16x128xf32>
    %204 = arith.mulf %202, %203 : vector<16x128xf32>
    %cst_42 = arith.constant 4.471500e-02 : f32
    %205 = vector.broadcast %cst_42 : f32 to vector<16x128xf32>
    %206 = arith.mulf %205, %204 : vector<16x128xf32>
    %207 = arith.addf %202, %206 : vector<16x128xf32>
    %cst_43 = arith.constant 0.797884583 : f32
    %208 = vector.broadcast %cst_43 : f32 to vector<16x128xf32>
    %209 = arith.mulf %208, %207 : vector<16x128xf32>
    %210 = math.tanh %209 : vector<16x128xf32>
    %cst_44 = arith.constant 1.000000e+00 : f32
    %211 = vector.broadcast %cst_44 : f32 to vector<16x128xf32>
    %212 = arith.addf %211, %210 : vector<16x128xf32>
    %cst_45 = arith.constant 5.000000e-01 : f32
    %213 = vector.broadcast %cst_45 : f32 to vector<16x128xf32>
    %214 = arith.mulf %213, %212 : vector<16x128xf32>
    %215 = arith.mulf %202, %214 : vector<16x128xf32>
    %216 = arith.truncf %215 : vector<16x128xf32> to vector<16x128xbf16>
    %c0_46 = arith.constant 0 : index
    %c0_47 = arith.constant 0 : index
    %217 = vector.load %arg6[%c0_46, %c0_47] : memref<128x128xbf16, #tpu.memory_space<vmem>>, vector<128x128xbf16>
    %cst_48 = arith.constant dense<0.000000e+00> : vector<16x128xf32>
    %218 = tpu.matmul %216, %217, %cst_48 {dimension_numbers = #tpu.dot_dimension_numbers<[1], [0], [0], [1], [0, 0, 1, 1], [], []>} : vector<16x128xbf16>, vector<128x128xbf16>, vector<16x128xf32> -> vector<16x128xf32>
    %219 = vector.broadcast %20 : vector<1x128xf32> to vector<16x128xf32>
    %220 = arith.addf %218, %219 : vector<16x128xf32>
    %221 = arith.addf %175, %220 : vector<16x128xf32>
    %c0_49 = arith.constant 0 : index
    %c0_50 = arith.constant 0 : index
    %222 = vector.load %arg10[%c0_49, %c0_50] : memref<16x128xf32, #tpu.memory_space<vmem>>, vector<16x128xf32>
    tpu.vector_store %arg10[%c0_49, %c0_50], %221 {strides = array<i32>} : memref<16x128xf32, #tpu.memory_space<vmem>>, vector<16x128xf32>,
    return
  }
  func.func @transform_0(%arg0: i32) -> (i32, i32) {
    %c0_i32 = arith.constant 0 : i32
    %c0_i32_0 = arith.constant 0 : i32
    return %arg0, %c0_i32 : i32, i32
  }
  func.func @transform_1(%arg0: i32) -> (i32, i32) {
    %c0_i32 = arith.constant 0 : i32
    %c0_i32_0 = arith.constant 0 : i32
    %c0_i32_1 = arith.constant 0 : i32
    return %c0_i32, %c0_i32_0 : i32, i32
  }
  func.func @transform_2(%arg0: i32) -> (i32, i32) {
    %c0_i32 = arith.constant 0 : i32
    %c0_i32_0 = arith.constant 0 : i32
    %c0_i32_1 = arith.constant 0 : i32
    return %c0_i32, %c0_i32_0 : i32, i32
  }
  func.func @transform_3(%arg0: i32) -> (i32, i32) {
    %c0_i32 = arith.constant 0 : i32
    %c0_i32_0 = arith.constant 0 : i32
    %c0_i32_1 = arith.constant 0 : i32
    return %c0_i32, %c0_i32_0 : i32, i32
  }
  func.func @transform_4(%arg0: i32) -> (i32, i32) {
    %c0_i32 = arith.constant 0 : i32
    %c0_i32_0 = arith.constant 0 : i32
    %c0_i32_1 = arith.constant 0 : i32
    return %c0_i32, %c0_i32_0 : i32, i32
  }
  func.func @transform_5(%arg0: i32) -> (i32, i32) {
    %c0_i32 = arith.constant 0 : i32
    %c0_i32_0 = arith.constant 0 : i32
    %c0_i32_1 = arith.constant 0 : i32
    return %c0_i32, %c0_i32_0 : i32, i32
  }
  func.func @transform_6(%arg0: i32) -> (i32, i32) {
    %c0_i32 = arith.constant 0 : i32
    %c0_i32_0 = arith.constant 0 : i32
    %c0_i32_1 = arith.constant 0 : i32
    return %c0_i32, %c0_i32_0 : i32, i32
  }
  func.func @transform_7(%arg0: i32) -> (i32, i32) {
    %c0_i32 = arith.constant 0 : i32
    %c0_i32_0 = arith.constant 0 : i32
    %c0_i32_1 = arith.constant 0 : i32
    return %c0_i32, %c0_i32_0 : i32, i32
  }
  func.func @transform_8(%arg0: i32) -> (i32, i32) {
    %c0_i32 = arith.constant 0 : i32
    %c0_i32_0 = arith.constant 0 : i32
    %c0_i32_1 = arith.constant 0 : i32
    return %c0_i32, %c0_i32_0 : i32, i32
  }
  func.func @transform_9(%arg0: i32) -> (i32, i32) {
    %c0_i32 = arith.constant 0 : i32
    %c0_i32_0 = arith.constant 0 : i32
    return %arg0, %c0_i32 : i32, i32
  }
}

</mosaic_0001>

<bundles_post_ra>
// kernel: tpu_custom_call.1
= control target key start
LH: loop header
LB: loop body
LE: loop exit
PB: predicated region body
PF: predicated region fallthrough
CT: control target
= control target key end

     0   :  { %14 = vsyncpa [#allocation3], 0  ;;  %s9915_s0 = inlined_call_operand.vmem [shape: f32[16,128], index: 0, kind: input, shape index: {}]   ;;  %s9916_s1 = inlined_call_operand.hbm [shape: bf16[128,768], index: 1, kind: input, shape index: {}]   ;;  %s9917_s2 = inlined_call_operand.vmem [shape: bf16[128,128], index: 2, kind: input, shape index: {}]   ;;  %s9918_s3 = inlined_call_operand.hbm [shape: bf16[128,128], index: 3, kind: input, shape index: {}]   ;;  %s9919_s4 = inlined_call_operand.hbm [shape: bf16[128,128], index: 4, kind: input, shape index: {}]   ;;  %s9920_s5 = inlined_call_operand.hbm [shape: bf16[128,128], index: 5, kind: input, shape index: {}]   ;;  %s9921_s6 = inlined_call_operand.vmem [shape: f32[12,128], index: 6, kind: input, shape index: {}]   ;;  %s9922_s7 = inlined_call_operand.hbm [shape: f32[224,128], index: 7, kind: input, shape index: {}]   ;;  %s9923_s8 = inlined_call_operand.vmem [shape: f32[80,16], index: 8, kind: input, shape index: {}]   ;;  %s9924_s9 = inlined_call_operand.hbm [shape: f32[16,128], index: 9, kind: output, shape index: {}]  }
   0x1   :  { %15 = vsyncpa [#allocation6], 0 }
   0x2   :  { %16 = vsyncpa [#allocation9], 0 }
   0x3   :  { %17 = vsyncpa [#allocation4], 0  ;;  %s8390_s30 = smov [#allocation5]   ;;  %s8250_s13 = scalar_lea.hbm %s9918_s3, 1024 }
   0x4   :  { %s39_s10 = sshll.u32 %s8390_s30, 4  ;;  %p8251_p0 = scmp.ne.s32.totalorder %s9918_s3, %s8250_s13  ;;  %s40_s10 = int_to_ptr.vmem [resolvable:$true] %s39_s10 }
   0x5   :  { %p8254_p1 = scmp.lt.u32.totalorder %s8250_s13, %s9918_s3 }
   0x7   :  { %p8256_p2 = pnand %p8254_p1, %p8251_p0 }
   0x9   :  { %8259 = shalt.err (!%p8256_p2)
}
   0xa   :  { %s8260_s18 = scalar_lea.vmem %s40_s10, 1024  ;;  %p8265_p4 = scmp.lt.s32.totalorder %s40_s10, %s40_s10 }
   0xb   :  { %p8261_p3 = scmp.ne.s32.totalorder %s40_s10, %s8260_s18  ;;  %p8266_p5 = scmp.lt.s32.totalorder %s8260_s18, %s8260_s18 }
   0xd   :  { %p8267_p6 = por %p8266_p5, %p8265_p4 }
   0xf   :  { %p8268_p7 = pnand %p8267_p6, %p8261_p3 }
  0x11   :  { %8271 = shalt.err (!%p8268_p7)
}
  0x12   :  { %s8391_s19 = smov 64   ;;  %s8392_s20 = smov 4  }
  0x13   :  { %45 = dma.hbm_to_vmem [thread:$0]  %s9918_s3, 1024, %s40_s10, [#allocation6], %s8391_s19, %s8391_s19, %s8392_s20  }
  0x14   :  { %s8393_s23 = smov [#allocation8]   ;;  %s8394_s25 = smov [#allocation2]  }
  0x15   :  { %s63_s24 = sshll.u32 %s8393_s23, 4  ;;  %s25_s26 = sshll.u32 %s8394_s25, 4  ;;  %s64_s24 = int_to_ptr.vmem [resolvable:$true] %s63_s24  ;;  %s26_s26 = int_to_ptr.vmem [resolvable:$true] %s25_s26 }
  0x16   :  { %s8272_s29 = scalar_lea.hbm %s9920_s5, 1024 }
  0x17   :  { %p8273_p8 = scmp.ne.s32.totalorder %s9920_s5, %s8272_s29  ;;  %p8276_p9 = scmp.lt.u32.totalorder %s8272_s29, %s9920_s5 }
  0x19   :  { %p8278_p10 = pnand %p8276_p9, %p8273_p8 }
  0x1b   :  { %8281 = shalt.err (!%p8278_p10)
}
  0x1c   :  { %s8282_s3 = scalar_lea.vmem %s64_s24, 1024  ;;  %p8287_p12 = scmp.lt.s32.totalorder %s64_s24, %s64_s24 }
  0x1d   :  { %p8283_p11 = scmp.ne.s32.totalorder %s64_s24, %s8282_s3  ;;  %p8288_p13 = scmp.lt.s32.totalorder %s8282_s3, %s8282_s3 }
  0x1f   :  { %p8289_p0 = por %p8288_p13, %p8287_p12 }
  0x21   :  { %p8290_p1 = pnand %p8289_p0, %p8283_p11 }
  0x23   :  { %8293 = shalt.err (!%p8290_p1)
}
  0x24   :  { %69 = dma.hbm_to_vmem [thread:$0]  %s9920_s5, 1024, %s64_s24, [#allocation9], %s8391_s19, %s8391_s19, %s8392_s20  }
  0x25   :  { %s8294_s17 = scalar_lea.hbm %s9916_s1, 6144 }
  0x26   :  { %p8295_p2 = scmp.ne.s32.totalorder %s9916_s1, %s8294_s17  ;;  %p8298_p3 = scmp.lt.u32.totalorder %s8294_s17, %s9916_s1 }
  0x28   :  { %p8300_p4 = pnand %p8298_p3, %p8295_p2 }
  0x2a   :  { %8303 = shalt.err (!%p8300_p4)
}
  0x2b   :  { %s8304_s25 = scalar_lea.vmem %s26_s26, 6144  ;;  %p8309_p6 = scmp.lt.s32.totalorder %s26_s26, %s26_s26 }
  0x2c   :  { %p8305_p5 = scmp.ne.s32.totalorder %s26_s26, %s8304_s25  ;;  %p8310_p7 = scmp.lt.s32.totalorder %s8304_s25, %s8304_s25 }
  0x2e   :  { %p8311_p8 = por %p8310_p7, %p8309_p6 }
  0x30   :  { %p8312_p9 = pnand %p8311_p8, %p8305_p5 }
  0x32   :  { %8315 = shalt.err (!%p8312_p9)
}
  0x33   :  { %s8395_s5 = smov 384   ;;  %s8396_s24 = smov 24  }
  0x34   :  { %31 = dma.hbm_to_vmem [thread:$0]  %s9916_s1, 6144, %s26_s26, [#allocation3], %s8395_s5, %s8395_s5, %s8396_s24  }
  0x35   :  { %s8397_s29 = smov [#allocation7]   ;;  %s8398_s11 = smov [#allocation10]  }
  0x36   :  { %s51_s30 = sshll.u32 %s8397_s29, 4  ;;  %s77_s12 = sshll.u32 %s8398_s11, 4  ;;  %s52_s30 = int_to_ptr.vmem [resolvable:$true] %s51_s30  ;;  %s78_s12 = int_to_ptr.vmem [resolvable:$true] %s77_s12 }
  0x37   :  { %s8316_s10 = scalar_lea.hbm %s9919_s4, 1024 }
  0x38   :  { %p8317_p10 = scmp.ne.s32.totalorder %s9919_s4, %s8316_s10  ;;  %p8320_p11 = scmp.lt.u32.totalorder %s8316_s10, %s9919_s4 }
  0x3a   :  { %p8322_p12 = pnand %p8320_p11, %p8317_p10 }
  0x3c   :  { %8325 = shalt.err (!%p8322_p12)
}
  0x3d   :  { %s8326_s1 = scalar_lea.vmem %s52_s30, 1024  ;;  %p8331_p0 = scmp.lt.s32.totalorder %s52_s30, %s52_s30 }
  0x3e   :  { %p8327_p13 = scmp.ne.s32.totalorder %s52_s30, %s8326_s1  ;;  %p8332_p1 = scmp.lt.s32.totalorder %s8326_s1, %s8326_s1 }
  0x40   :  { %p8333_p2 = por %p8332_p1, %p8331_p0 }
  0x42   :  { %p8334_p3 = pnand %p8333_p2, %p8327_p13 }
  0x44   :  { %8337 = shalt.err (!%p8334_p3)
}
  0x45   :  { %57 = dma.hbm_to_vmem [thread:$0]  %s9919_s4, 1024, %s52_s30, [#allocation6], %s8391_s19, %s8391_s19, %s8392_s20  }
  0x46   :  { %s8338_s23 = scalar_lea.hbm %s9922_s7, 3584 }
  0x47   :  { %p8339_p4 = scmp.ne.s32.totalorder %s9922_s7, %s8338_s23  ;;  %p8342_p5 = scmp.lt.u32.totalorder %s8338_s23, %s9922_s7 }
  0x49   :  { %p8344_p6 = pnand %p8342_p5, %p8339_p4 }
  0x4b   :  { %8347 = shalt.err (!%p8344_p6)
}
  0x4c   :  { %s8348_s28 = scalar_lea.vmem %s78_s12, 3584  ;;  %p8353_p8 = scmp.lt.s32.totalorder %s78_s12, %s78_s12 }
  0x4d   :  { %p8349_p7 = scmp.ne.s32.totalorder %s78_s12, %s8348_s28  ;;  %p8354_p9 = scmp.lt.s32.totalorder %s8348_s28, %s8348_s28 }
  0x4f   :  { %p8355_p10 = por %p8354_p9, %p8353_p8 }
  0x51   :  { %p8356_p11 = pnand %p8355_p10, %p8349_p7 }
  0x53   :  { %8359 = shalt.err (!%p8356_p11)
}
  0x54   :  { %s8399_s4 = smov 128   ;;  %s8400_s19 = smov 8  }
  0x55   :  { %83 = dma.hbm_to_vmem [thread:$0]  %s9922_s7, 3584, %s78_s12, [#allocation9], %s8399_s4, %s8399_s4, %s8400_s19  }
  0x56   :  { %8382 = dma.done.wait [#allocation3], 6144  }
  0x57   :  { %8383 = vsyncadd [#allocation3], 4294961152 }
  0x58   :  { %8384 = dma.done.wait [#allocation6], 2048  }
  0x59   :  { %8385 = vsyncadd [#allocation6], 4294965248 }
  0x5a   :  { %8386 = dma.done.wait [#allocation9], 4608  }
  0x5b   :  { %8387 = vsyncadd [#allocation9], 4294962688  ;;  %v8530_v0 = vld [vmem:[%s9915_s0] sm:$0xff]  ;;  %v8535_v1 = vld [vmem:[%s9915_s0 + $0x8] sm:$0xff]  ;;  %v8401_v17 = vmov 0   ;;  %v170_v34 = vlaneseq  ;;  %vm3113_vm0 = vcmask 130048  }
  0x5c   :  { %144 = vadd.xlane.f32.xlu0 %v8530_v0  ;;  %v150_v2 = vmul.f32 %v8530_v0, %v8530_v0  ;;  %v8109_v3 = vld [vmem:[#allocation2 + $0x4] ss:$24 sps:$4 sm:$0xff]   ;;  %v8111_v4 = vld [vmem:[#allocation2] ss:$24 sps:$4 sm:$0xff]   ;;  %v151_v5 = vmul.f32 %v8535_v1, %v8535_v1  ;;  %v8112_v6 = vld [vmem:[#allocation2 + $0x34] ss:$24 sps:$4 sm:$0xff]   ;;  %503 = vmatprep.mubr.bf16.mxu0 %v8401_v17 }
  0x5d   :  { %471 = vmatprep.subr.bf16.mxu0 %v8109_v3  ;;  %v8114_v7 = vld [vmem:[#allocation2 + $0x30] ss:$24 sps:$4 sm:$0xff]   ;;  %v8115_v8 = vld [vmem:[#allocation2 + $0x64] ss:$24 sps:$4 sm:$0xff]   ;;  %v8117_v9 = vld [vmem:[#allocation2 + $0x60] ss:$24 sps:$4 sm:$0xff]  }
  0x5e   :  { %152 = vadd.xlane.f32.xlu1 %v150_v2  ;;  %472 = vmatpush1.bf16.msra.mxu0 %v8111_v4  ;;  %v8118_v10 = vld [vmem:[#allocation2 + $0x94] ss:$24 sps:$4 sm:$0xff]   ;;  %v8120_v11 = vld [vmem:[#allocation2 + $0x90] ss:$24 sps:$4 sm:$0xff]   ;;  %v8121_v12 = vld [vmem:[#allocation2 + $0xc4] ss:$24 sps:$4 sm:$0xff]  }
  0x5f   :  { %473 = vmatprep.subr.bf16.mxu0 %v8112_v6  ;;  %v8123_v13 = vld [vmem:[#allocation2 + $0xc0] ss:$24 sps:$4 sm:$0xff]   ;;  %v8124_v14 = vld [vmem:[#allocation2 + $0xf4] ss:$24 sps:$4 sm:$0xff]   ;;  %v8126_v15 = vld [vmem:[#allocation2 + $0xf0] ss:$24 sps:$4 sm:$0xff]  }
  0x60   :  { %146 = vadd.xlane.f32.xlu0 %v8535_v1  ;;  %v8127_v16 = vld [vmem:[#allocation2 + $0x124] ss:$24 sps:$4 sm:$0xff]   ;;  %v8129_v18 = vld [vmem:[#allocation2 + $0x120] ss:$24 sps:$4 sm:$0xff]   ;;  %v8130_v19 = vld [vmem:[#allocation2 + $0x154] ss:$24 sps:$4 sm:$0xff]  }
  0x61   :  { %v8132_v20 = vld [vmem:[#allocation2 + $0x150] ss:$24 sps:$4 sm:$0xff]   ;;  %v8135_v21 = vld [vmem:[#allocation2 + $0xc] ss:$24 sps:$4 sm:$0xff]   ;;  %v8544_v37 = vshrl.u32 %v170_v34, 7  ;;  %v8601_v34 = vld [vmem:[#allocation10 + $0x18] sm:$0xff] }
  0x62   :  { %154 = vadd.xlane.f32.xlu1 %v151_v5  ;;  %474 = vmatpush1.bf16.msra.mxu0 %v8114_v7  ;;  %v8552_v39 = vld [vmem:[%s9921_s6] sm:$0xff]  ;;  %v8138_v55 = vld [vmem:[#allocation2 + $0x3c] ss:$24 sps:$4 sm:$0xff]   ;;  %v8136_v56 = vld [vmem:[#allocation2 + $0x38] ss:$24 sps:$4 sm:$0xff]   ;;  %vm8403_vm1 = vmmov 0  }
  0x63   :  { %475 = vmatprep.subr.bf16.mxu0 %v8115_v8  ;;  %9995 = vst [vmem:[#allocation16_spill] sm:$0xff] %v8544_v37  ;;  %v8547_v38 = vsub.s32 0, %v8544_v37  ;;  %v9925_v44 = vsub.s32 1, %v8544_v37  ;;  %v8133_v53 = vld [vmem:[#allocation2 + $0x8] ss:$24 sps:$4 sm:$0xff]  }
  0x64   :  { %v8141_v57 = vld [vmem:[#allocation2 + $0x6c] ss:$24 sps:$4 sm:$0xff]   ;;  %v8139_v58 = vld [vmem:[#allocation2 + $0x68] ss:$24 sps:$4 sm:$0xff]   ;;  %v8144_v59 = vld [vmem:[#allocation2 + $0x9c] ss:$24 sps:$4 sm:$0xff]  }
  0x65   :  { %9996 = vst [vmem:[#allocation17_spill] sm:$0xff] %v8547_v38  ;;  %v173_v43 = vrot.slane %v8552_v39, %v8547_v38  ;;  %v179_v49 = vrot.slane %v8552_v39, %v9925_v44  ;;  %v8142_v60 = vld [vmem:[#allocation2 + $0x98] ss:$24 sps:$4 sm:$0xff]   ;;  %v8147_v61 = vld [vmem:[#allocation2 + $0xcc] ss:$24 sps:$4 sm:$0xff]  }
  0x66   :  { %476 = vmatpush1.bf16.msra.mxu0 %v8117_v9  ;;  %v8145_v62 = vld [vmem:[#allocation2 + $0xc8] ss:$24 sps:$4 sm:$0xff]   ;;  %v8150_v63 = vld [vmem:[#allocation2 + $0xfc] ss:$24 sps:$4 sm:$0xff]   ;;  %v8154_v4 = vld [vmem:[#allocation2 + $0x158] ss:$24 sps:$4 sm:$0xff]  }
  0x67   :  { %477 = vmatprep.subr.bf16.mxu0 %v8118_v10  ;;  %v8151_v2 = vld [vmem:[#allocation2 + $0x128] ss:$24 sps:$4 sm:$0xff]   ;;  %v8156_v3 = vld [vmem:[#allocation2 + $0x15c] ss:$24 sps:$4 sm:$0xff]  }
  0x68   :  { %v8159_v5 = vld [vmem:[#allocation2 + $0x14] ss:$24 sps:$4 sm:$0xff]   ;;  %v8157_v6 = vld [vmem:[#allocation2 + $0x10] ss:$24 sps:$4 sm:$0xff]   ;;  %v8162_v7 = vld [vmem:[#allocation2 + $0x44] ss:$24 sps:$4 sm:$0xff]  }
  0x69   :  { %v8160_v8 = vld [vmem:[#allocation2 + $0x40] ss:$24 sps:$4 sm:$0xff]   ;;  %v8165_v9 = vld [vmem:[#allocation2 + $0x74] ss:$24 sps:$4 sm:$0xff]   ;;  %v8163_v10 = vld [vmem:[#allocation2 + $0x70] ss:$24 sps:$4 sm:$0xff]  }
  0x6a   :  { %478 = vmatpush1.bf16.msra.mxu0 %v8120_v11  ;;  %v8168_v11 = vld [vmem:[#allocation2 + $0xa4] ss:$24 sps:$4 sm:$0xff]  }
  0x6b   :  { %479 = vmatprep.subr.bf16.mxu0 %v8121_v12  ;;  %v8166_v12 = vld [vmem:[#allocation2 + $0xa0] ss:$24 sps:$4 sm:$0xff]  }
  0x6e   :  { %480 = vmatpush1.bf16.msra.mxu0 %v8123_v13  ;;  %v8171_v13 = vld [vmem:[#allocation2 + $0xd4] ss:$24 sps:$4 sm:$0xff]  }
  0x6f   :  { %481 = vmatprep.subr.bf16.mxu0 %v8124_v14  ;;  %v8169_v14 = vld [vmem:[#allocation2 + $0xd0] ss:$24 sps:$4 sm:$0xff]  }
  0x72   :  { %482 = vmatpush1.bf16.msra.mxu0 %v8126_v15  ;;  %v8174_v15 = vld [vmem:[#allocation2 + $0x104] ss:$24 sps:$4 sm:$0xff]  }
  0x73   :  { %483 = vmatprep.subr.bf16.mxu0 %v8127_v16  ;;  %v8172_v16 = vld [vmem:[#allocation2 + $0x100] ss:$24 sps:$4 sm:$0xff]  }
  0x76   :  { %484 = vmatpush1.bf16.msra.mxu0 %v8129_v18  ;;  %v8177_v18 = vld [vmem:[#allocation2 + $0x134] ss:$24 sps:$4 sm:$0xff]  }
  0x77   :  { %485 = vmatprep.subr.bf16.mxu0 %v8130_v19  ;;  %v8180_v19 = vld [vmem:[#allocation2 + $0x164] ss:$24 sps:$4 sm:$0xff]  }
  0x7a   :  { %486 = vmatpush1.bf16.msra.mxu0 %v8132_v20  ;;  %v8178_v20 = vld [vmem:[#allocation2 + $0x160] ss:$24 sps:$4 sm:$0xff]  }
  0x7b   :  { %514 = vmatprep.subr.bf16.mxu0 %v8135_v21  ;;  %v8181_v21 = vld [vmem:[%s9917_s2] sm:$0xff]  }
  0x7c   :  { %6298 = vmatprep.subr.bf16.mxu1 %v8181_v21 }
  0x7d   :  { %6299 = vmatpush3.bf16.msra.mxu1 %v8181_v21 }
  0xe9   :  { %v145_v22 = vpop.xlane.xlu0 %144 }
  0xea   :  { %v148_v23 = vmul.f32 0.03125, %v145_v22  ;;  %v8182_v22 = vld [vmem:[%s9917_s2 + $0x8] sm:$0xff]  }
  0xeb   :  { %v153_v24 = vpop.xlane.xlu1 %152  ;;  %6300 = vmatprep.subr.bf16.mxu1 %v8182_v22 }
  0xec   :  { %v158_v25 = vmul.f32 %v148_v23, %v148_v23  ;;  %v156_v26 = vmul.f32 0.03125, %v153_v24  ;;  %v162_v40 = vsub.f32 %v8530_v0, %v148_v23  ;;  %v8148_v0 = vld [vmem:[#allocation2 + $0xf8] ss:$24 sps:$4 sm:$0xff]   ;;  %6301 = vmatpush3.bf16.msra.mxu1 %v8182_v22 }
  0xed   :  { %v147_v27 = vpop.xlane.xlu0 %146  ;;  %v8183_v23 = vld [vmem:[%s9917_s2 + $0x10] sm:$0xff]   ;;  %v8184_v24 = vld [vmem:[%s9917_s2 + $0x18] sm:$0xff]  }
  0xee   :  { %v160_v28 = vsub.f32 %v156_v26, %v158_v25  ;;  %v149_v29 = vmul.f32 0.03125, %v147_v27  ;;  %6302 = vmatprep.subr.bf16.mxu1 %v8183_v23  ;;  %v8185_v25 = vld [vmem:[%s9917_s2 + $0x20] sm:$0xff]   ;;  %v8186_v26 = vld [vmem:[%s9917_s2 + $0x28] sm:$0xff]   ;;  %v8187_v27 = vld [vmem:[%s9917_s2 + $0x30] sm:$0xff]  }
  0xef   :  { %v155_v30 = vpop.xlane.xlu1 %154 }
  0xf0   :  { %v164_v31 = vadd.f32 1e-05, %v160_v28  ;;  %v159_v32 = vmul.f32 %v149_v29, %v149_v29  ;;  %v157_v33 = vmul.f32 0.03125, %v155_v30  ;;  %v163_v45 = vsub.f32 %v8535_v1, %v149_v29  ;;  %v8153_v1 = vld [vmem:[#allocation2 + $0x12c] ss:$24 sps:$4 sm:$0xff]   ;;  %6303 = vmatpush3.bf16.msra.mxu1 %v8183_v23  ;;  %v8188_v28 = vld [vmem:[%s9917_s2 + $0x38] sm:$0xff]  }
  0xf1   :  { %6304 = vmatprep.subr.bf16.mxu1 %v8184_v24  ;;  %v8593_v29 = vld [vmem:[#allocation10] sm:$0xff]  ;;  %v8595_v30 = vld [vmem:[#allocation10 + $0x8] sm:$0xff] }
  0xf2   :  { %8213 = vrsqrt.f32 %v164_v31  ;;  %v161_v35 = vsub.f32 %v157_v33, %v159_v32  ;;  %v8597_v31 = vld [vmem:[#allocation10 + $0x10] sm:$0xff]  ;;  %v758_v32 = vand.u32 4294901760, %v8593_v29  ;;  %v761_v33 = vand.u32 4294901760, %v8595_v30 }
  0xf4   :  { %v165_v36 = vadd.f32 1e-05, %v161_v35  ;;  %6305 = vmatpush3.bf16.msra.mxu1 %v8184_v24  ;;  %v764_v35 = vand.u32 4294901760, %v8597_v31 }
  0xf5   :  { %6306 = vmatprep.subr.bf16.mxu1 %v8185_v25 }
  0xf6   :  { %8215 = vrsqrt.f32 %v165_v36  ;;  %v8604_v36 = vld [vmem:[#allocation10 + $0x20] sm:$0xff] }
  0xf8   :  { %6307 = vmatpush3.bf16.msra.mxu1 %v8185_v25 }
  0xf9   :  { %6308 = vmatprep.subr.bf16.mxu1 %v8186_v26 }
  0xfc   :  { %v8214_v41 = vpop.eup %8213  ;;  %6309 = vmatpush3.bf16.msra.mxu1 %v8186_v26 }
  0xfd   :  { %v168_v42 = vmul.f32 %v8214_v41, %v162_v40  ;;  %6310 = vmatprep.subr.bf16.mxu1 %v8187_v27  ;;  %v8606_v40 = vld [vmem:[#allocation10 + $0x28] sm:$0xff]  ;;  %v767_v41 = vand.u32 4294901760, %v8601_v34 }
  0xff   :  { %v174_v48 = vmul.f32 %v173_v43, %v168_v42  ;;  %v8613_v42 = vpack.c.bf16 %v761_v33, %v758_v32 }
 0x100   :  { %v8216_v46 = vpop.eup %8215  ;;  %6311 = vmatpush3.bf16.msra.mxu1 %v8187_v27 }
 0x101   :  { %v169_v47 = vmul.f32 %v8216_v46, %v163_v45  ;;  %v180_v51 = vadd.f32 %v179_v49, %v174_v48  ;;  %6312 = vmatprep.subr.bf16.mxu1 %v8188_v28  ;;  %v773_v45 = vand.u32 4294901760, %v8606_v40  ;;  %v8621_v46 = vpack.c.bf16 %v767_v41, %v764_v35  ;;  %v8625_v48 = vld [vmem:[#allocation10 + $0x38] sm:$0xff] }
 0x103   :  { %v175_v50 = vmul.f32 %v173_v43, %v169_v47  ;;  %v770_v43 = vand.u32 4294901760, %v8604_v36  ;;  %v8623_v47 = vld [vmem:[#allocation10 + $0x30] sm:$0xff] }
 0x104   :  { %6313 = vmatpush3.bf16.msra.mxu1 %v8188_v28 }
 0x105   :  { %v181_v52 = vadd.f32 %v179_v49, %v175_v50  ;;  %7489 = vmatprep.subr.bf16.mxu1 %v8613_v42  ;;  %v8635_v49 = vpack.c.bf16 %v773_v45, %v770_v43  ;;  %v776_v50 = vand.u32 4294901760, %v8623_v47 }
 0x107   :  { %v8562_v54 = vpack.c.bf16 %v181_v52, %v180_v51  ;;  %v779_v51 = vand.u32 4294901760, %v8625_v48  ;;  %v8639_v52 = vld [vmem:[#allocation10 + $0x40] sm:$0xff] }
 0x109   :  { %504 = vmatmul.mubr.bf16.vlgmr.msra.gmra.mrb[0].mxu0 %v8562_v54 }
 0x10a   :  { %515 = vmatpush1.bf16.msra.mxu0 %v8133_v53  ;;  %546 = vmatprep.mubr.bf16.mxu0 %v8401_v17  ;;  %v8641_v53 = vld [vmem:[#allocation10 + $0x48] sm:$0xff] }
 0x10b   :  { %516 = vmatprep.subr.bf16.mxu0 %v8138_v55  ;;  %v9938_v55 = vand.u32 4294901760, %v8639_v52 }
 0x10e   :  { %517 = vmatpush1.bf16.msra.mxu0 %v8136_v56  ;;  %v9929_v56 = vand.u32 4294901760, %v8641_v53 }
 0x10f   :  { %518 = vmatprep.subr.bf16.mxu0 %v8141_v57 }
 0x110   :  { %v8659_v57 = vpack.c.bf16 %v9929_v56, %v9938_v55 }
 0x112   :  { %519 = vmatpush1.bf16.msra.mxu0 %v8139_v58  ;;  %v130_v58 = vld [vmem:[#allocation10 + $0xc0] sm:$0xff] }
 0x113   :  { %520 = vmatprep.subr.bf16.mxu0 %v8144_v59  ;;  %v132_v59 = vld [vmem:[#allocation10 + $0xd0] sm:$0xff] }
 0x116   :  { %521 = vmatpush1.bf16.msra.mxu0 %v8142_v60 }
 0x117   :  { %522 = vmatprep.subr.bf16.mxu0 %v8147_v61  ;;  %v131_v61 = vld [vmem:[#allocation10 + $0xc8] sm:$0xff] }
 0x11a   :  { %523 = vmatpush1.bf16.msra.mxu0 %v8145_v62 }
 0x11b   :  { %524 = vmatprep.subr.bf16.mxu0 %v8150_v63 }
 0x11e   :  { %525 = vmatpush1.bf16.msra.mxu0 %v8148_v0  ;;  %v133_v0 = vld [vmem:[#allocation10 + $0xd8] sm:$0xff] }
 0x11f   :  { %526 = vmatprep.subr.bf16.mxu0 %v8153_v1 }
 0x122   :  { %527 = vmatpush1.bf16.msra.mxu0 %v8151_v2 }
 0x123   :  { %528 = vmatprep.subr.bf16.mxu0 %v8156_v3 }
 0x126   :  { %529 = vmatpush1.bf16.msra.mxu0 %v8154_v4 }
 0x127   :  { %557 = vmatprep.subr.bf16.mxu0 %v8159_v5 }
 0x129   :  { %547 = vmatmul.mubr.bf16.vlgmr.msra.gmra.mrb[4].mxu0 %v8562_v54 }
 0x12a   :  { %558 = vmatpush1.bf16.msra.mxu0 %v8157_v6  ;;  %589 = vmatprep.mubr.bf16.mxu0 %v8401_v17  ;;  %v8175_v17 = vld [vmem:[#allocation2 + $0x130] ss:$24 sps:$4 sm:$0xff]  }
 0x12b   :  { %559 = vmatprep.subr.bf16.mxu0 %v8162_v7 }
 0x12e   :  { %560 = vmatpush1.bf16.msra.mxu0 %v8160_v8 }
 0x12f   :  { %561 = vmatprep.subr.bf16.mxu0 %v8165_v9 }
 0x132   :  { %562 = vmatpush1.bf16.msra.mxu0 %v8163_v10 }
 0x133   :  { %563 = vmatprep.subr.bf16.mxu0 %v8168_v11 }
 0x136   :  { %564 = vmatpush1.bf16.msra.mxu0 %v8166_v12 }
 0x137   :  { %565 = vmatprep.subr.bf16.mxu0 %v8171_v13 }
 0x13a   :  { %566 = vmatpush1.bf16.msra.mxu0 %v8169_v14 }
 0x13b   :  { %567 = vmatprep.subr.bf16.mxu0 %v8174_v15 }
 0x13e   :  { %568 = vmatpush1.bf16.msra.mxu0 %v8172_v16 }
 0x13f   :  { %569 = vmatprep.subr.bf16.mxu0 %v8177_v18 }
 0x142   :  { %570 = vmatpush1.bf16.msra.mxu0 %v8175_v17 }
 0x143   :  { %571 = vmatprep.subr.bf16.mxu0 %v8180_v19 }
 0x146   :  { %572 = vmatpush1.bf16.msra.mxu0 %v8178_v20 }
 0x147   :  { %7297 = vmatprep.subr.bf16.mxu0 %v8613_v42 }
 0x149   :  { %590 = vmatmul.mubr.bf16.vlgmr.msra.gmra.mrb[8].mxu0 %v8562_v54  ;;  %v8649_v54 = vpack.c.bf16 %v779_v51, %v776_v50 }
 0x14a   :  { %7299 = vmatpush3.bf16.msra.mxu0 %v8613_v42 }
 0x14b   :  { %7301 = vmatprep.subr.bf16.mxu0 %v8621_v46 }
 0x14e   :  { %7303 = vmatpush3.bf16.msra.mxu0 %v8621_v46 }
 0x14f   :  { %7305 = vmatprep.subr.bf16.mxu0 %v8635_v49 }
 0x152   :  { %7307 = vmatpush3.bf16.msra.mxu0 %v8635_v49 }
 0x153   :  { %7309 = vmatprep.subr.bf16.mxu0 %v8649_v54 }
 0x156   :  { %7311 = vmatpush3.bf16.msra.mxu0 %v8649_v54 }
 0x157   :  { %7313 = vmatprep.subr.bf16.mxu0 %v8659_v57 }
 0x15a   :  { %7315 = vmatpush3.bf16.msra.mxu0 %v8659_v57 }
 0x1dc   :  { %v505_v60 = vpop.f32.mrb[0].mxu0 }
 0x1dd   :  { %v600_v62 = vmul.f32 %v505_v60, %v130_v58  ;;  %v507_v63 = vpop.f32.mrb[1].mxu0 }
 0x1de   :  { %v602_v1 = vmul.f32 %v507_v63, %v132_v59  ;;  %v509_v2 = vpop.f32.mrb[2].mxu0 }
 0x1df   :  { %v601_v3 = vmul.f32 %v509_v2, %v131_v61  ;;  %v511_v4 = vpop.f32.mrb[3].mxu0 }
 0x1e0   :  { %v8664_v5 = vadd.f32 %v602_v1, %v600_v62  ;;  %v603_v6 = vmul.f32 %v511_v4, %v133_v0 }
 0x1e2   :  { %9997 = vst [vmem:[#allocation18_spill] sm:$0xff] %v8664_v5  ;;  %v8666_v7 = vadd.f32 %v603_v6, %v601_v3  ;;  %v116_v6 = vld [vmem:[#allocation10 + $0x50] sm:$0xff] }
 0x1e4   :  { %9998 = vst [vmem:[#allocation19_spill] sm:$0xff] %v8666_v7  ;;  %v631_v22 = vpack.c.bf16 %v8666_v7, %v8664_v5 }
 0x1fc   :  { %v548_v8 = vpop.f32.mrb[4].mxu0 }
 0x1fd   :  { %v606_v9 = vmul.f32 %v548_v8, %v130_v58  ;;  %v550_v10 = vpop.f32.mrb[5].mxu0  ;;  %v117_v8 = vld [vmem:[#allocation10 + $0x58] sm:$0xff] }
 0x1fe   :  { %v608_v11 = vmul.f32 %v550_v10, %v132_v59  ;;  %v552_v12 = vpop.f32.mrb[6].mxu0  ;;  %v791_v10 = vand.u32 4294901760, %v117_v8 }
 0x1ff   :  { %v607_v13 = vmul.f32 %v552_v12, %v131_v61  ;;  %v554_v14 = vpop.f32.mrb[7].mxu0  ;;  %v118_v12 = vld [vmem:[#allocation10 + $0x60] sm:$0xff] }
 0x200   :  { %v8668_v15 = vadd.f32 %v608_v11, %v606_v9  ;;  %v609_v16 = vmul.f32 %v554_v14, %v133_v0  ;;  %v788_v9 = vand.u32 4294901760, %v116_v6  ;;  %v794_v14 = vand.u32 4294901760, %v118_v12 }
 0x201   :  { %v8751_v44 = vsub.f32 %v117_v8, %v791_v10 }
 0x202   :  { %9999 = vst [vmem:[#allocation20_spill] sm:$0xff] %v8668_v15  ;;  %v2346_v18 = vand.u32 4294901760, %v8668_v15  ;;  %v8671_v17 = vadd.f32 %v609_v16, %v607_v13  ;;  %v8709_v11 = vpack.c.bf16 %v791_v10, %v788_v9  ;;  %v119_v13 = vld [vmem:[#allocation10 + $0x68] sm:$0xff] }
 0x203   :  { %v797_v16 = vand.u32 4294901760, %v119_v13 }
 0x204   :  { %10000 = vst [vmem:[#allocation21_spill] sm:$0xff] %v8671_v17  ;;  %v2494_v19 = vsub.f32 %v8668_v15, %v2346_v18  ;;  %v2349_v20 = vand.u32 4294901760, %v8671_v17  ;;  %v630_v21 = vpack.c.bf16 %v8671_v17, %v8668_v15  ;;  %7317 = vmatprep.subr.bf16.mxu0 %v8709_v11 }
 0x205   :  { %7319 = vmatpush3.bf16.msra.mxu0 %v8709_v11  ;;  %v8763_v3 = vsub.f32 %v119_v13, %v797_v16 }
 0x206   :  { %v8679_v23 = vpack.c.bf16 %v2349_v20, %v2346_v18  ;;  %v2501_v24 = vsub.f32 %v8671_v17, %v2349_v20  ;;  %6314 = vmatprep.mubr.bf16.mxu1 %v630_v21  ;;  %v2495_v25 = vand.u32 4294901760, %v2494_v19  ;;  %v8715_v18 = vpack.c.bf16 %v797_v16, %v794_v14  ;;  %v120_v21 = vld [vmem:[#allocation10 + $0x70] sm:$0xff] }
 0x207   :  { %6315 = vmatmul.mubr.bf16.vlgmr.msra.gmra.mrb[0].mxu1 %v631_v22  ;;  %v8725_v20 = vsub.f32 %v8595_v30, %v761_v33  ;;  %v121_v22 = vld [vmem:[#allocation10 + $0x78] sm:$0xff]  ;;  %v9932_v10 = vand.u32 4294901760, %v8763_v3 }
 0x208   :  { %v2496_v26 = vsub.f32 %v2494_v19, %v2495_v25  ;;  %v2502_v27 = vand.u32 4294901760, %v2501_v24  ;;  %v8682_v28 = vpack.c.bf16 %v2501_v24, %v2494_v19  ;;  %7491 = vmatpush3.bf16.msra.mxu1 %v8613_v42  ;;  %v8720_v19 = vsub.f32 %v8593_v29, %v758_v32  ;;  %7321 = vmatprep.subr.bf16.mxu0 %v8715_v18 }
 0x209   :  { %7493 = vmatprep.subr.bf16.mxu1 %v8621_v46  ;;  %7323 = vmatpush3.bf16.msra.mxu0 %v8715_v18 }
 0x20a   :  { %v2503_v58 = vsub.f32 %v2501_v24, %v2502_v27  ;;  %v8686_v59 = vpack.c.bf16 %v2502_v27, %v2495_v25  ;;  %v2497_v60 = vand.u32 4294901760, %v2496_v26  ;;  %v800_v24 = vand.u32 4294901760, %v120_v21 }
 0x20b   :  { %v803_v25 = vand.u32 4294901760, %v121_v22  ;;  %v9928_v26 = vand.u32 4294901760, %v8720_v19  ;;  %v9926_v27 = vand.u32 4294901760, %v8725_v20 }
 0x20c   :  { %v2504_v61 = vand.u32 4294901760, %v2503_v58  ;;  %7495 = vmatpush3.bf16.msra.mxu1 %v8621_v46 }
 0x20d   :  { %7497 = vmatprep.subr.bf16.mxu1 %v8635_v49  ;;  %v8733_v29 = vpack.c.bf16 %v803_v25, %v800_v24  ;;  %v882_v30 = vsub.f32 %v8720_v19, %v9928_v26  ;;  %v889_v32 = vsub.f32 %v8725_v20, %v9926_v27  ;;  %v8772_v26 = vsub.f32 %v120_v21, %v800_v24 }
 0x20e   :  { %v8690_v62 = vpack.c.bf16 %v2504_v61, %v2497_v60  ;;  %v8749_v61 = vsub.f32 %v116_v6, %v788_v9  ;;  %v8774_v56 = vsub.f32 %v121_v22, %v803_v25 }
 0x20f   :  { %7325 = vmatprep.subr.bf16.mxu0 %v8733_v29  ;;  %v883_v33 = vand.u32 4294901760, %v882_v30  ;;  %v890_v58 = vand.u32 4294901760, %v889_v32  ;;  %v9935_v30 = vand.u32 4294901760, %v8751_v44 }
 0x210   :  { %7499 = vmatpush3.bf16.msra.mxu1 %v8635_v49  ;;  %7327 = vmatpush3.bf16.msra.mxu0 %v8733_v29  ;;  %v9927_v0 = vand.u32 4294901760, %v8749_v61  ;;  %v9930_v16 = vand.u32 4294901760, %v8774_v56 }
 0x211   :  { %7501 = vmatprep.subr.bf16.mxu1 %v8649_v54  ;;  %v8745_v60 = vpack.c.bf16 %v890_v58, %v883_v33  ;;  %v959_v33 = vsub.f32 %v8751_v44, %v9935_v30  ;;  %v8761_v58 = vsub.f32 %v118_v12, %v794_v14  ;;  %v973_v12 = vsub.f32 %v8763_v3, %v9932_v10 }
 0x212   :  { %v952_v32 = vsub.f32 %v8749_v61, %v9927_v0  ;;  %v9931_v14 = vand.u32 4294901760, %v8772_v26  ;;  %v987_v21 = vsub.f32 %v8774_v56, %v9930_v16 }
 0x213   :  { %7329 = vmatprep.subr.bf16.mxu0 %v8745_v60  ;;  %v960_v9 = vand.u32 4294901760, %v959_v33  ;;  %v9934_v8 = vand.u32 4294901760, %v8761_v58 }
 0x214   :  { %7503 = vmatpush3.bf16.msra.mxu1 %v8649_v54  ;;  %v953_v6 = vand.u32 4294901760, %v952_v32  ;;  %v974_v32 = vand.u32 4294901760, %v973_v12  ;;  %v980_v33 = vsub.f32 %v8772_v26, %v9931_v14  ;;  %v988_v25 = vand.u32 4294901760, %v987_v21 }
 0x215   :  { %7505 = vmatprep.subr.bf16.mxu1 %v8659_v57  ;;  %v966_v0 = vsub.f32 %v8761_v58, %v9934_v8  ;;  %v8801_v12 = vpack.c.bf16 %v8763_v3, %v8761_v58  ;;  %v8816_v21 = vsub.f32 %v8601_v34, %v767_v41  ;;  %v8826_v14 = vsub.f32 %v8604_v36, %v770_v43 }
 0x216   :  { %v8767_v27 = vpack.c.bf16 %v960_v9, %v953_v6  ;;  %v981_v24 = vand.u32 4294901760, %v980_v33  ;;  %v8797_v9 = vpack.c.bf16 %v8751_v44, %v8749_v61  ;;  %v8811_v33 = vsub.f32 %v8597_v31, %v764_v35 }
 0x217   :  { %v967_v13 = vand.u32 4294901760, %v966_v0  ;;  %v8793_v0 = vpack.c.bf16 %v8725_v20, %v8720_v19  ;;  %v9936_v16 = vand.u32 4294901760, %v8816_v21  ;;  %v8831_v31 = vsub.f32 %v8606_v40, %v773_v45 }
 0x218   :  { %7507 = vmatpush3.bf16.msra.mxu1 %v8659_v57  ;;  %v8789_v6 = vpack.c.bf16 %v988_v25, %v981_v24  ;;  %v9937_v25 = vand.u32 4294901760, %v8811_v33  ;;  %v9941_v40 = vand.u32 4294901760, %v8826_v14 }
 0x219   :  { %7509 = vmatprep.subr.bf16.mxu1 %v8709_v11  ;;  %v8787_v22 = vpack.c.bf16 %v974_v32, %v967_v13  ;;  %v8805_v13 = vpack.c.bf16 %v8774_v56, %v8772_v26  ;;  %v9933_v32 = vsub.s32 3, %v8544_v37  ;;  %v903_v43 = vsub.f32 %v8816_v21, %v9936_v16 }
 0x21a   :  { %v8862_v16 = vsub.f32 %v8625_v48, %v779_v51  ;;  %v10010_v48 = vand.u32 4294901760, %v8831_v31 }
 0x21b   :  { %10005 = vst [vmem:[#allocation26_spill] sm:$0xff] %v8805_v13  ;;  %v748_v24 = vrot.slane %v8552_v39, %v9933_v32  ;;  %v896_v32 = vsub.f32 %v8811_v33, %v9937_v25 }
 0x21c   :  { %v8697_v63 = vpop.f32.mrb[8].mxu0  ;;  %7511 = vmatpush3.bf16.msra.mxu1 %v8709_v11  ;;  %v917_v51 = vsub.f32 %v8831_v31, %v10010_v48  ;;  %v10012_v48 = vand.u32 4294901760, %v8641_v53 }
 0x21d   :  { %10001 = vst [vmem:[#allocation22_spill] sm:$0xff] %v8697_v63  ;;  %v8701_v1 = vpop.f32.mrb[9].mxu0  ;;  %7513 = vmatprep.subr.bf16.mxu1 %v8715_v18  ;;  %v897_v45 = vand.u32 4294901760, %v896_v32 }
 0x21e   :  { %10002 = vst [vmem:[#allocation23_spill] sm:$0xff] %v8701_v1  ;;  %v8703_v2 = vpop.f32.mrb[10].mxu0  ;;  %v8901_v15 = vsub.f32 %v8641_v53, %v10012_v48 }
 0x21f   :  { %10003 = vst [vmem:[#allocation24_spill] sm:$0xff] %v8703_v2  ;;  %v8707_v4 = vpop.f32.mrb[11].mxu0  ;;  %v918_v2 = vand.u32 4294901760, %v917_v51 }
 0x220   :  { %10004 = vst [vmem:[#allocation25_spill] sm:$0xff] %v8707_v4  ;;  %7515 = vmatpush3.bf16.msra.mxu1 %v8715_v18 }
 0x221   :  { %7517 = vmatprep.subr.bf16.mxu1 %v8733_v29 }
 0x224   :  { %7519 = vmatpush3.bf16.msra.mxu1 %v8733_v29 }
 0x225   :  { %7521 = vmatprep.subr.bf16.mxu1 %v8745_v60 }
 0x2da   :  { %v6316_v34 = vpop.f32.mrb[0].mxu1 }
 0x2db   :  { %v8833_v35 = vadd.f32 %v6316_v34, %v748_v24  ;;  %v730_v41 = vpop.f32.mrb[1].mxu1 }
 0x2dc   :  { %v8835_v10 = vadd.f32 %v748_v24, %v730_v41  ;;  %v6317_v39 = vpop.f32.mrb[2].mxu1 }
 0x2dd   :  { %10006 = vst [vmem:[#allocation27_spill] sm:$0xff] %v8833_v35  ;;  %v8840_v8 = vadd.f32 %v6317_v39, %v748_v24  ;;  %v733_v36 = vpop.f32.mrb[3].mxu1  ;;  %v8857_v39 = vsub.f32 %v8623_v47, %v776_v50  ;;  %v904_v47 = vand.u32 4294901760, %v903_v43  ;;  %v910_v50 = vsub.f32 %v8826_v14, %v9941_v40 }
 0x2de   :  { %10007 = vst [vmem:[#allocation28_spill] sm:$0xff] %v8835_v10  ;;  %v755_v34 = vmul.f32 %v8835_v10, %v8835_v10  ;;  %v8850_v41 = vand.u32 4294901760, %v8835_v10  ;;  %v8852_v30 = vadd.f32 %v748_v24, %v733_v36  ;;  %v10011_v40 = vand.u32 4294901760, %v8639_v52 }
 0x2df   :  { %10008 = vst [vmem:[#allocation29_spill] sm:$0xff] %v8840_v8  ;;  %v8911_v17 = vpack.c.bf16 %v904_v47, %v897_v45  ;;  %v10014_v45 = vand.u32 4294901760, %v8862_v16 }
 0x2e0   :  { %10009 = vst [vmem:[#allocation30_spill] sm:$0xff] %v8852_v30  ;;  %v8866_v25 = vsub.f32 %v8835_v10, %v8850_v41  ;;  %v8868_v55 = vand.u32 4294901760, %v755_v34  ;;  %v756_v24 = vmul.f32 %v8852_v30, %v8852_v30  ;;  %v8873_v36 = vand.u32 4294901760, %v8852_v30 }
 0x2e1   :  { %v8896_v4 = vsub.f32 %v8639_v52, %v10011_v40  ;;  %v911_v52 = vand.u32 4294901760, %v910_v50  ;;  %v10013_v10 = vand.u32 4294901760, %v8857_v39  ;;  %v931_v47 = vsub.f32 %v8862_v16, %v10014_v45 }
 0x2e2   :  { %v8883_v35 = vsub.f32 %v8852_v30, %v8873_v36  ;;  %v8885_v8 = vand.u32 4294901760, %v756_v24  ;;  %v9945_v38 = vand.u32 4294901760, %v8866_v25  ;;  %v8889_v1 = vsub.f32 %v755_v34, %v8868_v55 }
 0x2e3   :  { %v944_v30 = vand.u32 4294901760, %v8901_v15 }
 0x2e4   :  { %v841_v63 = vsub.f32 %v8866_v25, %v9945_v38  ;;  %v9948_v34 = vand.u32 4294901760, %v8883_v35  ;;  %v9949_v32 = vand.u32 4294901760, %v8889_v1  ;;  %v8909_v43 = vsub.f32 %v756_v24, %v8885_v8 }
 0x2e5   :  { %v924_v24 = vsub.f32 %v8857_v39, %v10013_v10  ;;  %v8932_v10 = vpack.c.bf16 %v918_v2, %v911_v52 }
 0x2e6   :  { %v842_v40 = vand.u32 4294901760, %v841_v63  ;;  %v851_v53 = vsub.f32 %v8883_v35, %v9948_v34  ;;  %v861_v48 = vsub.f32 %v8889_v1, %v9949_v32  ;;  %v870_v38 = vand.u32 4294901760, %v8909_v43 }
 0x2e7   :  { %v925_v51 = vand.u32 4294901760, %v924_v24  ;;  %v932_v63 = vand.u32 4294901760, %v931_v47  ;;  %v8962_v24 = vpack.c.bf16 %v8816_v21, %v8811_v33  ;;  %v8970_v47 = vpack.c.bf16 %v8831_v31, %v8826_v14 }
 0x2e8   :  { %6350 = vmatprep.mubr.f32.mxu0 %v842_v40  ;;  %v852_v50 = vand.u32 4294901760, %v851_v53  ;;  %v862_v34 = vand.u32 4294901760, %v861_v48  ;;  %v871_v32 = vsub.f32 %v8909_v43, %v870_v38  ;;  %v10015_v40 = vand.u32 4294901760, %v8896_v4 }
 0x2e9   :  { %v945_v48 = vsub.f32 %v8901_v15, %v944_v30  ;;  %v8944_v2 = vpack.c.bf16 %v932_v63, %v925_v51  ;;  %v8978_v63 = vpack.c.bf16 %v8862_v16, %v8857_v39  ;;  %v10016_v51 = vand.u32 4294901760, %v8866_v25 }
 0x2ea   :  { %6351 = vmatmul.mubr.f32.vlgmr.msra.gmra.mrb[12].mxu0 %v852_v50  ;;  %v872_v45 = vand.u32 4294901760, %v871_v32  ;;  %v938_v53 = vsub.f32 %v8896_v4, %v10015_v40  ;;  %v8984_v50 = vpack.c.bf16 %v8901_v15, %v8896_v4  ;;  %v10037_v15 = vand.u32 4294901760, %v8763_v3 }
 0x2eb   :  { %7331 = vmatpush3.bf16.msra.mxu0 %v8745_v60  ;;  %6353 = vmatprep.mubr.f32.mxu0 %v862_v34  ;;  %v946_v32 = vand.u32 4294901760, %v945_v48  ;;  %v10021_v48 = vand.u32 4294901760, %v8816_v21 }
 0x2ec   :  { %7333 = vmatprep.subr.bf16.mxu0 %v8911_v17  ;;  %v939_v34 = vand.u32 4294901760, %v938_v53  ;;  %v10020_v53 = vand.u32 4294901760, %v8811_v33  ;;  %v10029_v33 = vand.u32 4294901760, %v8862_v16  ;;  %v10034_v16 = vand.u32 4294901760, %v8751_v44 }
 0x2ed   :  { %v10040_v44 = vand.u32 4294901760, %v8774_v56  ;;  %v122_v56 = vld [vmem:[#allocation10 + $0x80] sm:$0xff] }
 0x2ee   :  { %6354 = vmatmul.mubr.f32.gmra.mrb[14].mxu0 %v872_v45  ;;  %v8948_v52 = vpack.c.bf16 %v946_v32, %v939_v34  ;;  %v10018_v45 = vand.u32 4294901760, %v8725_v20  ;;  %v9027_v34 = vpack.c.bf16 %v10021_v48, %v10020_v53  ;;  %v10023_v32 = vand.u32 4294901760, %v8883_v35  ;;  %v125_v48 = vld [vmem:[#allocation10 + $0x98] sm:$0xff] }
 0x2ef   :  { %7335 = vmatpush3.bf16.msra.mxu0 %v8911_v17  ;;  %6388 = vmatprep.mubr.f32.mxu0 %v8850_v41  ;;  %v10026_v20 = vand.u32 4294901760, %v8831_v31  ;;  %v10033_v31 = vand.u32 4294901760, %v8749_v61  ;;  %v10039_v61 = vand.u32 4294901760, %v8772_v26  ;;  %v2337_v3 = vmul.f32 %v8664_v5, %v122_v56 }
 0x2f0   :  { %7337 = vmatprep.subr.bf16.mxu0 %v8932_v10  ;;  %10022 = vst [vmem:[#allocation32_spill] sm:$0xff] %v9027_v34 }
 0x2f1   :  { %v9103_v26 = vand.u32 4294901760, %v2337_v3 }
 0x2f3   :  { %7339 = vmatpush3.bf16.msra.mxu0 %v8932_v10 }
 0x2f4   :  { %7341 = vmatprep.subr.bf16.mxu0 %v8944_v2 }
 0x2f7   :  { %7343 = vmatpush3.bf16.msra.mxu0 %v8944_v2 }
 0x2f8   :  { %7345 = vmatprep.subr.bf16.mxu0 %v8948_v52 }
 0x2fb   :  { %7347 = vmatpush3.bf16.msra.mxu0 %v8948_v52 }
 0x2fc   :  { %7349 = vmatprep.subr.bf16.mxu0 %v8767_v27 }
 0x2ff   :  { %7351 = vmatpush3.bf16.msra.mxu0 %v8767_v27 }
 0x300   :  { %7353 = vmatprep.subr.bf16.mxu0 %v8787_v22 }
 0x303   :  { %7355 = vmatpush3.bf16.msra.mxu0 %v8787_v22 }
 0x304   :  { %7357 = vmatprep.subr.bf16.mxu0 %v8789_v6 }
 0x307   :  { %7359 = vmatpush3.bf16.msra.mxu0 %v8789_v6 }
 0x308   :  { %7361 = vmatprep.subr.bf16.mxu0 %v8793_v0 }
 0x30a   :  { %6389 = vmatmul.mubr.f32.vlgmr.msra.gmra.mrb[12].mxu0 %v8873_v36 }
 0x30b   :  { %6391 = vmatprep.mubr.f32.mxu0 %v8868_v55  ;;  %7363 = vmatpush3.bf16.msra.mxu0 %v8793_v0 }
 0x30c   :  { %7365 = vmatprep.subr.bf16.mxu0 %v8962_v24 }
 0x30e   :  { %6392 = vmatmul.mubr.f32.gmra.mrb[14].mxu0 %v8885_v8 }
 0x30f   :  { %7367 = vmatpush3.bf16.msra.mxu0 %v8962_v24  ;;  %6426 = vmatprep.mubr.f32.mxu0 %v8866_v25  ;;  %v10017_v25 = vand.u32 4294901760, %v8720_v19  ;;  %v10025_v19 = vand.u32 4294901760, %v8826_v14  ;;  %v10031_v14 = vand.u32 4294901760, %v8896_v4  ;;  %v10036_v4 = vand.u32 4294901760, %v8761_v58  ;;  %v123_v58 = vld [vmem:[#allocation10 + $0x88] sm:$0xff] }
 0x310   :  { %7369 = vmatprep.subr.bf16.mxu0 %v8970_v47 }
 0x311   :  { %v9019_v40 = vpack.c.bf16 %v10018_v45, %v10017_v25  ;;  %v9039_v25 = vpack.c.bf16 %v10026_v20, %v10025_v19  ;;  %v2338_v45 = vmul.f32 %v8666_v7, %v123_v58  ;;  %v2340_v20 = vmul.f32 %v8666_v7, %v125_v48 }
 0x313   :  { %7371 = vmatpush3.bf16.msra.mxu0 %v8970_v47  ;;  %10019 = vst [vmem:[#allocation31_spill] sm:$0xff] %v9019_v40  ;;  %10027 = vst [vmem:[#allocation33_spill] sm:$0xff] %v9039_v25  ;;  %v9120_v19 = vand.u32 4294901760, %v2338_v45 }
 0x314   :  { %7373 = vmatprep.subr.bf16.mxu0 %v8978_v63 }
 0x317   :  { %7375 = vmatpush3.bf16.msra.mxu0 %v8978_v63 }
 0x318   :  { %7377 = vmatprep.subr.bf16.mxu0 %v8984_v50 }
 0x31b   :  { %7379 = vmatpush3.bf16.msra.mxu0 %v8984_v50 }
 0x31c   :  { %7381 = vmatprep.subr.bf16.mxu0 %v8797_v9 }
 0x31f   :  { %7383 = vmatpush3.bf16.msra.mxu0 %v8797_v9 }
 0x320   :  { %7385 = vmatprep.subr.bf16.mxu0 %v8801_v12 }
 0x323   :  { %7387 = vmatpush3.bf16.msra.mxu0 %v8801_v12 }
 0x324   :  { %7389 = vmatprep.subr.bf16.mxu0 %v8805_v13 }
 0x327   :  { %7391 = vmatpush3.bf16.msra.mxu0 %v8805_v13 }
 0x328   :  { %7393 = vmatprep.subr.bf16.mxu0 %v8613_v42 }
 0x32a   :  { %6427 = vmatmul.mubr.f32.vlgmr.msra.gmra.mrb[12].mxu0 %v8883_v35  ;;  %v9066_v35 = vpack.c.bf16 %v10034_v16, %v10033_v31  ;;  %v9128_v31 = vld [vmem:[#allocation10 + $0xb0] sm:$0xff] }
 0x32b   :  { %6429 = vmatprep.mubr.f32.mxu0 %v8889_v1  ;;  %7395 = vmatpush3.bf16.msra.mxu0 %v8613_v42  ;;  %10044 = vst [vmem:[#allocation41_spill] sm:$0xff] %v9128_v31  ;;  %v2343_v58 = vmul.f32 %v8664_v5, %v9128_v31 }
 0x32c   :  { %7397 = vmatprep.subr.bf16.mxu0 %v8621_v46  ;;  %10035 = vst [vmem:[#allocation36_spill] sm:$0xff] %v9066_v35 }
 0x32e   :  { %6430 = vmatmul.mubr.f32.gmra.mrb[14].mxu0 %v8909_v43  ;;  %v9110_v43 = vsub.f32 %v2337_v3, %v9103_v26 }
 0x32f   :  { %7399 = vmatpush3.bf16.msra.mxu0 %v8621_v46  ;;  %6464 = vmatprep.mubr.f32.mxu0 %v10016_v51  ;;  %v10024_v51 = vand.u32 4294901760, %v8889_v1  ;;  %v10028_v1 = vand.u32 4294901760, %v8857_v39  ;;  %v9082_v39 = vpack.c.bf16 %v10040_v44, %v10039_v61  ;;  %v129_v44 = vld [vmem:[#allocation10 + $0xb8] sm:$0xff] }
 0x330   :  { %7401 = vmatprep.subr.bf16.mxu0 %v8635_v49 }
 0x331   :  { %v9050_v21 = vpack.c.bf16 %v10029_v33, %v10028_v1  ;;  %10041 = vst [vmem:[#allocation38_spill] sm:$0xff] %v9082_v39 }
 0x333   :  { %7403 = vmatpush3.bf16.msra.mxu0 %v8635_v49  ;;  %10030 = vst [vmem:[#allocation34_spill] sm:$0xff] %v9050_v21 }
 0x334   :  { %7405 = vmatprep.subr.bf16.mxu0 %v8649_v54 }
 0x337   :  { %7407 = vmatpush3.bf16.msra.mxu0 %v8649_v54 }
 0x338   :  { %7409 = vmatprep.subr.bf16.mxu0 %v8659_v57 }
 0x33b   :  { %7411 = vmatpush3.bf16.msra.mxu0 %v8659_v57 }
 0x33c   :  { %7413 = vmatprep.subr.bf16.mxu0 %v8709_v11 }
 0x33f   :  { %7415 = vmatpush3.bf16.msra.mxu0 %v8709_v11 }
 0x340   :  { %7417 = vmatprep.subr.bf16.mxu0 %v8715_v18 }
 0x343   :  { %7419 = vmatpush3.bf16.msra.mxu0 %v8715_v18 }
 0x344   :  { %7421 = vmatprep.subr.bf16.mxu0 %v8733_v29 }
 0x347   :  { %7423 = vmatpush3.bf16.msra.mxu0 %v8733_v29 }
 0x348   :  { %7425 = vmatprep.subr.bf16.mxu0 %v9019_v40 }
 0x34a   :  { %6465 = vmatmul.mubr.f32.vlgmr.msra.gmra.mrb[12].mxu0 %v10023_v32  ;;  %v9116_v32 = vld [vmem:[#allocation10 + $0xa0] sm:$0xff] }
 0x34b   :  { %6467 = vmatprep.mubr.f32.mxu0 %v10024_v51  ;;  %7427 = vmatpush3.bf16.msra.mxu0 %v9019_v40  ;;  %10043 = vst [vmem:[#allocation40_spill] sm:$0xff] %v9116_v32  ;;  %v9951_v51 = vand.u32 4294901760, %v9110_v43  ;;  %v2341_v33 = vmul.f32 %v8664_v5, %v9116_v32 }
 0x34c   :  { %7429 = vmatprep.subr.bf16.mxu0 %v9027_v34 }
 0x34d   :  { %v2415_v16 = vsub.f32 %v9110_v43, %v9951_v51  ;;  %v9144_v3 = vand.u32 4294901760, %v2341_v33 }
 0x34e   :  { %6468 = vmatmul.mubr.f32.gmra.mrb[14].mxu0 %v870_v38  ;;  %v9058_v38 = vpack.c.bf16 %v944_v30, %v10031_v14  ;;  %v9074_v30 = vpack.c.bf16 %v10037_v15, %v10036_v4  ;;  %v127_v14 = vld [vmem:[#allocation10 + $0xa8] sm:$0xff]  ;;  %v9135_v4 = vsub.f32 %v2338_v45, %v9120_v19  ;;  %v9137_v15 = vand.u32 4294901760, %v2340_v20 }
 0x34f   :  { %7431 = vmatpush3.bf16.msra.mxu0 %v9027_v34  ;;  %6502 = vmatprep.mubr.f32.mxu0 %v8850_v41  ;;  %v2342_v61 = vmul.f32 %v8666_v7, %v127_v14  ;;  %v2344_v45 = vmul.f32 %v8666_v7, %v129_v44  ;;  %v2416_v48 = vand.u32 4294901760, %v2415_v16 }
 0x350   :  { %7433 = vmatprep.subr.bf16.mxu0 %v9039_v25  ;;  %10032 = vst [vmem:[#allocation35_spill] sm:$0xff] %v9058_v38  ;;  %10038 = vst [vmem:[#allocation37_spill] sm:$0xff] %v9074_v30  ;;  %v2424_v51 = vand.u32 4294901760, %v9135_v4  ;;  %v9152_v14 = vsub.f32 %v2340_v20, %v9137_v15 }
 0x351   :  { %v9154_v32 = vand.u32 4294901760, %v2342_v61  ;;  %v9168_v44 = vand.u32 4294901760, %v2344_v45 }
 0x352   :  { %v2444_v20 = vand.u32 4294901760, %v9152_v14 }
 0x353   :  { %7435 = vmatpush3.bf16.msra.mxu0 %v9039_v25  ;;  %v2463_v16 = vsub.f32 %v2342_v61, %v9154_v32 }
 0x354   :  { %7437 = vmatprep.subr.bf16.mxu0 %v9050_v21 }
 0x357   :  { %7439 = vmatpush3.bf16.msra.mxu0 %v9050_v21 }
 0x358   :  { %7441 = vmatprep.subr.bf16.mxu0 %v9058_v38 }
 0x35b   :  { %7443 = vmatpush3.bf16.msra.mxu0 %v9058_v38 }
 0x35c   :  { %7445 = vmatprep.subr.bf16.mxu0 %v9066_v35 }
 0x35f   :  { %7447 = vmatpush3.bf16.msra.mxu0 %v9066_v35 }
 0x360   :  { %7449 = vmatprep.subr.bf16.mxu0 %v9074_v30 }
 0x363   :  { %7451 = vmatpush3.bf16.msra.mxu0 %v9074_v30 }
 0x364   :  { %7453 = vmatprep.subr.bf16.mxu0 %v9082_v39 }
 0x367   :  { %7455 = vmatpush3.bf16.msra.mxu0 %v9082_v39  ;;  %v2483_v39 = vsub.f32 %v2344_v45, %v9168_v44 }
 0x368   :  { %7457 = vmatprep.subr.bf16.mxu0 %v8613_v42 }
 0x369   :  { %v2484_v25 = vand.u32 4294901760, %v2483_v39 }
 0x36a   :  { %6503 = vmatmul.mubr.f32.vlgmr.msra.gmra.mrb[12].mxu0 %v8873_v36 }
 0x36b   :  { %6505 = vmatprep.mubr.f32.mxu0 %v8868_v55  ;;  %7459 = vmatpush3.bf16.msra.mxu0 %v8613_v42  ;;  %v2485_v40 = vsub.f32 %v2483_v39, %v2484_v25 }
 0x36c   :  { %7461 = vmatprep.subr.bf16.mxu0 %v8621_v46 }
 0x36e   :  { %6506 = vmatmul.mubr.f32.gmra.mrb[14].mxu0 %v8885_v8 }
 0x36f   :  { %7463 = vmatpush3.bf16.msra.mxu0 %v8621_v46  ;;  %6540 = vmatprep.mubr.f32.mxu0 %v8850_v41  ;;  %v9106_v41 = vld [vmem:[#allocation10 + $0x90] sm:$0xff] }
 0x370   :  { %7465 = vmatprep.subr.bf16.mxu0 %v8635_v49  ;;  %10042 = vst [vmem:[#allocation39_spill] sm:$0xff] %v9106_v41  ;;  %v2339_v53 = vmul.f32 %v8664_v5, %v9106_v41  ;;  %v9161_v5 = vand.u32 4294901760, %v2343_v58  ;;  %v2464_v41 = vand.u32 4294901760, %v2463_v16 }
 0x372   :  { %v9123_v1 = vand.u32 4294901760, %v2339_v53  ;;  %v2473_v7 = vsub.f32 %v2343_v58, %v9161_v5  ;;  %v2465_v21 = vsub.f32 %v2463_v16, %v2464_v41 }
 0x373   :  { %7467 = vmatpush3.bf16.msra.mxu0 %v8635_v49 }
 0x374   :  { %7469 = vmatprep.subr.bf16.mxu0 %v8649_v54  ;;  %v9142_v56 = vsub.f32 %v2339_v53, %v9123_v1  ;;  %v9159_v53 = vsub.f32 %v2341_v33, %v9144_v3  ;;  %v2474_v38 = vand.u32 4294901760, %v2473_v7  ;;  %v2466_v34 = vand.u32 4294901760, %v2465_v21 }
 0x376   :  { %v2454_v33 = vand.u32 4294901760, %v9159_v53 }
 0x377   :  { %7471 = vmatpush3.bf16.msra.mxu0 %v8649_v54 }
 0x378   :  { %7473 = vmatprep.subr.bf16.mxu0 %v8659_v57  ;;  %v2455_v35 = vsub.f32 %v9159_v53, %v2454_v33 }
 0x37a   :  { %v2456_v58 = vand.u32 4294901760, %v2455_v35 }
 0x37b   :  { %7475 = vmatpush3.bf16.msra.mxu0 %v8659_v57 }
 0x37c   :  { %7477 = vmatprep.subr.bf16.mxu0 %v8709_v11 }
 0x37f   :  { %7479 = vmatpush3.bf16.msra.mxu0 %v8709_v11 }
 0x380   :  { %7481 = vmatprep.subr.bf16.mxu0 %v8715_v18 }
 0x383   :  { %7483 = vmatpush3.bf16.msra.mxu0 %v8715_v18 }
 0x384   :  { %7485 = vmatprep.subr.bf16.mxu0 %v8733_v29 }
 0x387   :  { %7487 = vmatpush3.bf16.msra.mxu0 %v8733_v29 }
 0x388   :  { %7681 = vmatprep.subr.bf16.mxu0 %v8679_v23 }
 0x38a   :  { %6541 = vmatmul.mubr.f32.vlgmr.msra.gmra.mrb[12].mxu0 %v8873_v36  ;;  %v2434_v36 = vand.u32 4294901760, %v9142_v56 }
 0x38b   :  { %6543 = vmatprep.mubr.f32.mxu0 %v8868_v55  ;;  %v2425_v55 = vsub.f32 %v9135_v4, %v2424_v51 }
 0x38d   :  { %v2426_v31 = vand.u32 4294901760, %v2425_v55  ;;  %v2475_v55 = vsub.f32 %v2473_v7, %v2474_v38 }
 0x38e   :  { %6544 = vmatmul.mubr.f32.gmra.mrb[14].mxu0 %v8885_v8  ;;  %v2435_v8 = vsub.f32 %v9142_v56, %v2434_v36 }
 0x38f   :  { %6778 = vmatprep.mubr.f32.mxu0 %v2416_v48  ;;  %v2445_v48 = vsub.f32 %v9152_v14, %v2444_v20  ;;  %v2476_v45 = vand.u32 4294901760, %v2475_v55 }
 0x390   :  { %7683 = vmatpush3.bf16.xpose.msra.mxu0 %v8679_v23  ;;  %v2436_v30 = vand.u32 4294901760, %v2435_v8  ;;  %v2486_v8 = vand.u32 4294901760, %v2485_v40 }
 0x391   :  { %7685 = vmatprep.subr.bf16.mxu0 %v8690_v62  ;;  %v2446_v61 = vand.u32 4294901760, %v2445_v48  ;;  %v10054_v48 = vld [vmem:[#allocation20_spill] sm:$0xff] }
 0x397   :  { %6779 = vmatmul.mubr.f32.vlgmr.msra.gmra.mrb[16].mxu0 %v2426_v31 }
 0x398   :  { %6781 = vmatprep.mubr.f32.mxu0 %v2436_v30  ;;  %7687 = vmatpush3.bf16.xpose.msra.mxu0 %v8690_v62  ;;  %v1541_v30 = vsub.s32 4, %v8544_v37 }
 0x399   :  { %7689 = vmatprep.subr.bf16.mxu0 %v8682_v28 }
 0x39b   :  { %6782 = vmatmul.mubr.f32.gmra.mrb[18].mxu0 %v2446_v61 }
 0x39c   :  { %6784 = vmatprep.mubr.f32.mxu0 %v2456_v58 }
 0x39f   :  { %6785 = vmatmul.mubr.f32.gmra.mrb[20].mxu0 %v2466_v34 }
 0x3a0   :  { %6787 = vmatprep.mubr.f32.mxu0 %v2476_v45 }
 0x3a3   :  { %6788 = vmatmul.mubr.f32.gmra.mrb[22].mxu0 %v2486_v8 }
 0x3a4   :  { %6794 = vmatprep.mubr.f32.mxu0 %v9103_v26 }
 0x3a7   :  { %6795 = vmatmul.mubr.f32.vlgmr.msra.gmra.mrb[16].mxu0 %v9120_v19 }
 0x3a8   :  { %7691 = vmatpush3.bf16.xpose.msra.mxu0 %v8682_v28  ;;  %6797 = vmatprep.mubr.f32.mxu0 %v9123_v1  ;;  %v10045_v28 = vand.u32 4294901760, %v9110_v43 }
 0x3a9   :  { %7693 = vmatprep.subr.bf16.mxu0 %v8679_v23 }
 0x3ab   :  { %6798 = vmatmul.mubr.f32.gmra.mrb[18].mxu0 %v9137_v15 }
 0x3ac   :  { %6800 = vmatprep.mubr.f32.mxu0 %v9144_v3 }
 0x3af   :  { %6801 = vmatmul.mubr.f32.gmra.mrb[20].mxu0 %v9154_v32 }
 0x3b0   :  { %6803 = vmatprep.mubr.f32.mxu0 %v9161_v5 }
 0x3b3   :  { %6804 = vmatmul.mubr.f32.gmra.mrb[22].mxu0 %v9168_v44 }
 0x3b4   :  { %6810 = vmatprep.mubr.f32.mxu0 %v9110_v43 }
 0x3b7   :  { %6811 = vmatmul.mubr.f32.vlgmr.msra.gmra.mrb[16].mxu0 %v9135_v4 }
 0x3b8   :  { %7695 = vmatpush3.bf16.xpose.msra.mxu0 %v8679_v23  ;;  %6813 = vmatprep.mubr.f32.mxu0 %v9142_v56 }
 0x3b9   :  { %7697 = vmatprep.subr.bf16.mxu0 %v8686_v59 }
 0x3bb   :  { %6814 = vmatmul.mubr.f32.gmra.mrb[18].mxu0 %v9152_v14 }
 0x3bc   :  { %6816 = vmatprep.mubr.f32.mxu0 %v9159_v53  ;;  %v10050_v53 = vld [vmem:[#allocation24_spill] sm:$0xff] }
 0x3bf   :  { %6817 = vmatmul.mubr.f32.gmra.mrb[20].mxu0 %v2463_v16 }
 0x3c0   :  { %6819 = vmatprep.mubr.f32.mxu0 %v2473_v7 }
 0x3c3   :  { %6820 = vmatmul.mubr.f32.gmra.mrb[22].mxu0 %v2483_v39  ;;  %v1547_v39 = vsub.s32 5, %v8544_v37 }
 0x3c4   :  { %6826 = vmatprep.mubr.f32.mxu0 %v10045_v28 }
 0x3c7   :  { %6827 = vmatmul.mubr.f32.vlgmr.msra.gmra.mrb[16].mxu0 %v2424_v51  ;;  %v10048_v51 = vld [vmem:[#allocation28_spill] sm:$0xff] }
 0x3c8   :  { %7699 = vmatpush3.bf16.xpose.msra.mxu0 %v8686_v59  ;;  %6829 = vmatprep.mubr.f32.mxu0 %v2434_v36 }
 0x3c9   :  { %7701 = vmatprep.subr.bf16.mxu0 %v8679_v23 }
 0x3cb   :  { %6830 = vmatmul.mubr.f32.gmra.mrb[18].mxu0 %v2444_v20  ;;  %v10051_v20 = vld [vmem:[#allocation21_spill] sm:$0xff] }
 0x3cc   :  { %6832 = vmatprep.mubr.f32.mxu0 %v2454_v33  ;;  %v10052_v16 = vsub.f32 %v10050_v53, %v10051_v20  ;;  %v10053_v33 = vld [vmem:[#allocation22_spill] sm:$0xff] }
 0x3cd   :  { %v10055_v61 = vsub.f32 %v10053_v33, %v10054_v48 }
 0x3cf   :  { %6833 = vmatmul.mubr.f32.gmra.mrb[20].mxu0 %v2464_v41  ;;  %v9222_v41 = vld [vmem:[%s9921_s6] sm:$0xff] }
 0x3d0   :  { %6835 = vmatprep.mubr.f32.mxu0 %v2474_v38  ;;  %v9225_v43 = vrot.slane %v9222_v41, %v1541_v30  ;;  %v9236_v4 = vrot.slane %v9222_v41, %v1547_v39 }
 0x3d2   :  { %10049 = vst [vmem:[#allocation28_spill] sm:$0xff] %v9236_v4 }
 0x3d3   :  { %6836 = vmatmul.mubr.f32.gmra.mrb[22].mxu0 %v2484_v25 }
 0x3d4   :  { %6842 = vmatprep.mubr.f32.mxu0 %v9103_v26 }
 0x3d7   :  { %6843 = vmatmul.mubr.f32.vlgmr.msra.gmra.mrb[16].mxu0 %v9120_v19 }
 0x3d8   :  { %7703 = vmatpush3.bf16.xpose.msra.mxu0 %v8679_v23  ;;  %6845 = vmatprep.mubr.f32.mxu0 %v9123_v1 }
 0x3db   :  { %6846 = vmatmul.mubr.f32.gmra.mrb[18].mxu0 %v9137_v15 }
 0x3dc   :  { %6848 = vmatprep.mubr.f32.mxu0 %v9144_v3 }
 0x3df   :  { %6849 = vmatmul.mubr.f32.gmra.mrb[20].mxu0 %v9154_v32 }
 0x3e0   :  { %6851 = vmatprep.mubr.f32.mxu0 %v9161_v5 }
 0x3e3   :  { %6852 = vmatmul.mubr.f32.gmra.mrb[22].mxu0 %v9168_v44 }
 0x3e4   :  { %6858 = vmatprep.mubr.f32.mxu0 %v9103_v26  ;;  %v10046_v26 = vld [vmem:[#allocation30_spill] sm:$0xff] }
 0x3e5   :  { %10047 = vst [vmem:[#allocation30_spill] sm:$0xff] %v9225_v43 }
 0x3e7   :  { %6859 = vmatmul.mubr.f32.vlgmr.msra.gmra.mrb[16].mxu0 %v9120_v19 }
 0x3e8   :  { %6861 = vmatprep.mubr.f32.mxu0 %v9123_v1 }
 0x3eb   :  { %6862 = vmatmul.mubr.f32.gmra.mrb[18].mxu0 %v9137_v15 }
 0x3ec   :  { %6864 = vmatprep.mubr.f32.mxu0 %v9144_v3 }
 0x3ef   :  { %6865 = vmatmul.mubr.f32.gmra.mrb[20].mxu0 %v9154_v32 }
 0x3f0   :  { %6867 = vmatprep.mubr.f32.mxu0 %v9161_v5 }
 0x3f3   :  { %6868 = vmatmul.mubr.f32.gmra.mrb[22].mxu0 %v9168_v44 }
 0x45d   :  { %v6542_v7 = vpop.f32.mrb[12].mxu0 }
 0x45e   :  { %v1505_v23 = vpop.f32.mrb[13].mxu0  ;;  %v1528_v59 = vmul.f32 %v6542_v7, %v6542_v7  ;;  %v1536_v5 = vsub.f32 %v10046_v26, %v6542_v7 }
 0x45f   :  { %v1527_v62 = vmul.f32 %v1505_v23, %v1505_v23  ;;  %v1535_v19 = vsub.f32 %v10048_v51, %v1505_v23 }
 0x461   :  { %v6545_v40 = vpop.f32.mrb[14].mxu0 }
 0x462   :  { %v1530_v34 = vsub.f32 %v6545_v40, %v1528_v59  ;;  %v1517_v25 = vpop.f32.mrb[15].mxu0 }
 0x463   :  { %v1529_v21 = vsub.f32 %v1517_v25, %v1527_v62 }
 0x464   :  { %v1532_v38 = vadd.f32 1e-06, %v1530_v34 }
 0x465   :  { %v1531_v35 = vadd.f32 1e-06, %v1529_v21 }
 0x466   :  { %8217 = vrsqrt.f32 %v1532_v38 }
 0x467   :  { %8219 = vrsqrt.f32 %v1531_v35 }
 0x470   :  { %v9227_v32 = vpop.eup %8217 }
 0x471   :  { %v9230_v1 = vpop.eup %8219  ;;  %v9233_v31 = vmul.f32 %v9227_v32, %v1536_v5 }
 0x472   :  { %v9239_v15 = vmul.f32 %v9230_v1, %v1535_v19 }
 0x473   :  { %v1544_v56 = vmul.f32 %v9225_v43, %v9233_v31 }
 0x474   :  { %v1543_v3 = vmul.f32 %v9225_v43, %v9239_v15 }
 0x475   :  { %v1550_v14 = vadd.f32 %v9236_v4, %v1544_v56 }
 0x476   :  { %v1549_v36 = vadd.f32 %v9236_v4, %v1543_v3 }
 0x477   :  { %v1552_v44 = vsub.f32 %v1550_v14, %v10052_v16 }
 0x478   :  { %v1551_v58 = vsub.f32 %v1549_v36, %v10055_v61 }
 0x479   :  { %v9254_v55 = vmul.f32 %v1552_v44, %v9225_v43 }
 0x47a   :  { %v9257_v45 = vmul.f32 %v1551_v58, %v9225_v43 }
 0x47b   :  { %v9260_v8 = vand.u32 4294901760, %v9254_v55  ;;  %v1556_v28 = vmul.f32 %v9254_v55, %v9233_v31 }
 0x47c   :  { %v9265_v7 = vand.u32 4294901760, %v9257_v45  ;;  %v1555_v23 = vmul.f32 %v9257_v45, %v9239_v15 }
 0x47d   :  { %v9271_v59 = vsub.f32 %v9254_v55, %v9260_v8  ;;  %v9273_v62 = vand.u32 4294901760, %v1556_v28 }
 0x47e   :  { %v9277_v40 = vsub.f32 %v9257_v45, %v9265_v7  ;;  %v9279_v34 = vand.u32 4294901760, %v1555_v23 }
 0x47f   :  { %v1650_v25 = vand.u32 4294901760, %v9271_v59  ;;  %v9283_v21 = vsub.f32 %v1556_v28, %v9273_v62  ;;  %v10056_v28 = vld [vmem:[#allocation31_spill] sm:$0xff] }
 0x480   :  { %v1640_v38 = vand.u32 4294901760, %v9277_v40  ;;  %v9287_v35 = vsub.f32 %v1555_v23, %v9279_v34  ;;  %v10057_v23 = vld [vmem:[#allocation32_spill] sm:$0xff] }
 0x481   :  { %v1651_v30 = vsub.f32 %v9271_v59, %v1650_v25  ;;  %v1670_v39 = vand.u32 4294901760, %v9283_v21 }
 0x482   :  { %v1641_v26 = vsub.f32 %v9277_v40, %v1640_v38  ;;  %v1660_v5 = vand.u32 4294901760, %v9287_v35 }
 0x483   :  { %v1652_v56 = vand.u32 4294901760, %v1651_v30  ;;  %v1671_v3 = vsub.f32 %v9283_v21, %v1670_v39  ;;  %v134_v30 = vld [vmem:[%s9923_s8] sm:$0xff] }
 0x484   :  { %v1642_v51 = vand.u32 4294901760, %v1641_v26  ;;  %v1661_v19 = vsub.f32 %v9287_v35, %v1660_v5 }
 0x485   :  { %v1672_v36 = vand.u32 4294901760, %v1671_v3  ;;  %v142_v3 = vld [vmem:[%s9923_s8 + $0x40] sm:$0xff] }
 0x486   :  { %6578 = vmatprep.mubr.f32.mxu1 %v1642_v51  ;;  %v1662_v14 = vand.u32 4294901760, %v1661_v19 }
 0x487   :  { %6579 = vmatmul.mubr.f32.vlgmr.msra.gmra.mrb[4].mxu1 %v1652_v56 }
 0x488   :  { %7523 = vmatpush3.bf16.msra.mxu1 %v8745_v60  ;;  %6581 = vmatprep.mubr.f32.mxu1 %v1662_v14  ;;  %v3899_v14 = vsel %vm3113_vm0, %v142_v3, 0 }
 0x489   :  { %7525 = vmatprep.subr.bf16.mxu1 %v8911_v17 }
 0x48b   :  { %6582 = vmatmul.mubr.f32.gmra.mrb[6].mxu1 %v1672_v36  ;;  %v9440_v36 = vand.u32 4294901760, %v3899_v14 }
 0x48c   :  { %7527 = vmatpush3.bf16.msra.mxu1 %v8911_v17  ;;  %6616 = vmatprep.mubr.f32.mxu1 %v9265_v7 }
 0x48d   :  { %7529 = vmatprep.subr.bf16.mxu1 %v8932_v10 }
 0x490   :  { %7531 = vmatpush3.bf16.msra.mxu1 %v8932_v10 }
 0x491   :  { %7533 = vmatprep.subr.bf16.mxu1 %v8944_v2 }
 0x494   :  { %7535 = vmatpush3.bf16.msra.mxu1 %v8944_v2 }
 0x495   :  { %7537 = vmatprep.subr.bf16.mxu1 %v8948_v52 }
 0x498   :  { %7539 = vmatpush3.bf16.msra.mxu1 %v8948_v52 }
 0x499   :  { %7541 = vmatprep.subr.bf16.mxu1 %v8767_v27 }
 0x49c   :  { %7543 = vmatpush3.bf16.msra.mxu1 %v8767_v27 }
 0x49d   :  { %7545 = vmatprep.subr.bf16.mxu1 %v8787_v22 }
 0x4a0   :  { %7547 = vmatpush3.bf16.msra.mxu1 %v8787_v22 }
 0x4a1   :  { %7549 = vmatprep.subr.bf16.mxu1 %v8789_v6 }
 0x4a4   :  { %7551 = vmatpush3.bf16.msra.mxu1 %v8789_v6 }
 0x4a5   :  { %7553 = vmatprep.subr.bf16.mxu1 %v8793_v0 }
 0x4a7   :  { %6617 = vmatmul.mubr.f32.vlgmr.msra.gmra.mrb[4].mxu1 %v9260_v8 }
 0x4a8   :  { %6619 = vmatprep.mubr.f32.mxu1 %v9279_v34  ;;  %7555 = vmatpush3.bf16.msra.mxu1 %v8793_v0 }
 0x4a9   :  { %7557 = vmatprep.subr.bf16.mxu1 %v8962_v24 }
 0x4ab   :  { %6620 = vmatmul.mubr.f32.gmra.mrb[6].mxu1 %v9273_v62 }
 0x4ac   :  { %7559 = vmatpush3.bf16.msra.mxu1 %v8962_v24  ;;  %6654 = vmatprep.mubr.f32.mxu1 %v9277_v40  ;;  %v10058_v40 = vld [vmem:[#allocation33_spill] sm:$0xff] }
 0x4ad   :  { %7561 = vmatprep.subr.bf16.mxu1 %v8970_v47 }
 0x4b0   :  { %7563 = vmatpush3.bf16.msra.mxu1 %v8970_v47 }
 0x4b1   :  { %7565 = vmatprep.subr.bf16.mxu1 %v8978_v63 }
 0x4b4   :  { %7567 = vmatpush3.bf16.msra.mxu1 %v8978_v63 }
 0x4b5   :  { %7569 = vmatprep.subr.bf16.mxu1 %v8984_v50 }
 0x4b8   :  { %7571 = vmatpush3.bf16.msra.mxu1 %v8984_v50 }
 0x4b9   :  { %7573 = vmatprep.subr.bf16.mxu1 %v8797_v9 }
 0x4ba   :  { %v9334_v53 = vpop.f32.mrb[16].mxu0 }
 0x4bb   :  { %v9336_v20 = vpop.f32.mrb[17].mxu0 }
 0x4bc   :  { %7575 = vmatpush3.bf16.msra.mxu1 %v8797_v9 }
 0x4bd   :  { %7577 = vmatprep.subr.bf16.mxu1 %v8801_v12 }
 0x4be   :  { %v9340_v16 = vpop.f32.mrb[18].mxu0 }
 0x4bf   :  { %v9342_v44 = vpop.f32.mrb[19].mxu0 }
 0x4c0   :  { %7579 = vmatpush3.bf16.msra.mxu1 %v8801_v12 }
 0x4c1   :  { %7581 = vmatprep.subr.bf16.mxu1 %v8805_v13 }
 0x4c2   :  { %v9346_v33 = vpop.f32.mrb[20].mxu0 }
 0x4c3   :  { %v9348_v48 = vpop.f32.mrb[21].mxu0 }
 0x4c4   :  { %7583 = vmatpush3.bf16.msra.mxu1 %v8805_v13 }
 0x4c5   :  { %7585 = vmatprep.subr.bf16.mxu1 %v8613_v42 }
 0x4c6   :  { %v9352_v61 = vpop.f32.mrb[22].mxu0 }
 0x4c7   :  { %6655 = vmatmul.mubr.f32.vlgmr.msra.gmra.mrb[4].mxu1 %v9271_v59  ;;  %v9355_v58 = vpop.f32.mrb[23].mxu0  ;;  %v10059_v59 = vld [vmem:[#allocation34_spill] sm:$0xff] }
 0x4c8   :  { %6657 = vmatprep.mubr.f32.mxu1 %v9287_v35  ;;  %7587 = vmatpush3.bf16.msra.mxu1 %v8613_v42  ;;  %v10063_v35 = vld [vmem:[#allocation38_spill] sm:$0xff] }
 0x4c9   :  { %7589 = vmatprep.subr.bf16.mxu1 %v8621_v46 }
 0x4cb   :  { %6658 = vmatmul.mubr.f32.gmra.mrb[6].mxu1 %v9283_v21  ;;  %v10062_v21 = vld [vmem:[#allocation37_spill] sm:$0xff] }
 0x4cc   :  { %7591 = vmatpush3.bf16.msra.mxu1 %v8621_v46  ;;  %6692 = vmatprep.mubr.f32.mxu1 %v1640_v38  ;;  %v10061_v38 = vld [vmem:[#allocation36_spill] sm:$0xff] }
 0x4cd   :  { %7593 = vmatprep.subr.bf16.mxu1 %v8635_v49 }
 0x4d0   :  { %7595 = vmatpush3.bf16.msra.mxu1 %v8635_v49 }
 0x4d1   :  { %7597 = vmatprep.subr.bf16.mxu1 %v8649_v54 }
 0x4d4   :  { %7599 = vmatpush3.bf16.msra.mxu1 %v8649_v54 }
 0x4d5   :  { %7601 = vmatprep.subr.bf16.mxu1 %v8659_v57 }
 0x4d8   :  { %7603 = vmatpush3.bf16.msra.mxu1 %v8659_v57 }
 0x4d9   :  { %7605 = vmatprep.subr.bf16.mxu1 %v8709_v11 }
 0x4dc   :  { %7607 = vmatpush3.bf16.msra.mxu1 %v8709_v11 }
 0x4dd   :  { %7609 = vmatprep.subr.bf16.mxu1 %v8715_v18 }
 0x4e0   :  { %7611 = vmatpush3.bf16.msra.mxu1 %v8715_v18 }
 0x4e1   :  { %7613 = vmatprep.subr.bf16.mxu1 %v8733_v29 }
 0x4e4   :  { %7615 = vmatpush3.bf16.msra.mxu1 %v8733_v29 }
 0x4e5   :  { %7617 = vmatprep.subr.bf16.mxu1 %v10056_v28 }
 0x4e7   :  { %6693 = vmatmul.mubr.f32.vlgmr.msra.gmra.mrb[4].mxu1 %v1650_v25  ;;  %v10060_v25 = vld [vmem:[#allocation35_spill] sm:$0xff] }
 0x4e8   :  { %6695 = vmatprep.mubr.f32.mxu1 %v1660_v5  ;;  %7619 = vmatpush3.bf16.msra.mxu1 %v10056_v28 }
 0x4e9   :  { %7621 = vmatprep.subr.bf16.mxu1 %v10057_v23 }
 0x4eb   :  { %6696 = vmatmul.mubr.f32.gmra.mrb[6].mxu1 %v1670_v39  ;;  %v3105_v39 = vmul.f32 %v9336_v20, %v134_v30  ;;  %v9443_v20 = vsub.f32 %v3899_v14, %v9440_v36 }
 0x4ec   :  { %7623 = vmatpush3.bf16.msra.mxu1 %v10057_v23  ;;  %6730 = vmatprep.mubr.f32.mxu1 %v9265_v7 }
 0x4ed   :  { %7625 = vmatprep.subr.bf16.mxu1 %v10058_v40  ;;  %v3115_v26 = vsel %vm3113_vm0, %v3105_v39, 0  ;;  %v9976_v30 = vand.u32 4294901760, %v9443_v20 }
 0x4f0   :  { %7627 = vmatpush3.bf16.msra.mxu1 %v10058_v40 }
 0x4f1   :  { %7629 = vmatprep.subr.bf16.mxu1 %v10059_v59 }
 0x4f4   :  { %7631 = vmatpush3.bf16.msra.mxu1 %v10059_v59 }
 0x4f5   :  { %7633 = vmatprep.subr.bf16.mxu1 %v10060_v25 }
 0x4f8   :  { %7635 = vmatpush3.bf16.msra.mxu1 %v10060_v25 }
 0x4f9   :  { %7637 = vmatprep.subr.bf16.mxu1 %v10061_v38 }
 0x4fc   :  { %7639 = vmatpush3.bf16.msra.mxu1 %v10061_v38 }
 0x4fd   :  { %7641 = vmatprep.subr.bf16.mxu1 %v10062_v21 }
 0x500   :  { %7643 = vmatpush3.bf16.msra.mxu1 %v10062_v21 }
 0x501   :  { %7645 = vmatprep.subr.bf16.mxu1 %v10063_v35 }
 0x504   :  { %7647 = vmatpush3.bf16.msra.mxu1 %v10063_v35  ;;  %v141_v35 = vld [vmem:[%s9923_s8 + $0x38] sm:$0xff] }
 0x505   :  { %7649 = vmatprep.subr.bf16.mxu1 %v8613_v42 }
 0x507   :  { %6731 = vmatmul.mubr.f32.vlgmr.msra.gmra.mrb[4].mxu1 %v9260_v8 }
 0x508   :  { %6733 = vmatprep.mubr.f32.mxu1 %v9279_v34  ;;  %7651 = vmatpush3.bf16.msra.mxu1 %v8613_v42 }
 0x509   :  { %7653 = vmatprep.subr.bf16.mxu1 %v8621_v46 }
 0x50b   :  { %6734 = vmatmul.mubr.f32.gmra.mrb[6].mxu1 %v9273_v62 }
 0x50c   :  { %7655 = vmatpush3.bf16.msra.mxu1 %v8621_v46  ;;  %6768 = vmatprep.mubr.f32.mxu1 %v9265_v7  ;;  %v9419_v7 = vand.u32 4294901760, %v3115_v26 }
 0x50d   :  { %7657 = vmatprep.subr.bf16.mxu1 %v8635_v49 }
 0x50e   :  { %v9424_v5 = vsub.f32 %v3115_v26, %v9419_v7  ;;  %v10064_v26 = vld [vmem:[#allocation25_spill] sm:$0xff] }
 0x510   :  { %7659 = vmatpush3.bf16.msra.mxu1 %v8635_v49  ;;  %v9973_v51 = vand.u32 4294901760, %v9424_v5 }
 0x511   :  { %7661 = vmatprep.subr.bf16.mxu1 %v8649_v54 }
 0x512   :  { %v3208_v19 = vsub.f32 %v9424_v5, %v9973_v51 }
 0x514   :  { %7663 = vmatpush3.bf16.msra.mxu1 %v8649_v54  ;;  %v3209_v56 = vand.u32 4294901760, %v3208_v19 }
 0x515   :  { %7665 = vmatprep.subr.bf16.mxu1 %v8659_v57 }
 0x518   :  { %7667 = vmatpush3.bf16.msra.mxu1 %v8659_v57 }
 0x519   :  { %7669 = vmatprep.subr.bf16.mxu1 %v8709_v11 }
 0x51c   :  { %7671 = vmatpush3.bf16.msra.mxu1 %v8709_v11 }
 0x51d   :  { %7673 = vmatprep.subr.bf16.mxu1 %v8715_v18 }
 0x520   :  { %7675 = vmatpush3.bf16.msra.mxu1 %v8715_v18 }
 0x521   :  { %7677 = vmatprep.subr.bf16.mxu1 %v8733_v29 }
 0x524   :  { %7679 = vmatpush3.bf16.msra.mxu1 %v8733_v29 }
 0x527   :  { %6769 = vmatmul.mubr.f32.vlgmr.msra.gmra.mrb[4].mxu1 %v9260_v8  ;;  %v3974_v8 = vsub.f32 %v9443_v20, %v9976_v30  ;;  %v136_v30 = vld [vmem:[%s9923_s8 + $0x10] sm:$0xff] }
 0x528   :  { %6771 = vmatprep.mubr.f32.mxu1 %v9279_v34 }
 0x529   :  { %v3975_v34 = vand.u32 4294901760, %v3974_v8  ;;  %v135_v8 = vld [vmem:[%s9923_s8 + $0x8] sm:$0xff] }
 0x52b   :  { %6772 = vmatmul.mubr.f32.gmra.mrb[6].mxu1 %v9273_v62  ;;  %6970 = vmatprep.mubr.f32.mxu0 %v3975_v34  ;;  %v9979_v62 = vsub.s32 2, %v8544_v37 }
 0x52c   :  { %6874 = vmatprep.mubr.f32.mxu1 %v3209_v56  ;;  %v10065_v56 = vld [vmem:[#allocation23_spill] sm:$0xff] }
 0x52d   :  { %v615_v39 = vrot.slane %v9222_v41, %v9979_v62  ;;  %v3106_v41 = vmul.f32 %v9334_v53, %v135_v8 }
 0x52f   :  { %v617_v19 = vadd.f32 %v615_v39, %v10064_v26  ;;  %v616_v3 = vadd.f32 %v615_v39, %v10065_v56  ;;  %v143_v39 = vld [vmem:[%s9923_s8 + $0x48] sm:$0xff]  ;;  %v138_v56 = vld [vmem:[%s9923_s8 + $0x20] sm:$0xff] }
 0x531   :  { %v5724_v14 = vmul.f32 -1.442695, %v617_v19  ;;  %v5723_v51 = vmul.f32 -1.442695, %v616_v3  ;;  %v3107_v19 = vmul.f32 %v9342_v44, %v136_v30  ;;  %v3902_v3 = vsel %vm3113_vm0, %v143_v39, 0  ;;  %v139_v44 = vld [vmem:[%s9923_s8 + $0x28] sm:$0xff] }
 0x532   :  { %v9480_v30 = vand.u32 4294901760, %v3902_v3 }
 0x533   :  { %8221 = vpow2.f32 %v5724_v14  ;;  %v3121_v8 = vsel %vm3113_vm0, %v3107_v19, 0 }
 0x534   :  { %8223 = vpow2.f32 %v5723_v51  ;;  %v137_v51 = vld [vmem:[%s9923_s8 + $0x18] sm:$0xff]  ;;  %v9501_v25 = vsub.f32 %v3902_v3, %v9480_v30 }
 0x535   :  { %v3108_v53 = vmul.f32 %v9340_v16, %v137_v51 }
 0x537   :  { %v3124_v16 = vsel %vm3113_vm0, %v3108_v53, 0 }
 0x53d   :  { %v8222_v4 = vpop.eup %8221 }
 0x53e   :  { %v8224_v34 = vpop.eup %8223  ;;  %v625_v37 = vadd.f32 1.0, %v8222_v4  ;;  %v3118_v4 = vsel %vm3113_vm0, %v3106_v41, 0  ;;  %v9488_v41 = vand.u32 4294901760, %v3121_v8 }
 0x53f   :  { %v624_v26 = vadd.f32 1.0, %v8224_v34  ;;  %v3109_v34 = vmul.f32 %v9348_v48, %v138_v56  ;;  %v9482_v43 = vand.u32 4294901760, %v3118_v4  ;;  %v3110_v48 = vmul.f32 %v9346_v33, %v139_v44 }
 0x540   :  { %8225 = vrcp.f32 %v625_v37  ;;  %v140_v37 = vld [vmem:[%s9923_s8 + $0x30] sm:$0xff] }
 0x541   :  { %8227 = vrcp.f32 %v624_v26  ;;  %v3127_v26 = vsel %vm3113_vm0, %v3109_v34, 0  ;;  %v3111_v21 = vmul.f32 %v9355_v58, %v140_v37  ;;  %v9504_v33 = vsub.f32 %v3118_v4, %v9482_v43 }
 0x542   :  { %v3130_v44 = vsel %vm3113_vm0, %v3110_v48, 0  ;;  %v9512_v58 = vand.u32 4294901760, %v3127_v26  ;;  %v9986_v37 = vand.u32 4294901760, %v9501_v25 }
 0x543   :  { %v3133_v3 = vsel %vm3113_vm0, %v3111_v21, 0 }
 0x5fa   :  { %v6770_v14 = vpop.f32.mrb[4].mxu1 }
 0x5fb   :  { %v2305_v62 = vpop.f32.mrb[5].mxu1  ;;  %v2328_v51 = vsub.f32 %v9254_v55, %v6770_v14  ;;  %v9506_v55 = vand.u32 4294901760, %v3124_v16  ;;  %v9509_v14 = vsub.f32 %v3121_v8, %v9488_v41  ;;  %v9987_v8 = vand.u32 4294901760, %v9504_v33 }
 0x5fc   :  { %v2327_v53 = vsub.f32 %v9257_v45, %v2305_v62  ;;  %v3112_v45 = vmul.f32 %v9352_v61, %v141_v35  ;;  %v8226_v62 = vpop.eup %8225 }
 0x5fd   :  { %v9988_v61 = vand.u32 4294901760, %v9509_v14 }
 0x5fe   :  { %v6773_v39 = vpop.f32.mrb[6].mxu1  ;;  %v3136_v21 = vsel %vm3113_vm0, %v3112_v45, 0 }
 0x5ff   :  { %v2330_v19 = vmul.f32 %v6773_v39, %v9233_v31  ;;  %v2317_v56 = vpop.f32.mrb[7].mxu1  ;;  %v8228_v39 = vpop.eup %8227 }
 0x600   :  { %v2329_v38 = vmul.f32 %v2317_v56, %v9239_v15 }
 0x601   :  { %v2332_v31 = vsub.f32 %v2328_v51, %v2330_v19  ;;  %v9523_v51 = vand.u32 4294901760, %v3130_v44 }
 0x602   :  { %v2331_v34 = vsub.f32 %v2327_v53, %v2329_v38  ;;  %v9521_v38 = vsub.f32 %v3124_v16, %v9506_v55  ;;  %v3984_v16 = vsub.f32 %v9501_v25, %v9986_v37  ;;  %v3218_v53 = vsub.f32 %v9504_v33, %v9987_v8 }
 0x603   :  { %v2334_v15 = vmul.f32 %v9227_v32, %v2332_v31  ;;  %v9527_v32 = vsub.f32 %v3127_v26, %v9512_v58  ;;  %v9540_v26 = vsub.f32 %v3130_v44, %v9523_v51 }
 0x604   :  { %v2333_v4 = vmul.f32 %v9230_v1, %v2331_v34  ;;  %v9530_v1 = vand.u32 4294901760, %v3133_v3  ;;  %v3985_v44 = vand.u32 4294901760, %v3984_v16 }
 0x605   :  { %v2336_v48 = vmul.f32 %v8226_v62, %v2334_v15  ;;  %v9542_v15 = vand.u32 4294901760, %v3136_v21  ;;  %v3257_v59 = vand.u32 4294901760, %v9540_v26 }
 0x606   :  { %v2335_v19 = vmul.f32 %v8228_v39, %v2333_v4  ;;  %v9547_v4 = vsub.f32 %v3133_v3, %v9530_v1  ;;  %v3228_v39 = vsub.f32 %v9509_v14, %v9988_v61  ;;  %v10066_v3 = vand.u32 4294901760, %v9521_v38 }
 0x607   :  { %v3142_v35 = vand.u32 4294901760, %v2336_v48  ;;  %v9561_v61 = vsub.f32 %v3136_v21, %v9542_v15 }
 0x608   :  { %v3139_v56 = vand.u32 4294901760, %v2335_v19  ;;  %v3229_v16 = vand.u32 4294901760, %v3228_v39  ;;  %v3267_v13 = vand.u32 4294901760, %v9547_v4 }
 0x609   :  { %v3294_v31 = vsub.f32 %v2336_v48, %v3142_v35 }
 0x60a   :  { %v9544_v45 = vpack.c.bf16 %v3142_v35, %v3139_v56  ;;  %v3287_v62 = vsub.f32 %v2335_v19, %v3139_v56  ;;  %v3219_v35 = vand.u32 4294901760, %v3218_v53  ;;  %v3238_v19 = vsub.f32 %v9521_v38, %v10066_v3 }
 0x60b   :  { %v3295_v37 = vand.u32 4294901760, %v3294_v31  ;;  %v10067_v53 = vand.u32 4294901760, %v9527_v32  ;;  %v3268_v39 = vsub.f32 %v9547_v4, %v3267_v13 }
 0x60c   :  { %7705 = vmatprep.subr.bf16.mxu1 %v9544_v45  ;;  %7729 = vmatprep.subr.bf16.mxu0 %v9544_v45  ;;  %v3288_v8 = vand.u32 4294901760, %v3287_v62  ;;  %v7712_v34 = vpack.c.bf16 %v3294_v31, %v3287_v62  ;;  %v3239_v21 = vand.u32 4294901760, %v3238_v19  ;;  %v10073_v19 = vand.u32 4294901760, %v9521_v38 }
 0x60d   :  { %7707 = vmatpush3.bf16.msra.mxu1 %v9544_v45  ;;  %7731 = vmatpush3.bf16.msra.mxu0 %v9544_v45  ;;  %v3296_v56 = vsub.f32 %v3294_v31, %v3295_v37  ;;  %v3248_v28 = vsub.f32 %v9527_v32, %v10067_v53 }
 0x60e   :  { %v3289_v48 = vsub.f32 %v3287_v62, %v3288_v8  ;;  %v9564_v40 = vpack.c.bf16 %v3295_v37, %v3288_v8  ;;  %v3258_v37 = vsub.f32 %v9540_v26, %v3257_v59  ;;  %v3277_v8 = vand.u32 4294901760, %v9561_v61 }
 0x60f   :  { %v3297_v23 = vand.u32 4294901760, %v3296_v56  ;;  %v3249_v62 = vand.u32 4294901760, %v3248_v28 }
 0x610   :  { %6875 = vmatmul.mubr.f32.vlgmr.msra.gmra.mrb[8].mxu1 %v3219_v35  ;;  %6971 = vmatmul.mubr.f32.vlgmr.msra.gmra.mrb[24].mxu0 %v3985_v44  ;;  %v3290_v3 = vand.u32 4294901760, %v3289_v48  ;;  %v3259_v48 = vand.u32 4294901760, %v3258_v37  ;;  %v3269_v44 = vand.u32 4294901760, %v3268_v39  ;;  %v10068_v35 = vand.u32 4294901760, %v9443_v20 }
 0x611   :  { %6877 = vmatprep.mubr.f32.mxu1 %v3229_v16  ;;  %6977 = vmatprep.mubr.f32.mxu0 %v9440_v36 }
 0x612   :  { %v7708_v31 = vpack.c.bf16 %v3297_v23, %v3290_v3  ;;  %v3278_v23 = vsub.f32 %v9561_v61, %v3277_v8 }
 0x614   :  { %6878 = vmatmul.mubr.f32.gmra.mrb[10].mxu1 %v3239_v21  ;;  %7709 = vmatprep.subr.bf16.mxu1 %v7708_v31  ;;  %v3279_v28 = vand.u32 4294901760, %v3278_v23 }
 0x615   :  { %7733 = vmatprep.subr.bf16.mxu0 %v7708_v31  ;;  %6880 = vmatprep.mubr.f32.mxu1 %v3249_v62 }
 0x616   :  { %7711 = vmatpush3.bf16.msra.mxu1 %v7708_v31  ;;  %7735 = vmatpush3.bf16.msra.mxu0 %v7708_v31 }
 0x617   :  { %7713 = vmatprep.subr.bf16.mxu1 %v7712_v34  ;;  %7737 = vmatprep.subr.bf16.mxu0 %v7712_v34 }
 0x618   :  { %6881 = vmatmul.mubr.f32.gmra.mrb[12].mxu1 %v3259_v48 }
 0x619   :  { %6978 = vmatmul.mubr.f32.vlgmr.msra.gmra.mrb[24].mxu0 %v9480_v30  ;;  %6883 = vmatprep.mubr.f32.mxu1 %v3269_v44 }
 0x61a   :  { %7739 = vmatpush3.bf16.msra.mxu0 %v7712_v34  ;;  %6984 = vmatprep.mubr.f32.mxu0 %v9443_v20  ;;  %v10071_v20 = vand.u32 4294901760, %v9504_v33 }
 0x61b   :  { %7741 = vmatprep.subr.bf16.mxu0 %v9544_v45 }
 0x61c   :  { %6884 = vmatmul.mubr.f32.gmra.mrb[14].mxu1 %v3279_v28  ;;  %v10079_v28 = vld [vmem:[#allocation29_spill] sm:$0xff] }
 0x61d   :  { %6890 = vmatprep.mubr.f32.mxu1 %v9419_v7 }
 0x620   :  { %6891 = vmatmul.mubr.f32.vlgmr.msra.gmra.mrb[8].mxu1 %v9482_v43 }
 0x621   :  { %7715 = vmatpush3.bf16.msra.mxu1 %v7712_v34  ;;  %6985 = vmatmul.mubr.f32.vlgmr.msra.gmra.mrb[24].mxu0 %v9501_v25  ;;  %v10069_v34 = vand.u32 4294901760, %v9501_v25  ;;  %v10070_v25 = vand.u32 4294901760, %v9424_v5 }
 0x622   :  { %7743 = vmatpush3.bf16.msra.mxu0 %v9544_v45  ;;  %6893 = vmatprep.mubr.f32.mxu1 %v9488_v41 }
 0x623   :  { %7717 = vmatprep.subr.bf16.mxu1 %v9544_v45  ;;  %7745 = vmatprep.subr.bf16.mxu0 %v9564_v40 }
 0x624   :  { %6894 = vmatmul.mubr.f32.gmra.mrb[10].mxu1 %v9506_v55  ;;  %6991 = vmatprep.mubr.f32.mxu0 %v10068_v35 }
 0x625   :  { %6896 = vmatprep.mubr.f32.mxu1 %v9512_v58 }
 0x628   :  { %6897 = vmatmul.mubr.f32.gmra.mrb[12].mxu1 %v9523_v51 }
 0x629   :  { %6992 = vmatmul.mubr.f32.vlgmr.msra.gmra.mrb[24].mxu0 %v10069_v34  ;;  %6899 = vmatprep.mubr.f32.mxu1 %v9530_v1  ;;  %v10080_v34 = vld [vmem:[#allocation27_spill] sm:$0xff] }
 0x62a   :  { %7747 = vmatpush3.bf16.msra.mxu0 %v9564_v40  ;;  %6998 = vmatprep.mubr.f32.mxu0 %v9440_v36 }
 0x62b   :  { %7749 = vmatprep.subr.bf16.mxu0 %v9544_v45 }
 0x62c   :  { %6900 = vmatmul.mubr.f32.gmra.mrb[14].mxu1 %v9542_v15 }
 0x62d   :  { %6906 = vmatprep.mubr.f32.mxu1 %v9424_v5 }
 0x630   :  { %6907 = vmatmul.mubr.f32.vlgmr.msra.gmra.mrb[8].mxu1 %v9504_v33  ;;  %v10076_v33 = vld [vmem:[#allocation39_spill] sm:$0xff] }
 0x631   :  { %7719 = vmatpush3.bf16.msra.mxu1 %v9544_v45  ;;  %6999 = vmatmul.mubr.f32.vlgmr.msra.gmra.mrb[24].mxu0 %v9480_v30 }
 0x632   :  { %7751 = vmatpush3.bf16.msra.mxu0 %v9544_v45  ;;  %6909 = vmatprep.mubr.f32.mxu1 %v9509_v14 }
 0x633   :  { %7721 = vmatprep.subr.bf16.mxu1 %v9564_v40  ;;  %7005 = vmatprep.mubr.f32.mxu0 %v9440_v36  ;;  %v10072_v36 = vand.u32 4294901760, %v9509_v14 }
 0x634   :  { %6910 = vmatmul.mubr.f32.gmra.mrb[10].mxu1 %v9521_v38 }
 0x635   :  { %6912 = vmatprep.mubr.f32.mxu1 %v9527_v32 }
 0x638   :  { %6913 = vmatmul.mubr.f32.gmra.mrb[12].mxu1 %v9540_v26 }
 0x639   :  { %6915 = vmatprep.mubr.f32.mxu1 %v9547_v4  ;;  %7006 = vmatmul.mubr.f32.vlgmr.msra.gmra.mrb[24].mxu0 %v9480_v30  ;;  %v10074_v30 = vmov %v10067_v53  ;;  %v10078_v53 = vld [vmem:[#allocation41_spill] sm:$0xff] }
 0x63c   :  { %6916 = vmatmul.mubr.f32.gmra.mrb[14].mxu1 %v9561_v61  ;;  %v10077_v61 = vld [vmem:[#allocation40_spill] sm:$0xff] }
 0x63d   :  { %6922 = vmatprep.mubr.f32.mxu1 %v10070_v25 }
 0x640   :  { %6923 = vmatmul.mubr.f32.vlgmr.msra.gmra.mrb[8].mxu1 %v10071_v20 }
 0x641   :  { %7723 = vmatpush3.bf16.msra.mxu1 %v9564_v40  ;;  %6925 = vmatprep.mubr.f32.mxu1 %v10072_v36 }
 0x642   :  { %7725 = vmatprep.subr.bf16.mxu1 %v9544_v45 }
 0x644   :  { %6926 = vmatmul.mubr.f32.gmra.mrb[10].mxu1 %v10073_v19 }
 0x645   :  { %6928 = vmatprep.mubr.f32.mxu1 %v10074_v30 }
 0x648   :  { %6929 = vmatmul.mubr.f32.gmra.mrb[12].mxu1 %v3257_v59  ;;  %v8246_v59 = vld [vmem:[#allocation10 + $0x80] sm:$0xff] }
 0x649   :  { %6931 = vmatprep.mubr.f32.mxu1 %v3267_v13 }
 0x64c   :  { %6932 = vmatmul.mubr.f32.gmra.mrb[14].mxu1 %v3277_v8 }
 0x64d   :  { %6938 = vmatprep.mubr.f32.mxu1 %v9419_v7 }
 0x650   :  { %6939 = vmatmul.mubr.f32.vlgmr.msra.gmra.mrb[8].mxu1 %v9482_v43 }
 0x651   :  { %7727 = vmatpush3.bf16.msra.mxu1 %v9544_v45  ;;  %6941 = vmatprep.mubr.f32.mxu1 %v9488_v41 }
 0x652   :  { %7753 = vmatprep.subr.bf16.mxu1 %v8613_v42 }
 0x654   :  { %6942 = vmatmul.mubr.f32.gmra.mrb[10].mxu1 %v9506_v55 }
 0x655   :  { %6944 = vmatprep.mubr.f32.mxu1 %v9512_v58 }
 0x658   :  { %6945 = vmatmul.mubr.f32.gmra.mrb[12].mxu1 %v9523_v51 }
 0x659   :  { %6947 = vmatprep.mubr.f32.mxu1 %v9530_v1 }
 0x65c   :  { %6948 = vmatmul.mubr.f32.gmra.mrb[14].mxu1 %v9542_v15 }
 0x65d   :  { %6954 = vmatprep.mubr.f32.mxu1 %v9419_v7  ;;  %v10075_v7 = vld [vmem:[#allocation17_spill] sm:$0xff] }
 0x65e   :  { %v4409_v5 = vrot.slane %v8246_v59, %v10075_v7  ;;  %v4423_v32 = vrot.slane %v10077_v61, %v10075_v7  ;;  %v4431_v3 = vrot.slane %v10078_v53, %v10075_v7 }
 0x660   :  { %6955 = vmatmul.mubr.f32.vlgmr.msra.gmra.mrb[8].mxu1 %v9482_v43 }
 0x661   :  { %6957 = vmatprep.mubr.f32.mxu1 %v9488_v41  ;;  %7755 = vmatpush3.bf16.msra.mxu1 %v8613_v42 }
 0x662   :  { %7757 = vmatprep.subr.bf16.mxu1 %v8621_v46 }
 0x664   :  { %6958 = vmatmul.mubr.f32.gmra.mrb[10].mxu1 %v9506_v55  ;;  %v4415_v55 = vrot.slane %v10076_v33, %v10075_v7 }
 0x665   :  { %6960 = vmatprep.mubr.f32.mxu1 %v9512_v58  ;;  %7759 = vmatpush3.bf16.msra.mxu1 %v8621_v46 }
 0x666   :  { %7761 = vmatprep.subr.bf16.mxu1 %v8635_v49 }
 0x668   :  { %6961 = vmatmul.mubr.f32.gmra.mrb[12].mxu1 %v9523_v51 }
 0x669   :  { %6963 = vmatprep.mubr.f32.mxu1 %v9530_v1  ;;  %7763 = vmatpush3.bf16.msra.mxu1 %v8635_v49 }
 0x66a   :  { %7765 = vmatprep.subr.bf16.mxu1 %v8649_v54 }
 0x66c   :  { %6964 = vmatmul.mubr.f32.gmra.mrb[14].mxu1 %v9542_v15 }
 0x66d   :  { %7767 = vmatpush3.bf16.msra.mxu1 %v8649_v54 }
 0x66e   :  { %7769 = vmatprep.subr.bf16.mxu1 %v8659_v57 }
 0x671   :  { %7771 = vmatpush3.bf16.msra.mxu1 %v8659_v57 }
 0x672   :  { %7773 = vmatprep.subr.bf16.mxu1 %v8709_v11 }
 0x675   :  { %7775 = vmatpush3.bf16.msra.mxu1 %v8709_v11 }
 0x676   :  { %7777 = vmatprep.subr.bf16.mxu1 %v8715_v18 }
 0x679   :  { %7779 = vmatpush3.bf16.msra.mxu1 %v8715_v18 }
 0x67a   :  { %7781 = vmatprep.subr.bf16.mxu1 %v8733_v29 }
 0x67d   :  { %7783 = vmatpush3.bf16.msra.mxu1 %v8733_v29 }
 0x67e   :  { %7785 = vmatprep.subr.bf16.mxu1 %v8745_v60 }
 0x70c   :  { %v7007_v13 = vpop.f32.mrb[24].mxu0 }
 0x70d   :  { %v4396_v43 = vpop.f32.mrb[25].mxu0 }
 0x733   :  { %v6956_v40 = vpop.f32.mrb[8].mxu1 }
 0x734   :  { %v3852_v41 = vpop.f32.mrb[9].mxu1  ;;  %v4411_v58 = vmul.f32 %v6956_v40, %v4409_v5 }
 0x735   :  { %v4410_v1 = vmul.f32 %v4409_v5, %v3852_v41 }
 0x737   :  { %v6959_v14 = vpop.f32.mrb[10].mxu1 }
 0x738   :  { %v4417_v38 = vmul.f32 %v6959_v14, %v4415_v55  ;;  %v3864_v51 = vpop.f32.mrb[11].mxu1 }
 0x739   :  { %v4416_v26 = vmul.f32 %v4415_v55, %v3864_v51 }
 0x73a   :  { %v4419_v15 = vadd.f32 %v4417_v38, %v4411_v58 }
 0x73b   :  { %v4418_v45 = vadd.f32 %v4416_v26, %v4410_v1  ;;  %v6962_v4 = vpop.f32.mrb[12].mxu1 }
 0x73c   :  { %v4425_v56 = vmul.f32 %v6962_v4, %v4423_v32  ;;  %v3876_v16 = vpop.f32.mrb[13].mxu1 }
 0x73d   :  { %v4424_v21 = vmul.f32 %v4423_v32, %v3876_v16 }
 0x73e   :  { %v4427_v31 = vadd.f32 %v4425_v56, %v4419_v15 }
 0x73f   :  { %v4426_v37 = vadd.f32 %v4424_v21, %v4418_v45  ;;  %v6965_v8 = vpop.f32.mrb[14].mxu1 }
 0x740   :  { %v4433_v62 = vmul.f32 %v6965_v8, %v4431_v3  ;;  %v3888_v39 = vpop.f32.mrb[15].mxu1 }
 0x741   :  { %v4432_v48 = vmul.f32 %v4431_v3, %v3888_v39 }
 0x742   :  { %v4435_v23 = vadd.f32 %v4433_v62, %v4427_v31  ;;  %v10090_v31 = vld [vmem:[#allocation30_spill] sm:$0xff]  ;;  %v10091_v62 = vld [vmem:[#allocation28_spill] sm:$0xff] }
 0x743   :  { %v4434_v44 = vadd.f32 %v4432_v48, %v4426_v37 }
 0x744   :  { %v4437_v35 = vsub.f32 %v10079_v28, %v4435_v23  ;;  %v10092_v23 = vld [vmem:[#allocation19_spill] sm:$0xff]  ;;  %v10093_v28 = vld [vmem:[#allocation18_spill] sm:$0xff] }
 0x745   :  { %v4436_v25 = vsub.f32 %v10080_v34, %v4434_v44 }
 0x746   :  { %v9674_v20 = vsub.f32 %v4437_v35, %v7007_v13 }
 0x747   :  { %v9676_v36 = vsub.f32 %v4436_v25, %v4396_v43 }
 0x748   :  { %v9679_v19 = vand.u32 4294901760, %v9674_v20  ;;  %v4441_v30 = vmul.f32 %v9674_v20, %v9674_v20 }
 0x749   :  { %v9684_v40 = vand.u32 4294901760, %v9676_v36  ;;  %v4440_v59 = vmul.f32 %v9676_v36, %v9676_v36 }
 0x74a   :  { %v9690_v5 = vsub.f32 %v9674_v20, %v9679_v19  ;;  %v9692_v13 = vand.u32 4294901760, %v4441_v30 }
 0x74b   :  { %v9696_v43 = vsub.f32 %v9676_v36, %v9684_v40  ;;  %v9698_v41 = vand.u32 4294901760, %v4440_v59 }
 0x74c   :  { %v4535_v33 = vand.u32 4294901760, %v9690_v5  ;;  %v9702_v55 = vsub.f32 %v4441_v30, %v9692_v13  ;;  %v8193_v30 = vld [vmem:[#allocation5 + $0x20] sm:$0xff]  }
 0x74d   :  { %v4525_v14 = vand.u32 4294901760, %v9696_v43  ;;  %v9706_v58 = vsub.f32 %v4440_v59, %v9698_v41  ;;  %v8195_v59 = vld [vmem:[#allocation5 + $0x30] sm:$0xff]  }
 0x74e   :  { %v4536_v38 = vsub.f32 %v9690_v5, %v4535_v33  ;;  %v4555_v51 = vand.u32 4294901760, %v9702_v55 }
 0x74f   :  { %v4526_v61 = vsub.f32 %v9696_v43, %v4525_v14  ;;  %v4545_v32 = vand.u32 4294901760, %v9706_v58 }
 0x750   :  { %v4537_v15 = vand.u32 4294901760, %v4536_v38  ;;  %v4556_v45 = vsub.f32 %v9702_v55, %v4555_v51 }
 0x751   :  { %v4527_v1 = vand.u32 4294901760, %v4526_v61  ;;  %v4546_v26 = vsub.f32 %v9706_v58, %v4545_v32 }
 0x752   :  { %v4557_v56 = vand.u32 4294901760, %v4556_v45  ;;  %v10094_v45 = vld [vmem:[#allocation16_spill] sm:$0xff] }
 0x753   :  { %7040 = vmatprep.mubr.f32.mxu1 %v4527_v1  ;;  %v4547_v4 = vand.u32 4294901760, %v4546_v26 }
 0x754   :  { %7041 = vmatmul.mubr.f32.vlgmr.msra.gmra.mrb[16].mxu1 %v4537_v15 }
 0x755   :  { %7787 = vmatpush3.bf16.msra.mxu1 %v8745_v60  ;;  %7043 = vmatprep.mubr.f32.mxu1 %v4547_v4  ;;  %v10083_v60 = vld [vmem:[#allocation32_spill] sm:$0xff]  ;;  %v5258_v4 = vsub.s32 6, %v10094_v45 }
 0x756   :  { %7789 = vmatprep.subr.bf16.mxu1 %v8911_v17 }
 0x758   :  { %7044 = vmatmul.mubr.f32.gmra.mrb[18].mxu1 %v4557_v56  ;;  %v5264_v56 = vsub.s32 7, %v10094_v45 }
 0x759   :  { %7791 = vmatpush3.bf16.msra.mxu1 %v8911_v17  ;;  %7078 = vmatprep.mubr.f32.mxu1 %v9684_v40  ;;  %v10081_v17 = vld [vmem:[#allocation26_spill] sm:$0xff] }
 0x75a   :  { %7793 = vmatprep.subr.bf16.mxu1 %v8932_v10 }
 0x75d   :  { %7795 = vmatpush3.bf16.msra.mxu1 %v8932_v10  ;;  %v10089_v10 = vld [vmem:[#allocation38_spill] sm:$0xff] }
 0x75e   :  { %7797 = vmatprep.subr.bf16.mxu1 %v8944_v2 }
 0x761   :  { %7799 = vmatpush3.bf16.msra.mxu1 %v8944_v2 }
 0x762   :  { %7801 = vmatprep.subr.bf16.mxu1 %v8948_v52 }
 0x765   :  { %7803 = vmatpush3.bf16.msra.mxu1 %v8948_v52 }
 0x766   :  { %7805 = vmatprep.subr.bf16.mxu1 %v8767_v27 }
 0x769   :  { %7807 = vmatpush3.bf16.msra.mxu1 %v8767_v27  ;;  %v10082_v27 = vld [vmem:[#allocation31_spill] sm:$0xff] }
 0x76a   :  { %7809 = vmatprep.subr.bf16.mxu1 %v8787_v22 }
 0x76d   :  { %7811 = vmatpush3.bf16.msra.mxu1 %v8787_v22  ;;  %v10084_v22 = vld [vmem:[#allocation33_spill] sm:$0xff] }
 0x76e   :  { %7813 = vmatprep.subr.bf16.mxu1 %v8789_v6 }
 0x771   :  { %7815 = vmatpush3.bf16.msra.mxu1 %v8789_v6  ;;  %v10085_v6 = vld [vmem:[#allocation34_spill] sm:$0xff] }
 0x772   :  { %7817 = vmatprep.subr.bf16.mxu1 %v8793_v0 }
 0x774   :  { %7079 = vmatmul.mubr.f32.vlgmr.msra.gmra.mrb[16].mxu1 %v9679_v19 }
 0x775   :  { %7081 = vmatprep.mubr.f32.mxu1 %v9698_v41  ;;  %7819 = vmatpush3.bf16.msra.mxu1 %v8793_v0  ;;  %v10086_v0 = vld [vmem:[#allocation35_spill] sm:$0xff] }
 0x776   :  { %7821 = vmatprep.subr.bf16.mxu1 %v8962_v24 }
 0x778   :  { %7082 = vmatmul.mubr.f32.gmra.mrb[18].mxu1 %v9692_v13 }
 0x779   :  { %7823 = vmatpush3.bf16.msra.mxu1 %v8962_v24  ;;  %7116 = vmatprep.mubr.f32.mxu1 %v9696_v43 }
 0x77a   :  { %7825 = vmatprep.subr.bf16.mxu1 %v8970_v47 }
 0x77d   :  { %7827 = vmatpush3.bf16.msra.mxu1 %v8970_v47 }
 0x77e   :  { %7829 = vmatprep.subr.bf16.mxu1 %v8978_v63 }
 0x781   :  { %7831 = vmatpush3.bf16.msra.mxu1 %v8978_v63 }
 0x782   :  { %7833 = vmatprep.subr.bf16.mxu1 %v8984_v50 }
 0x785   :  { %7835 = vmatpush3.bf16.msra.mxu1 %v8984_v50 }
 0x786   :  { %7837 = vmatprep.subr.bf16.mxu1 %v8797_v9 }
 0x789   :  { %7839 = vmatpush3.bf16.msra.mxu1 %v8797_v9  ;;  %v10087_v9 = vld [vmem:[#allocation36_spill] sm:$0xff] }
 0x78a   :  { %7841 = vmatprep.subr.bf16.mxu1 %v8801_v12 }
 0x78d   :  { %7843 = vmatpush3.bf16.msra.mxu1 %v8801_v12  ;;  %v10088_v12 = vld [vmem:[#allocation37_spill] sm:$0xff] }
 0x78e   :  { %7845 = vmatprep.subr.bf16.mxu1 %v10081_v17 }
 0x791   :  { %7847 = vmatpush3.bf16.msra.mxu1 %v10081_v17 }
 0x792   :  { %7849 = vmatprep.subr.bf16.mxu1 %v8613_v42 }
 0x794   :  { %7117 = vmatmul.mubr.f32.vlgmr.msra.gmra.mrb[16].mxu1 %v9690_v5  ;;  %v8196_v5 = vld [vmem:[#allocation5 + $0x38] sm:$0xff]  }
 0x795   :  { %7119 = vmatprep.mubr.f32.mxu1 %v9706_v58  ;;  %7851 = vmatpush3.bf16.msra.mxu1 %v8613_v42 }
 0x796   :  { %7853 = vmatprep.subr.bf16.mxu1 %v8621_v46 }
 0x798   :  { %7120 = vmatmul.mubr.f32.gmra.mrb[18].mxu1 %v9702_v55 }
 0x799   :  { %7855 = vmatpush3.bf16.msra.mxu1 %v8621_v46  ;;  %7154 = vmatprep.mubr.f32.mxu1 %v4525_v14 }
 0x79a   :  { %7857 = vmatprep.subr.bf16.mxu1 %v8635_v49 }
 0x79d   :  { %7859 = vmatpush3.bf16.msra.mxu1 %v8635_v49 }
 0x79e   :  { %7861 = vmatprep.subr.bf16.mxu1 %v8649_v54 }
 0x7a1   :  { %7863 = vmatpush3.bf16.msra.mxu1 %v8649_v54 }
 0x7a2   :  { %7865 = vmatprep.subr.bf16.mxu1 %v8659_v57 }
 0x7a5   :  { %7867 = vmatpush3.bf16.msra.mxu1 %v8659_v57 }
 0x7a6   :  { %7869 = vmatprep.subr.bf16.mxu1 %v8709_v11 }
 0x7a9   :  { %7871 = vmatpush3.bf16.msra.mxu1 %v8709_v11 }
 0x7aa   :  { %7873 = vmatprep.subr.bf16.mxu1 %v8715_v18 }
 0x7ad   :  { %7875 = vmatpush3.bf16.msra.mxu1 %v8715_v18 }
 0x7ae   :  { %7877 = vmatprep.subr.bf16.mxu1 %v8733_v29 }
 0x7b1   :  { %7879 = vmatpush3.bf16.msra.mxu1 %v8733_v29 }
 0x7b2   :  { %7881 = vmatprep.subr.bf16.mxu1 %v10082_v27 }
 0x7b4   :  { %7155 = vmatmul.mubr.f32.vlgmr.msra.gmra.mrb[16].mxu1 %v4535_v33 }
 0x7b5   :  { %7157 = vmatprep.mubr.f32.mxu1 %v4545_v32  ;;  %7883 = vmatpush3.bf16.msra.mxu1 %v10082_v27  ;;  %v8247_v27 = vld [vmem:[%s9921_s6] sm:$0xff] }
 0x7b6   :  { %7885 = vmatprep.subr.bf16.mxu1 %v10083_v60 }
 0x7b8   :  { %7158 = vmatmul.mubr.f32.gmra.mrb[18].mxu1 %v4555_v51 }
 0x7b9   :  { %7887 = vmatpush3.bf16.msra.mxu1 %v10083_v60  ;;  %7192 = vmatprep.mubr.f32.mxu1 %v9684_v40  ;;  %v5259_v60 = vrot.slane %v8247_v27, %v5258_v4 }
 0x7ba   :  { %7889 = vmatprep.subr.bf16.mxu1 %v10084_v22 }
 0x7bd   :  { %7891 = vmatpush3.bf16.msra.mxu1 %v10084_v22 }
 0x7be   :  { %7893 = vmatprep.subr.bf16.mxu1 %v10085_v6 }
 0x7c1   :  { %7895 = vmatpush3.bf16.msra.mxu1 %v10085_v6 }
 0x7c2   :  { %7897 = vmatprep.subr.bf16.mxu1 %v10086_v0 }
 0x7c5   :  { %7899 = vmatpush3.bf16.msra.mxu1 %v10086_v0 }
 0x7c6   :  { %7901 = vmatprep.subr.bf16.mxu1 %v10087_v9 }
 0x7c9   :  { %7903 = vmatpush3.bf16.msra.mxu1 %v10087_v9 }
 0x7ca   :  { %7905 = vmatprep.subr.bf16.mxu1 %v10088_v12 }
 0x7cd   :  { %7907 = vmatpush3.bf16.msra.mxu1 %v10088_v12  ;;  %v5265_v12 = vrot.slane %v8247_v27, %v5264_v56  ;;  %v8207_v27 = vld [vmem:[#allocation8 + $0x10] sm:$0xff]  }
 0x7ce   :  { %7909 = vmatprep.subr.bf16.mxu1 %v10089_v10 }
 0x7d1   :  { %7911 = vmatpush3.bf16.msra.mxu1 %v10089_v10 }
 0x7d2   :  { %7913 = vmatprep.subr.bf16.mxu1 %v8613_v42 }
 0x7d4   :  { %7193 = vmatmul.mubr.f32.vlgmr.msra.gmra.mrb[16].mxu1 %v9679_v19 }
 0x7d5   :  { %7195 = vmatprep.mubr.f32.mxu1 %v9698_v41  ;;  %7915 = vmatpush3.bf16.msra.mxu1 %v8613_v42  ;;  %v8189_v42 = vld [vmem:[#allocation5] sm:$0xff]  }
 0x7d6   :  { %7917 = vmatprep.subr.bf16.mxu1 %v8621_v46 }
 0x7d8   :  { %7196 = vmatmul.mubr.f32.gmra.mrb[18].mxu1 %v9692_v13 }
 0x7d9   :  { %7919 = vmatpush3.bf16.msra.mxu1 %v8621_v46  ;;  %7230 = vmatprep.mubr.f32.mxu1 %v9684_v40  ;;  %v8402_v46 = vmov 0.0   ;;  %v8194_v40 = vld [vmem:[#allocation5 + $0x28] sm:$0xff]  }
 0x7da   :  { %7921 = vmatprep.subr.bf16.mxu1 %v8635_v49  ;;  %7236 = vmatprep.subr.bf16.mxu0 %v8402_v46 }
 0x7db   :  { %7237 = vmatpush3.bf16.msra.mxu0 %v8189_v42  ;;  %7252 = vmatprep.mubr.msk.bf16.mxu0 %vm8403_vm1, %v8402_v46 }
 0x7dc   :  { %7238 = vmatprep.subr.bf16.mxu0 %v8402_v46 }
 0x7dd   :  { %7923 = vmatpush3.bf16.msra.mxu1 %v8635_v49 }
 0x7de   :  { %7925 = vmatprep.subr.bf16.mxu1 %v8649_v54 }
 0x7e1   :  { %7927 = vmatpush3.bf16.msra.mxu1 %v8649_v54 }
 0x7e2   :  { %7929 = vmatprep.subr.bf16.mxu1 %v8659_v57 }
 0x7e5   :  { %7931 = vmatpush3.bf16.msra.mxu1 %v8659_v57 }
 0x7e6   :  { %7933 = vmatprep.subr.bf16.mxu1 %v8709_v11 }
 0x7e9   :  { %7935 = vmatpush3.bf16.msra.mxu1 %v8709_v11 }
 0x7ea   :  { %7937 = vmatprep.subr.bf16.mxu1 %v8715_v18 }
 0x7ed   :  { %7939 = vmatpush3.bf16.msra.mxu1 %v8715_v18 }
 0x7ee   :  { %7941 = vmatprep.subr.bf16.mxu1 %v8733_v29 }
 0x7f1   :  { %7943 = vmatpush3.bf16.msra.mxu1 %v8733_v29 }
 0x7f4   :  { %7231 = vmatmul.mubr.f32.vlgmr.msra.gmra.mrb[16].mxu1 %v9679_v19  ;;  %v8192_v19 = vld [vmem:[#allocation5 + $0x18] sm:$0xff]  }
 0x7f5   :  { %7233 = vmatprep.mubr.f32.mxu1 %v9698_v41 }
 0x7f8   :  { %7234 = vmatmul.mubr.f32.gmra.mrb[18].mxu1 %v9692_v13 }
 0x8c7   :  { %v7232_v49 = vpop.f32.mrb[16].mxu1 }
 0x8c8   :  { %v5190_v54 = vpop.f32.mrb[17].mxu1  ;;  %v5215_v57 = vmul.f32 %v7232_v49, %v7232_v49  ;;  %v5213_v63 = vsub.f32 %v9674_v20, %v7232_v49  ;;  %v8190_v20 = vld [vmem:[#allocation5 + $0x8] sm:$0xff]  }
 0x8c9   :  { %v5214_v11 = vmul.f32 %v5190_v54, %v5190_v54  ;;  %v5212_v16 = vsub.f32 %v9676_v36, %v5190_v54  ;;  %7239 = vmatpush3.bf16.msra.mxu0 %v8190_v20  ;;  %v8191_v36 = vld [vmem:[#allocation5 + $0x10] sm:$0xff]  }
 0x8ca   :  { %7240 = vmatprep.subr.bf16.mxu0 %v8402_v46 }
 0x8cb   :  { %v7235_v18 = vpop.f32.mrb[18].mxu1 }
 0x8cc   :  { %v5217_v2 = vsub.f32 %v7235_v18, %v5215_v57  ;;  %v5202_v29 = vpop.f32.mrb[19].mxu1 }
 0x8cd   :  { %v5216_v52 = vsub.f32 %v5202_v29, %v5214_v11  ;;  %7241 = vmatpush3.bf16.msra.mxu0 %v8191_v36 }
 0x8ce   :  { %v5219_v24 = vadd.f32 1e-06, %v5217_v2  ;;  %7242 = vmatprep.subr.bf16.mxu0 %v8402_v46  ;;  %v8248_v2 = vld [vmem:[%s9915_s0] sm:$0xff] }
 0x8cf   :  { %v5218_v47 = vadd.f32 1e-06, %v5216_v52 }
 0x8d0   :  { %8229 = vrsqrt.f32 %v5219_v24 }
 0x8d1   :  { %8231 = vrsqrt.f32 %v5218_v47  ;;  %7243 = vmatpush3.bf16.msra.mxu0 %v8192_v19  ;;  %v8249_v47 = vld [vmem:[%s9915_s0 + $0x8] sm:$0xff] }
 0x8d2   :  { %7244 = vmatprep.subr.bf16.mxu0 %v8402_v46 }
 0x8d5   :  { %7245 = vmatpush3.bf16.msra.mxu0 %v8193_v30 }
 0x8d6   :  { %7246 = vmatprep.subr.bf16.mxu0 %v8402_v46 }
 0x8d9   :  { %7247 = vmatpush3.bf16.msra.mxu0 %v8194_v40 }
 0x8da   :  { %v8230_v50 = vpop.eup %8229  ;;  %7248 = vmatprep.subr.bf16.mxu0 %v8402_v46 }
 0x8db   :  { %v8232_v53 = vpop.eup %8231  ;;  %v5223_v3 = vmul.f32 %v8230_v50, %v5213_v63 }
 0x8dc   :  { %v5222_v21 = vmul.f32 %v8232_v53, %v5212_v16 }
 0x8dd   :  { %v5225_v37 = vmul.f32 %v5223_v3, %v10090_v31  ;;  %7249 = vmatpush3.bf16.msra.mxu0 %v8195_v59  ;;  %v8197_v3 = vld [vmem:[#allocation7] sm:$0xff]  }
 0x8de   :  { %v5224_v8 = vmul.f32 %v5222_v21, %v10090_v31  ;;  %7250 = vmatprep.subr.bf16.mxu0 %v8402_v46  ;;  %v8198_v21 = vld [vmem:[#allocation7 + $0x8] sm:$0xff]   ;;  %v8199_v31 = vld [vmem:[#allocation7 + $0x10] sm:$0xff]  }
 0x8df   :  { %v5227_v39 = vadd.f32 %v5225_v37, %v10091_v62  ;;  %v8200_v37 = vld [vmem:[#allocation7 + $0x18] sm:$0xff]  }
 0x8e0   :  { %v5226_v48 = vadd.f32 %v5224_v8, %v10091_v62  ;;  %v8201_v8 = vld [vmem:[#allocation7 + $0x20] sm:$0xff]   ;;  %v8202_v62 = vld [vmem:[#allocation7 + $0x28] sm:$0xff]  }
 0x8e1   :  { %v5229_v44 = vadd.f32 %v5227_v39, %v10092_v23  ;;  %7251 = vmatpush3.bf16.msra.mxu0 %v8196_v5  ;;  %v8203_v39 = vld [vmem:[#allocation7 + $0x30] sm:$0xff]  }
 0x8e2   :  { %v5228_v35 = vadd.f32 %v5226_v48, %v10093_v28  ;;  %7256 = vmatprep.subr.bf16.mxu0 %v8402_v46  ;;  %v8204_v48 = vld [vmem:[#allocation7 + $0x38] sm:$0xff]  }
 0x8e3   :  { %5232 = vadd.xlane.f32.xlu1 %v5229_v44  ;;  %v5237_v34 = vmul.f32 %v5229_v44, %v5229_v44 }
 0x8e4   :  { %5230 = vadd.xlane.f32.xlu0 %v5228_v35  ;;  %v5236_v25 = vmul.f32 %v5228_v35, %v5228_v35 }
 0x8e7   :  { %5240 = vadd.xlane.f32.xlu1 %v5237_v34 }
 0x8e8   :  { %5238 = vadd.xlane.f32.xlu0 %v5236_v25 }
 0x970   :  { %v5233_v13 = vpop.xlane.xlu1 %5232 }
 0x971   :  { %v5235_v43 = vmul.f32 0.03125, %v5233_v13  ;;  %v5231_v41 = vpop.xlane.xlu0 %5230 }
 0x972   :  { %v5234_v33 = vmul.f32 0.03125, %v5231_v41 }
 0x973   :  { %v5245_v14 = vmul.f32 %v5235_v43, %v5235_v43  ;;  %v5249_v17 = vsub.f32 %v5229_v44, %v5235_v43  ;;  %v9874_v43 = vld [vmem:[%s9921_s6 + $0x8] sm:$0xf]  ;;  %s8404_s6 = smov [#allocation11]  }
 0x974   :  { %v5241_v55 = vpop.xlane.xlu1 %5240  ;;  %v5244_v51 = vmul.f32 %v5234_v33, %v5234_v33  ;;  %v5248_v6 = vsub.f32 %v5228_v35, %v5234_v33  ;;  %v5405_v33 = vrot.slane %v9874_v43, %v10075_v7  ;;  %v8205_v7 = vld [vmem:[#allocation8] sm:$0xff]   ;;  %s5661_s30 = sshll.u32 %s8404_s6, 4  ;;  %s5662_s30 = int_to_ptr.vmem [resolvable:$true] %s5661_s30 }
 0x975   :  { %v5243_v58 = vmul.f32 0.03125, %v5241_v55  ;;  %v5239_v38 = vpop.xlane.xlu0 %5238  ;;  %s8360_s11 = scalar_lea.vmem %s5662_s30, 256  ;;  %p8365_p13 = scmp.lt.s32.totalorder %s5662_s30, %s5662_s30 }
 0x976   :  { %v5242_v61 = vmul.f32 0.03125, %v5239_v38  ;;  %p8361_p12 = scmp.ne.s32.totalorder %s5662_s30, %s8360_s11  ;;  %p8366_p0 = scmp.lt.s32.totalorder %s8360_s11, %s8360_s11 }
 0x977   :  { %v5247_v32 = vsub.f32 %v5243_v58, %v5245_v14 }
 0x978   :  { %v5246_v1 = vsub.f32 %v5242_v61, %v5244_v51  ;;  %p8367_p1 = por %p8366_p0, %p8365_p13 }
 0x979   :  { %v5251_v26 = vadd.f32 1e-06, %v5247_v32  ;;  %v10095_v32 = vsub.s32 1, %v10094_v45 }
 0x97a   :  { %v5250_v15 = vadd.f32 1e-06, %v5246_v1  ;;  %p8368_p2 = pnand %p8367_p1, %p8361_p12 }
 0x97b   :  { %8233 = vrsqrt.f32 %v5251_v26  ;;  %v5411_v1 = vrot.slane %v9874_v43, %v10095_v32 }
 0x97c   :  { %8235 = vrsqrt.f32 %v5250_v15 }
 0x985   :  { %v8234_v22 = vpop.eup %8233 }
 0x986   :  { %v8236_v0 = vpop.eup %8235  ;;  %v5255_v9 = vmul.f32 %v8234_v22, %v5249_v17  ;;  %v8206_v17 = vld [vmem:[#allocation8 + $0x8] sm:$0xff]   ;;  %v8209_v22 = vld [vmem:[#allocation8 + $0x20] sm:$0xff]  }
 0x987   :  { %v5254_v10 = vmul.f32 %v8236_v0, %v5248_v6  ;;  %v8210_v6 = vld [vmem:[#allocation8 + $0x28] sm:$0xff]   ;;  %v8211_v0 = vld [vmem:[#allocation8 + $0x30] sm:$0xff]  }
 0x988   :  { %v5261_v42 = vmul.f32 %v5259_v60, %v5255_v9  ;;  %v8212_v9 = vld [vmem:[#allocation8 + $0x38] sm:$0xff]  }
 0x989   :  { %v5260_v49 = vmul.f32 %v5259_v60, %v5254_v10  ;;  %v8208_v60 = vld [vmem:[#allocation8 + $0x18] sm:$0xff]  }
 0x98a   :  { %v5267_v54 = vadd.f32 %v5265_v12, %v5261_v42 }
 0x98b   :  { %v5266_v57 = vadd.f32 %v5265_v12, %v5260_v49  ;;  %v10096_v12 = vsub.s32 3, %v10094_v45 }
 0x98d   :  { %v5268_v11 = vpack.c.bf16 %v5267_v54, %v5266_v57  ;;  %v5434_v10 = vrot.slane %v9874_v43, %v10096_v12 }
 0x98f   :  { %7253 = vmatmul.mubr.bf16.vlgmr.msra.gmra.mrb[28].mxu0 %v5268_v11 }
 0x990   :  { %7272 = vmatprep.mubr.msk.bf16.mxu0 %vm8403_vm1, %v8402_v46  ;;  %7257 = vmatpush3.bf16.msra.mxu0 %v8197_v3 }
 0x991   :  { %7258 = vmatprep.subr.bf16.mxu0 %v8402_v46 }
 0x994   :  { %7259 = vmatpush3.bf16.msra.mxu0 %v8198_v21 }
 0x995   :  { %7260 = vmatprep.subr.bf16.mxu0 %v8402_v46 }
 0x998   :  { %7261 = vmatpush3.bf16.msra.mxu0 %v8199_v31 }
 0x999   :  { %7262 = vmatprep.subr.bf16.mxu0 %v8402_v46 }
 0x99c   :  { %7263 = vmatpush3.bf16.msra.mxu0 %v8200_v37 }
 0x99d   :  { %7264 = vmatprep.subr.bf16.mxu0 %v8402_v46 }
 0x9a0   :  { %7265 = vmatpush3.bf16.msra.mxu0 %v8201_v8 }
 0x9a1   :  { %7266 = vmatprep.subr.bf16.mxu0 %v8402_v46 }
 0x9a4   :  { %7267 = vmatpush3.bf16.msra.mxu0 %v8202_v62 }
 0x9a5   :  { %7268 = vmatprep.subr.bf16.mxu0 %v8402_v46 }
 0x9a8   :  { %7269 = vmatpush3.bf16.msra.mxu0 %v8203_v39 }
 0x9a9   :  { %7270 = vmatprep.subr.bf16.mxu0 %v8402_v46 }
 0x9ac   :  { %7271 = vmatpush3.bf16.msra.mxu0 %v8204_v48 }
 0x9ad   :  { %7276 = vmatprep.subr.bf16.mxu0 %v8402_v46 }
 0xa62   :  { %v5367_v18 = vpop.f32.mrb[28].mxu0 }
 0xa63   :  { %v9850_v29 = vadd.f32 %v8248_v2, %v5367_v18  ;;  %v7254_v52 = vpop.f32.mrb[29].mxu0 }
 0xa64   :  { %v5370_v24 = vpop.f32.mrb[30].mxu0 }
 0xa65   :  { %v9855_v63 = vadd.f32 %v8249_v47, %v5370_v24  ;;  %5376 = vadd.xlane.f32.xlu0 %v9850_v29  ;;  %v7255_v50 = vpop.f32.mrb[31].mxu0  ;;  %v5382_v16 = vmul.f32 %v9850_v29, %v9850_v29 }
 0xa67   :  { %5378 = vadd.xlane.f32.xlu1 %v9855_v63  ;;  %v5383_v53 = vmul.f32 %v9855_v63, %v9855_v63 }
 0xa69   :  { %5384 = vadd.xlane.f32.xlu0 %v5382_v16 }
 0xa6b   :  { %5386 = vadd.xlane.f32.xlu1 %v5383_v53 }
 0xaf2   :  { %v5377_v23 = vpop.xlane.xlu0 %5376 }
 0xaf3   :  { %v5380_v44 = vmul.f32 0.03125, %v5377_v23 }
 0xaf4   :  { %v5379_v28 = vpop.xlane.xlu1 %5378 }
 0xaf5   :  { %v5381_v35 = vmul.f32 0.03125, %v5379_v28  ;;  %v5390_v25 = vmul.f32 %v5380_v44, %v5380_v44  ;;  %v5394_v41 = vsub.f32 %v9850_v29, %v5380_v44 }
 0xaf6   :  { %v5385_v34 = vpop.xlane.xlu0 %5384 }
 0xaf7   :  { %v5388_v20 = vmul.f32 0.03125, %v5385_v34  ;;  %v5391_v19 = vmul.f32 %v5381_v35, %v5381_v35  ;;  %v5395_v14 = vsub.f32 %v9855_v63, %v5381_v35  ;;  %v10097_v35 = vsub.s32 2, %v10094_v45 }
 0xaf8   :  { %v5387_v36 = vpop.xlane.xlu1 %5386 }
 0xaf9   :  { %v5392_v30 = vsub.f32 %v5388_v20, %v5390_v25  ;;  %v5389_v40 = vmul.f32 0.03125, %v5387_v36  ;;  %v5562_v34 = vrot.slane %v9874_v43, %v10097_v35 }
 0xafb   :  { %v5396_v59 = vadd.f32 1e-05, %v5392_v30  ;;  %v5393_v5 = vsub.f32 %v5389_v40, %v5391_v19 }
 0xafd   :  { %8237 = vrsqrt.f32 %v5396_v59  ;;  %v5397_v13 = vadd.f32 1e-05, %v5393_v5 }
 0xaff   :  { %8239 = vrsqrt.f32 %v5397_v13 }
 0xb07   :  { %v8238_v55 = vpop.eup %8237 }
 0xb08   :  { %v5400_v58 = vmul.f32 %v8238_v55, %v5394_v41 }
 0xb09   :  { %v8240_v38 = vpop.eup %8239 }
 0xb0a   :  { %v5401_v51 = vmul.f32 %v8240_v38, %v5395_v14  ;;  %v5406_v61 = vmul.f32 %v5405_v33, %v5400_v58 }
 0xb0c   :  { %v5407_v26 = vmul.f32 %v5405_v33, %v5401_v51  ;;  %v5412_v15 = vadd.f32 %v5411_v1, %v5406_v61 }
 0xb0e   :  { %v5413_v4 = vadd.f32 %v5411_v1, %v5407_v26 }
 0xb10   :  { %v5414_v56 = vpack.c.bf16 %v5413_v4, %v5412_v15 }
 0xb12   :  { %7273 = vmatmul.mubr.bf16.vlgmr.msra.gmra.mrb[32].mxu0 %v5414_v56 }
 0xb13   :  { %7292 = vmatprep.mubr.msk.bf16.mxu0 %vm8403_vm1, %v8402_v46  ;;  %7277 = vmatpush3.bf16.msra.mxu0 %v8205_v7 }
 0xb14   :  { %7278 = vmatprep.subr.bf16.mxu0 %v8402_v46 }
 0xb17   :  { %7279 = vmatpush3.bf16.msra.mxu0 %v8206_v17 }
 0xb18   :  { %7280 = vmatprep.subr.bf16.mxu0 %v8402_v46 }
 0xb1b   :  { %7281 = vmatpush3.bf16.msra.mxu0 %v8207_v27 }
 0xb1c   :  { %7282 = vmatprep.subr.bf16.mxu0 %v8402_v46 }
 0xb1f   :  { %7283 = vmatpush3.bf16.msra.mxu0 %v8208_v60 }
 0xb20   :  { %7284 = vmatprep.subr.bf16.mxu0 %v8402_v46 }
 0xb23   :  { %7285 = vmatpush3.bf16.msra.mxu0 %v8209_v22 }
 0xb24   :  { %7286 = vmatprep.subr.bf16.mxu0 %v8402_v46 }
 0xb27   :  { %7287 = vmatpush3.bf16.msra.mxu0 %v8210_v6 }
 0xb28   :  { %7288 = vmatprep.subr.bf16.mxu0 %v8402_v46 }
 0xb2b   :  { %7289 = vmatpush3.bf16.msra.mxu0 %v8211_v0 }
 0xb2c   :  { %7290 = vmatprep.subr.bf16.mxu0 %v8402_v46 }
 0xb2f   :  { %7291 = vmatpush3.bf16.msra.mxu0 %v8212_v9 }
 0xbe5   :  { %v5517_v42 = vpop.f32.mrb[32].mxu0 }
 0xbe6   :  { %v5518_v49 = vadd.f32 %v5517_v42, %v5434_v10  ;;  %v7274_v54 = vpop.f32.mrb[33].mxu0 }
 0xbe7   :  { %v5520_v57 = vpop.f32.mrb[34].mxu0 }
 0xbe8   :  { %v5524_v11 = vmul.f32 %v5518_v49, %v5518_v49  ;;  %v5521_v18 = vadd.f32 %v5520_v57, %v5434_v10  ;;  %v7275_v2 = vpop.f32.mrb[35].mxu0 }
 0xbea   :  { %v5526_v52 = vmul.f32 %v5524_v11, %v5518_v49  ;;  %v5525_v24 = vmul.f32 %v5521_v18, %v5521_v18 }
 0xbec   :  { %v5528_v47 = vmul.f32 0.044715, %v5526_v52  ;;  %v5527_v50 = vmul.f32 %v5525_v24, %v5521_v18 }
 0xbee   :  { %v5530_v16 = vadd.f32 %v5528_v47, %v5518_v49  ;;  %v5529_v53 = vmul.f32 0.044715, %v5527_v50 }
 0xbf0   :  { %v5532_v46 = vmul.f32 0.7978846, %v5530_v16  ;;  %v5531_v3 = vadd.f32 %v5529_v53, %v5521_v18 }
 0xbf2   :  { %8241 = vtanh.f32 %v5532_v46  ;;  %v5533_v21 = vmul.f32 0.7978846, %v5531_v3 }
 0xbf4   :  { %8243 = vtanh.f32 %v5533_v21 }
 0xbfc   :  { %v8242_v31 = vpop.eup %8241 }
 0xbfd   :  { %v5536_v37 = vadd.f32 1.0, %v8242_v31 }
 0xbfe   :  { %v8244_v8 = vpop.eup %8243 }
 0xbff   :  { %v5538_v62 = vmul.f32 0.5, %v5536_v37  ;;  %v5537_v39 = vadd.f32 1.0, %v8244_v8 }
 0xc01   :  { %v5539_v48 = vmul.f32 0.5, %v5537_v39  ;;  %v5540_v23 = vmul.f32 %v5538_v62, %v5518_v49 }
 0xc03   :  { %v5541_v44 = vmul.f32 %v5539_v48, %v5521_v18 }
 0xc05   :  { %v5542_v28 = vpack.c.bf16 %v5541_v44, %v5540_v23 }
 0xc07   :  { %7293 = vmatmul.mubr.bf16.vlgmr.msra.gmra.mrb[36].mxu0 %v5542_v28 }
 0xcda   :  { %v5645_v25 = vpop.f32.mrb[36].mxu0 }
 0xcdb   :  { %v5646_v20 = vadd.f32 %v5645_v25, %v5562_v34  ;;  %v7294_v36 = vpop.f32.mrb[37].mxu0 }
 0xcdc   :  { %v5648_v19 = vpop.f32.mrb[38].mxu0 }
 0xcdd   :  { %v5652_v30 = vadd.f32 %v5646_v20, %v9850_v29  ;;  %v5649_v40 = vadd.f32 %v5648_v19, %v5562_v34  ;;  %v7295_v59 = vpop.f32.mrb[39].mxu0 }
 0xcdf   :  { %5654 = vst [vmem:[#allocation11] sm:$0xff] %v5652_v30  ;;  %v5653_v5 = vadd.f32 %v5649_v40, %v9855_v63 }
 0xce1   :  { %5655 = vst [vmem:[#allocation11 + $0x8] sm:$0xff] %v5653_v5 }
 0xce2   :  { %8371 = shalt.err (!%p8368_p2)
}
 0xce3   :  { %s8372_s7 = scalar_lea.hbm %s9924_s9, 256 }
 0xce4   :  { %p8373_p3 = scmp.ne.s32.totalorder %s9924_s9, %s8372_s7  ;;  %p8376_p4 = scmp.lt.u32.totalorder %s8372_s7, %s9924_s9 }
 0xce6   :  { %p8378_p5 = pnand %p8376_p4, %p8373_p3 }
 0xce8   :  { %8381 = shalt.err (!%p8378_p5)
}
 0xce9   :  { %5667 = dma.vmem_to_hbm [thread:$0]  %s5662_s30, 256, %s9924_s9, [#allocation4], %s8399_s4, %s8399_s4, %s8400_s19  }
 0xcea   :  { %8388 = dma.done.wait [#allocation4], 256  }
 0xceb   :  { %8389 = vsyncadd [#allocation4], 4294967040 }
 0xcec   :  { %5671 = vsyncpa [#allocation3], 1 }
 0xced   :  { %5672 = vsyncpa [#allocation6], 1 }
 0xcee   :  { %5673 = vsyncpa [#allocation9], 1 }
 0xcef   :  { %5674 = vsyncpa [#allocation4], 1 }

</bundles_post_ra>
